<compile_context>
chip_gen: v5e
topology: v5e:2x2
jax: 0.10.0
libtpu: 0.0.40
codegen_flags: <defaults>
</compile_context>

<pallas_src>
import jax
import jax.numpy as jnp
from jax import lax
from jax.experimental import pallas as pl
from jax.experimental.pallas import tpu as pltpu


def _linear_kernel(x_ref, w_ref, b_ref, o_ref):
    # Single matmul per grid step: cast the activation tile to bf16 in VMEM so
    # the MXU runs in its native dtype, accumulate in f32, fuse the f32 bias.
    x_bf = x_ref[...].astype(jnp.bfloat16)
    o_ref[...] = (
        jnp.dot(x_bf, w_ref[...], preferred_element_type=jnp.float32)
        + b_ref[...]
    ).astype(o_ref.dtype)


def _round_up(x, m):
    return ((x + m - 1) // m) * m


def linear_pallas(x, w_t_bf16, b):
    """x: (M, K) f32, w_t_bf16: (K, N) bf16, b: (N,) f32 -> (M, N) f32."""
    M, K = x.shape
    K2, N = w_t_bf16.shape
    assert K == K2 and b.shape == (N,)

    # M tile: tiny inputs collapse to one block (single DMA + one MXU pass);
    # large inputs use 512-row tiles on a 1-D "parallel" grid over M.
    m_pad8 = max(_round_up(M, 8), 8)
    tm = m_pad8 if m_pad8 <= 512 else 512
    m_blocks = pl.cdiv(M, tm)  # ragged last tile is masked by Pallas; no pad

    # v7x has 2 TensorCores: when the M grid is a single block, split N so both
    # cores each DMA half the (bf16) weight and work concurrently.
    n_split = 1
    if m_blocks == 1:
        try:
            kind = jax.devices()[0].device_kind.lower()
            if "v7" in kind or "7x" in kind:
                n_split = 2
        except Exception:
            n_split = 1
    tn = N // n_split
    assert tn % 128 == 0

    b2d = b.reshape(1, N)  # 2D bias keeps the lane dim 128-aligned
    grid = (m_blocks, n_split)

    bytes_accessed = (
        M * K * x.dtype.itemsize
        + K * N * w_t_bf16.dtype.itemsize
        + N * b.dtype.itemsize
        + M * N * x.dtype.itemsize
    )
    cost = pl.CostEstimate(
        flops=2 * M * K * N, transcendentals=0, bytes_accessed=bytes_accessed
    )

    def run(single_buffer_constants):
        const_mode = pl.Buffered(1) if single_buffer_constants else None
        return pl.pallas_call(
            _linear_kernel,
            out_shape=jax.ShapeDtypeStruct((M, N), x.dtype),
            grid_spec=pltpu.PrefetchScalarGridSpec(
                num_scalar_prefetch=0,
                grid=grid,
                in_specs=[
                    # activations stream over M
                    pl.BlockSpec((tm, K), lambda i, j: (i, 0)),
                    # weight: constant over M -> VMEM-resident; single-buffered
                    pl.BlockSpec((K, tn), lambda i, j: (0, j),
                                 pipeline_mode=const_mode),
                    # bias row: constant over M; single-buffered
                    pl.BlockSpec((1, tn), lambda i, j: (0, j),
                                 pipeline_mode=const_mode),
                ],
                out_specs=pl.BlockSpec((tm, tn), lambda i, j: (i, j)),
            ),
            compiler_params=pltpu.CompilerParams(
                dimension_semantics=("parallel", "parallel"),
            ),
            cost_estimate=cost,
        )(x, w_t_bf16, b2d)

    try:
        return run(True)
    except Exception:
        # Fallback if this Pallas version rejects Buffered(1) blocks.
        return run(False)


class ModelLinearPallas:
    """JAX/Pallas equivalent of model_Linear: forward(img) = linear1(img)."""

    IN1, OUT1 = 1024, 768
    IN2, OUT2 = 128, 768

    def __init__(self, key):
        k1, k2, k3, k4 = jax.random.split(key, 4)
        # PyTorch nn.Linear default init: U(-1/sqrt(fan_in), 1/sqrt(fan_in))
        bound1 = 1.0 / (self.IN1 ** 0.5)
        bound2 = 1.0 / (self.IN2 ** 0.5)
        # linear1 weight stored transposed (in, out) and in bf16 (native MXU
        # dtype); bias kept in f32 and added after the f32-accumulated dot.
        self.w1_t = jax.random.uniform(
            k1, (self.IN1, self.OUT1), jnp.float32, -bound1, bound1
        ).astype(jnp.bfloat16)
        self.b1 = jax.random.uniform(
            k2, (self.OUT1,), jnp.float32, -bound1, bound1
        )
        # linear2 is unused in forward (matches the PyTorch module).
        self.w2_t = jax.random.uniform(
            k3, (self.IN2, self.OUT2), jnp.float32, -bound2, bound2
        )
        self.b2 = jax.random.uniform(
            k4, (self.OUT2,), jnp.float32, -bound2, bound2
        )

    def __call__(self, img):
        # img: (..., 1024) -> (..., 768), matching nn.Linear broadcasting.
        lead = img.shape[:-1]
        x2d = img.reshape(-1, self.IN1)
        out2d = linear_pallas(x2d, self.w1_t, self.b1)
        return out2d.reshape(*lead, self.OUT1)


def _reference(img, w1_t_bf16, b1):
    # Reference that applies the same input rounding (bf16 operands), with
    # f32 accumulation at highest precision.
    x = img.astype(jnp.bfloat16).astype(jnp.float32)
    w = w1_t_bf16.astype(jnp.float32)
    lead = img.shape[:-1]
    y = jnp.dot(
        x.reshape(-1, x.shape[-1]), w, precision=lax.Precision.HIGHEST
    ) + b1
    return y.reshape(*lead, w.shape[-1])


if __name__ == "__main__":
    key = jax.random.PRNGKey(0)
    kp, kx = jax.random.split(key)

    model = ModelLinearPallas(kp)

    # Small input consistent with forward: (batch=2, seq=8, features=1024)
    img = jax.random.normal(kx, (2, 8, 1024), dtype=jnp.float32)
    out = jax.block_until_ready(model(img))
    ref = _reference(img, model.w1_t, model.b1)
    assert out.shape == (2, 8, 768)
    assert jnp.allclose(out, ref, atol=2e-2, rtol=2e-2)

    # Also exercise a leading shape whose flattened M (15) is not a multiple
    # of 8 (ragged-block path, no host-side padding).
    img2 = jax.random.normal(kx, (3, 5, 1024), dtype=jnp.float32)
    out2 = jax.block_until_ready(model(img2))
    ref2 = _reference(img2, model.w1_t, model.b1)
    assert out2.shape == (3, 5, 768)
    assert jnp.allclose(out2, ref2, atol=2e-2, rtol=2e-2)

    print("KERNEL_OK")
</pallas_src>

<mosaic_0001>
module attributes {stable_mosaic.version = 11 : i64} {
  func.func @_linear_kernel(%arg0: i32, %arg1: i32, %arg2: memref<16x1024xf32, #tpu.memory_space<vmem>>, %arg3: memref<1024x768xbf16, #tpu.memory_space<vmem>>, %arg4: memref<1x768xf32, #tpu.memory_space<vmem>>, %arg5: memref<16x768xf32, #tpu.memory_space<vmem>>) attributes {dimension_semantics = [#tpu.dimension_semantics<parallel>, #tpu.dimension_semantics<parallel>], iteration_bounds = array<i64: 1, 1>, scalar_prefetch = 0 : i64, scratch_operands = 0 : i64, tpu.core_type = #tpu.core_type<tc>, window_params = [{transform_indices = @transform_0, window_bounds = array<i64: 16, 1024>}, {pipeline_mode = #tpu.pipeline_mode<synchronous>, transform_indices = @transform_1, window_bounds = array<i64: 1024, 768>}, {pipeline_mode = #tpu.pipeline_mode<synchronous>, transform_indices = @transform_2, window_bounds = array<i64: 1, 768>}, {transform_indices = @transform_3, window_bounds = array<i64: 16, 768>}]} {
    %c0 = arith.constant 0 : index
    %c0_0 = arith.constant 0 : index
    %0 = vector.load %arg2[%c0, %c0_0] : memref<16x1024xf32, #tpu.memory_space<vmem>>, vector<16x1024xf32>
    %1 = arith.truncf %0 : vector<16x1024xf32> to vector<16x1024xbf16>
    %c0_1 = arith.constant 0 : index
    %c0_2 = arith.constant 0 : index
    %2 = vector.load %arg3[%c0_1, %c0_2] : memref<1024x768xbf16, #tpu.memory_space<vmem>>, vector<1024x768xbf16>
    %cst = arith.constant dense<0.000000e+00> : vector<16x768xf32>
    %3 = tpu.matmul %1, %2, %cst {dimension_numbers = #tpu.dot_dimension_numbers<[1], [0], [0], [1], [0, 0, 1, 1], [], []>} : vector<16x1024xbf16>, vector<1024x768xbf16>, vector<16x768xf32> -> vector<16x768xf32>
    %c0_3 = arith.constant 0 : index
    %c0_4 = arith.constant 0 : index
    %4 = vector.load %arg4[%c0_3, %c0_4] : memref<1x768xf32, #tpu.memory_space<vmem>>, vector<1x768xf32>
    %5 = vector.broadcast %4 : vector<1x768xf32> to vector<16x768xf32>
    %6 = arith.addf %3, %5 : vector<16x768xf32>
    %c0_5 = arith.constant 0 : index
    %c0_6 = arith.constant 0 : index
    %7 = vector.load %arg5[%c0_5, %c0_6] : memref<16x768xf32, #tpu.memory_space<vmem>>, vector<16x768xf32>
    tpu.vector_store %arg5[%c0_5, %c0_6], %6 {strides = array<i32>} : memref<16x768xf32, #tpu.memory_space<vmem>>, vector<16x768xf32>,
    return
  }
  func.func @transform_0(%arg0: i32, %arg1: i32) -> (i32, i32) {
    %c0_i32 = arith.constant 0 : i32
    %c0_i32_0 = arith.constant 0 : i32
    return %arg0, %c0_i32 : i32, i32
  }
  func.func @transform_1(%arg0: i32, %arg1: i32) -> (i32, i32) {
    %c0_i32 = arith.constant 0 : i32
    %c0_i32_0 = arith.constant 0 : i32
    return %c0_i32, %arg1 : i32, i32
  }
  func.func @transform_2(%arg0: i32, %arg1: i32) -> (i32, i32) {
    %c0_i32 = arith.constant 0 : i32
    %c0_i32_0 = arith.constant 0 : i32
    return %c0_i32, %arg1 : i32, i32
  }
  func.func @transform_3(%arg0: i32, %arg1: i32) -> (i32, i32) {
    %c0_i32 = arith.constant 0 : i32
    return %arg0, %arg1 : i32, i32
  }
}

module attributes {stable_mosaic.version = 11 : i64} {
  func.func @_linear_kernel(%arg0: i32, %arg1: i32, %arg2: memref<16x1024xf32, #tpu.memory_space<vmem>>, %arg3: memref<1024x768xbf16, #tpu.memory_space<vmem>>, %arg4: memref<1x768xf32, #tpu.memory_space<vmem>>, %arg5: memref<16x768xf32, #tpu.memory_space<vmem>>) attributes {dimension_semantics = [#tpu.dimension_semantics<parallel>, #tpu.dimension_semantics<parallel>], iteration_bounds = array<i64: 1, 1>, scalar_prefetch = 0 : i64, scratch_operands = 0 : i64, tpu.core_type = #tpu.core_type<tc>, window_params = [{transform_indices = @transform_0, window_bounds = array<i64: 16, 1024>}, {transform_indices = @transform_1, window_bounds = array<i64: 1024, 768>}, {transform_indices = @transform_2, window_bounds = array<i64: 1, 768>}, {transform_indices = @transform_3, window_bounds = array<i64: 16, 768>}]} {
    %c0 = arith.constant 0 : index
    %c0_0 = arith.constant 0 : index
    %0 = vector.load %arg2[%c0, %c0_0] : memref<16x1024xf32, #tpu.memory_space<vmem>>, vector<16x1024xf32>
    %1 = arith.truncf %0 : vector<16x1024xf32> to vector<16x1024xbf16>
    %c0_1 = arith.constant 0 : index
    %c0_2 = arith.constant 0 : index
    %2 = vector.load %arg3[%c0_1, %c0_2] : memref<1024x768xbf16, #tpu.memory_space<vmem>>, vector<1024x768xbf16>
    %cst = arith.constant dense<0.000000e+00> : vector<16x768xf32>
    %3 = tpu.matmul %1, %2, %cst {dimension_numbers = #tpu.dot_dimension_numbers<[1], [0], [0], [1], [0, 0, 1, 1], [], []>} : vector<16x1024xbf16>, vector<1024x768xbf16>, vector<16x768xf32> -> vector<16x768xf32>
    %c0_3 = arith.constant 0 : index
    %c0_4 = arith.constant 0 : index
    %4 = vector.load %arg4[%c0_3, %c0_4] : memref<1x768xf32, #tpu.memory_space<vmem>>, vector<1x768xf32>
    %5 = vector.broadcast %4 : vector<1x768xf32> to vector<16x768xf32>
    %6 = arith.addf %3, %5 : vector<16x768xf32>
    %c0_5 = arith.constant 0 : index
    %c0_6 = arith.constant 0 : index
    %7 = vector.load %arg5[%c0_5, %c0_6] : memref<16x768xf32, #tpu.memory_space<vmem>>, vector<16x768xf32>
    tpu.vector_store %arg5[%c0_5, %c0_6], %6 {strides = array<i32>} : memref<16x768xf32, #tpu.memory_space<vmem>>, vector<16x768xf32>,
    return
  }
  func.func @transform_0(%arg0: i32, %arg1: i32) -> (i32, i32) {
    %c0_i32 = arith.constant 0 : i32
    %c0_i32_0 = arith.constant 0 : i32
    return %arg0, %c0_i32 : i32, i32
  }
  func.func @transform_1(%arg0: i32, %arg1: i32) -> (i32, i32) {
    %c0_i32 = arith.constant 0 : i32
    %c0_i32_0 = arith.constant 0 : i32
    return %c0_i32, %arg1 : i32, i32
  }
  func.func @transform_2(%arg0: i32, %arg1: i32) -> (i32, i32) {
    %c0_i32 = arith.constant 0 : i32
    %c0_i32_0 = arith.constant 0 : i32
    return %c0_i32, %arg1 : i32, i32
  }
  func.func @transform_3(%arg0: i32, %arg1: i32) -> (i32, i32) {
    %c0_i32 = arith.constant 0 : i32
    return %arg0, %arg1 : i32, i32
  }
}

</mosaic_0001>

<bundles_post_ra>
// kernel: tpu_custom_call.1
= control target key start
LH: loop header
LB: loop body
LE: loop exit
PB: predicated region body
PF: predicated region fallthrough
CT: control target
= control target key end

     0   :  { %8 = vsyncpa [#allocation3], 0  ;;  %s5267_s0 = inlined_call_operand.hbm [shape: f32[16,1024], index: 0, kind: input, shape index: {}]   ;;  %s5268_s1 = inlined_call_operand.hbm [shape: bf16[1024,768], index: 1, kind: input, shape index: {}]   ;;  %s5269_s2 = inlined_call_operand.hbm [shape: f32[1,768], index: 2, kind: input, shape index: {}]   ;;  %s5270_s3 = inlined_call_operand.hbm [shape: f32[16,768], index: 3, kind: output, shape index: {}]  }
   0x1   :  { %9 = vsyncpa [#allocation6], 0  ;;  %s28_s14 = sshll.u32 %s5268_s1, 4  ;;  %s29_s14 = int_to_ptr.hbm [resolvable:$true] %s28_s14 }
   0x2   :  { %10 = vsyncpa [#allocation4], 0  ;;  %s5139_s15 = smov [#allocation5]   ;;  %s15_s19 = sshll.u32 %s5267_s0, 4  ;;  %s16_s19 = int_to_ptr.hbm [resolvable:$true] %s15_s19 }
   0x3   :  { %s30_s16 = sshll.u32 %s5139_s15, 4  ;;  %s5140_s20 = smov 384   ;;  %s31_s16 = int_to_ptr.vmem [resolvable:$true] %s30_s16 }
   0x4   :  { %s5141_s21 = smov 24   ;;  %s5142_s22 = smov [#allocation2]  }
   0x5   :  { %36 = dma.hbm_to_vmem [thread:$0]  %s29_s14, 49152, %s31_s16, [#allocation6], %s5140_s20, %s5140_s20, %s5141_s21  }
   0x6   :  { %s17_s23 = sshll.u32 %s5142_s22, 4  ;;  %s5143_s24 = smov 1024   ;;  %s18_s23 = int_to_ptr.vmem [resolvable:$true] %s17_s23 }
   0x7   :  { %s5144_s25 = smov 64   ;;  %s42_s27 = sshll.u32 %s5269_s2, 4  ;;  %s43_s27 = int_to_ptr.hbm [resolvable:$true] %s42_s27 }
   0x8   :  { %23 = dma.hbm_to_vmem [thread:$0]  %s16_s19, 2048, %s18_s23, [#allocation3], %s5143_s24, %s5143_s24, %s5144_s25  }
   0x9   :  { %s5145_s28 = smov [#allocation7]  }
   0xa   :  { %s44_s29 = sshll.u32 %s5145_s28, 4  ;;  %s45_s29 = int_to_ptr.vmem [resolvable:$true] %s44_s29 }
   0xb   :  { %47 = dma.hbm_to_vmem [thread:$0]  %s43_s27, 96, %s45_s29, [#allocation6]  }
   0xc   :  { %5133 = dma.done.wait [#allocation3], 2048  }
   0xd   :  { %5134 = vsyncadd [#allocation3], 4294965248 }
   0xe   :  { %5135 = dma.done.wait [#allocation6], 49248  }
   0xf   :  { %5136 = vsyncadd [#allocation6], 4294918048  ;;  %v3276_v0 = vld [vmem:[#allocation5 + $0x150] sm:$0xf]  ;;  %v4687_v1 = vld [vmem:[#allocation5 + $0x164] sm:$0xf0] }
  0x10   :  { %v3468_v2 = vld [vmem:[#allocation5 + $0x2d0] sm:$0xf]  ;;  %v3277_v3 = vor.u32 %v4687_v1, %v3276_v0  ;;  %v4735_v4 = vld [vmem:[#allocation5 + $0x2e4] sm:$0xf0]  ;;  %v3252_v11 = vld [vmem:[#allocation5 + $0x120] sm:$0xf] }
  0x11   :  { %v3660_v5 = vld [vmem:[#allocation5 + $0x450] sm:$0xf]  ;;  %v4783_v6 = vld [vmem:[#allocation5 + $0x464] sm:$0xf0]  ;;  %v3469_v7 = vor.u32 %v4735_v4, %v3468_v2  ;;  %v4681_v13 = vld [vmem:[#allocation5 + $0x134] sm:$0xf0] }
  0x12   :  { %v3661_v8 = vor.u32 %v4783_v6, %v3660_v5  ;;  %v3852_v9 = vld [vmem:[#allocation5 + $0x5d0] sm:$0xf]  ;;  %v4831_v10 = vld [vmem:[#allocation5 + $0x5e4] sm:$0xf0]  ;;  %2402 = vmatpush.bf16.msra.mxu0 %v3277_v3  ;;  %v3444_v14 = vld [vmem:[#allocation5 + $0x2a0] sm:$0xf]  ;;  %v3253_v16 = vor.u32 %v4681_v13, %v3252_v11 }
  0x13   :  { %v3853_v12 = vor.u32 %v4831_v10, %v3852_v9  ;;  %v4729_v15 = vld [vmem:[#allocation5 + $0x2b4] sm:$0xf0]  ;;  %2416 = vmatpush.bf16.msra.mxu1 %v3469_v7  ;;  %v3636_v18 = vld [vmem:[#allocation5 + $0x420] sm:$0xf]  ;;  %v3228_v23 = vld [vmem:[#allocation5 + $0xf0] sm:$0xf] }
  0x14   :  { %2430 = vmatpush.bf16.msra.mxu2 %v3661_v8  ;;  %v3445_v17 = vor.u32 %v4729_v15, %v3444_v14  ;;  %v4777_v19 = vld [vmem:[#allocation5 + $0x434] sm:$0xf0]  ;;  %v3828_v20 = vld [vmem:[#allocation5 + $0x5a0] sm:$0xf]  ;;  %v4675_v24 = vld [vmem:[#allocation5 + $0x104] sm:$0xf0] }
  0x15   :  { %2444 = vmatpush.bf16.msra.mxu3 %v3853_v12  ;;  %v3637_v21 = vor.u32 %v4777_v19, %v3636_v18  ;;  %v4825_v22 = vld [vmem:[#allocation5 + $0x5b4] sm:$0xf0]  ;;  %v3420_v26 = vld [vmem:[#allocation5 + $0x270] sm:$0xf]  ;;  %v4723_v27 = vld [vmem:[#allocation5 + $0x284] sm:$0xf0]  ;;  %v3229_v29 = vor.u32 %v4675_v24, %v3228_v23 }
  0x16   :  { %v3829_v25 = vor.u32 %v4825_v22, %v3828_v20  ;;  %v3612_v28 = vld [vmem:[#allocation5 + $0x3f0] sm:$0xf]  ;;  %2403 = vmatpush.bf16.msra.mxu0 %v3253_v16  ;;  %v4771_v30 = vld [vmem:[#allocation5 + $0x404] sm:$0xf0]  ;;  %v3421_v33 = vor.u32 %v4723_v27, %v3420_v26  ;;  %v3204_v35 = vld [vmem:[#allocation5 + $0xc0] sm:$0xf] }
  0x17   :  { %v3804_v31 = vld [vmem:[#allocation5 + $0x570] sm:$0xf]  ;;  %v4819_v32 = vld [vmem:[#allocation5 + $0x584] sm:$0xf0]  ;;  %2417 = vmatpush.bf16.msra.mxu1 %v3445_v17  ;;  %v3613_v34 = vor.u32 %v4771_v30, %v3612_v28  ;;  %v4669_v36 = vld [vmem:[#allocation5 + $0xd4] sm:$0xf0] }
  0x18   :  { %2431 = vmatpush.bf16.msra.mxu2 %v3637_v21  ;;  %v3396_v37 = vld [vmem:[#allocation5 + $0x240] sm:$0xf]  ;;  %v3805_v38 = vor.u32 %v4819_v32, %v3804_v31  ;;  %v4717_v39 = vld [vmem:[#allocation5 + $0x254] sm:$0xf0]  ;;  %v3205_v44 = vor.u32 %v4669_v36, %v3204_v35  ;;  %v3180_v47 = vld [vmem:[#allocation5 + $0x90] sm:$0xf] }
  0x19   :  { %2445 = vmatpush.bf16.msra.mxu3 %v3829_v25  ;;  %v3588_v40 = vld [vmem:[#allocation5 + $0x3c0] sm:$0xf]  ;;  %v4765_v41 = vld [vmem:[#allocation5 + $0x3d4] sm:$0xf0]  ;;  %v3397_v45 = vor.u32 %v4717_v39, %v3396_v37  ;;  %v4663_v48 = vld [vmem:[#allocation5 + $0xa4] sm:$0xf0] }
  0x1a   :  { %v3780_v42 = vld [vmem:[#allocation5 + $0x540] sm:$0xf]  ;;  %v4813_v43 = vld [vmem:[#allocation5 + $0x554] sm:$0xf0]  ;;  %2404 = vmatpush.bf16.msra.mxu0 %v3229_v29  ;;  %v3589_v46 = vor.u32 %v4765_v41, %v3588_v40  ;;  %v3372_v49 = vld [vmem:[#allocation5 + $0x210] sm:$0xf]  ;;  %v3181_v56 = vor.u32 %v4663_v48, %v3180_v47 }
  0x1b   :  { %2418 = vmatpush.bf16.msra.mxu1 %v3421_v33  ;;  %v3781_v50 = vor.u32 %v4813_v43, %v3780_v42  ;;  %v4711_v51 = vld [vmem:[#allocation5 + $0x224] sm:$0xf0]  ;;  %v3564_v52 = vld [vmem:[#allocation5 + $0x390] sm:$0xf]  ;;  %v3156_v59 = vld [vmem:[#allocation5 + $0x60] sm:$0xf] }
  0x1c   :  { %2432 = vmatpush.bf16.msra.mxu2 %v3613_v34  ;;  %v4759_v53 = vld [vmem:[#allocation5 + $0x3a4] sm:$0xf0]  ;;  %v3756_v54 = vld [vmem:[#allocation5 + $0x510] sm:$0xf]  ;;  %v3373_v57 = vor.u32 %v4711_v51, %v3372_v49  ;;  %v4657_v60 = vld [vmem:[#allocation5 + $0x74] sm:$0xf0] }
  0x1d   :  { %2446 = vmatpush.bf16.msra.mxu3 %v3805_v38  ;;  %v4807_v55 = vld [vmem:[#allocation5 + $0x524] sm:$0xf0]  ;;  %v3565_v58 = vor.u32 %v4759_v53, %v3564_v52  ;;  %v3348_v61 = vld [vmem:[#allocation5 + $0x1e0] sm:$0xf]  ;;  %v4705_v63 = vld [vmem:[#allocation5 + $0x1f4] sm:$0xf0]  ;;  %v3157_v4 = vor.u32 %v4657_v60, %v3156_v59 }
  0x1e   :  { %2405 = vmatpush.bf16.msra.mxu0 %v3205_v44  ;;  %v3757_v62 = vor.u32 %v4807_v55, %v3756_v54  ;;  %v3540_v0 = vld [vmem:[#allocation5 + $0x360] sm:$0xf]  ;;  %v4753_v1 = vld [vmem:[#allocation5 + $0x374] sm:$0xf0]  ;;  %v3349_v5 = vor.u32 %v4705_v63, %v3348_v61  ;;  %v3132_v7 = vld [vmem:[#allocation5 + $0x30] sm:$0xf] }
  0x1f   :  { %2419 = vmatpush.bf16.msra.mxu1 %v3397_v45  ;;  %v3732_v2 = vld [vmem:[#allocation5 + $0x4e0] sm:$0xf]  ;;  %v4801_v3 = vld [vmem:[#allocation5 + $0x4f4] sm:$0xf0]  ;;  %v3541_v6 = vor.u32 %v4753_v1, %v3540_v0  ;;  %v4651_v8 = vld [vmem:[#allocation5 + $0x44] sm:$0xf0] }
  0x20   :  { %2433 = vmatpush.bf16.msra.mxu2 %v3589_v46  ;;  %v3324_v9 = vld [vmem:[#allocation5 + $0x1b0] sm:$0xf]  ;;  %v3733_v10 = vor.u32 %v4801_v3, %v3732_v2  ;;  %v4699_v11 = vld [vmem:[#allocation5 + $0x1c4] sm:$0xf0]  ;;  %v3133_v16 = vor.u32 %v4651_v8, %v3132_v7  ;;  %v3108_v17 = vld [vmem:[#allocation5] sm:$0xf] }
  0x21   :  { %2447 = vmatpush.bf16.msra.mxu3 %v3781_v50  ;;  %v3516_v12 = vld [vmem:[#allocation5 + $0x330] sm:$0xf]  ;;  %v4747_v13 = vld [vmem:[#allocation5 + $0x344] sm:$0xf0]  ;;  %v4645_v18 = vld [vmem:[#allocation5 + $0x14] sm:$0xf0]  ;;  %v3325_v19 = vor.u32 %v4699_v11, %v3324_v9 }
  0x22   :  { %2406 = vmatpush.bf16.msra.mxu0 %v3181_v56  ;;  %v3708_v14 = vld [vmem:[#allocation5 + $0x4b0] sm:$0xf]  ;;  %v4795_v15 = vld [vmem:[#allocation5 + $0x4c4] sm:$0xf0]  ;;  %v3517_v20 = vor.u32 %v4747_v13, %v3516_v12  ;;  %v3300_v21 = vld [vmem:[#allocation5 + $0x180] sm:$0xf]  ;;  %v3109_v31 = vor.u32 %v4645_v18, %v3108_v17 }
  0x23   :  { %2420 = vmatpush.bf16.msra.mxu1 %v3373_v57  ;;  %v4693_v22 = vld [vmem:[#allocation5 + $0x194] sm:$0xf0]  ;;  %v3492_v23 = vld [vmem:[#allocation5 + $0x300] sm:$0xf]  ;;  %v3709_v24 = vor.u32 %v4795_v15, %v3708_v14  ;;  %v4044_v28 = vld [vmem:[#allocation5 + $0x750] sm:$0xf] }
  0x24   :  { %2434 = vmatpush.bf16.msra.mxu2 %v3565_v58  ;;  %v4741_v25 = vld [vmem:[#allocation5 + $0x314] sm:$0xf0]  ;;  %v3684_v26 = vld [vmem:[#allocation5 + $0x480] sm:$0xf]  ;;  %v4879_v29 = vld [vmem:[#allocation5 + $0x764] sm:$0xf0]  ;;  %v3301_v35 = vor.u32 %v4693_v22, %v3300_v21 }
  0x25   :  { %2448 = vmatpush.bf16.msra.mxu3 %v3757_v62  ;;  %v4789_v27 = vld [vmem:[#allocation5 + $0x494] sm:$0xf0]  ;;  %v4236_v30 = vld [vmem:[#allocation5 + $0x8d0] sm:$0xf]  ;;  %v4927_v32 = vld [vmem:[#allocation5 + $0x8e4] sm:$0xf0]  ;;  %v3493_v36 = vor.u32 %v4741_v25, %v3492_v23  ;;  %v4045_v40 = vor.u32 %v4879_v29, %v4044_v28 }
  0x26   :  { %2407 = vmatpush.bf16.msra.mxu0 %v3157_v4  ;;  %v4428_v33 = vld [vmem:[#allocation5 + $0xa50] sm:$0xf]  ;;  %v4975_v34 = vld [vmem:[#allocation5 + $0xa64] sm:$0xf0]  ;;  %v3685_v39 = vor.u32 %v4789_v27, %v3684_v26  ;;  %v4020_v41 = vld [vmem:[#allocation5 + $0x720] sm:$0xf]  ;;  %v4237_v43 = vor.u32 %v4927_v32, %v4236_v30 }
  0x27   :  { %2421 = vmatpush.bf16.msra.mxu1 %v3349_v5  ;;  %v4620_v37 = vld [vmem:[#allocation5 + $0xbd0] sm:$0xf]  ;;  %v5023_v38 = vld [vmem:[#allocation5 + $0xbe4] sm:$0xf0]  ;;  %v4873_v42 = vld [vmem:[#allocation5 + $0x734] sm:$0xf0]  ;;  %v4429_v44 = vor.u32 %v4975_v34, %v4428_v33 }
  0x28   :  { %2435 = vmatpush.bf16.msra.mxu2 %v3541_v6  ;;  %v4212_v45 = vld [vmem:[#allocation5 + $0x8a0] sm:$0xf]  ;;  %v4921_v46 = vld [vmem:[#allocation5 + $0x8b4] sm:$0xf0]  ;;  %v4621_v48 = vor.u32 %v5023_v38, %v4620_v37  ;;  %v62_v54 = vld [vmem:[#allocation2 + $0x10] sm:$0xff]  ;;  %v4021_v55 = vor.u32 %v4873_v42, %v4020_v41  ;;  %s5146_s0 = smov [#allocation8]  }
  0x29   :  { %2449 = vmatpush.bf16.msra.mxu3 %v3733_v10  ;;  %v4404_v47 = vld [vmem:[#allocation5 + $0xa20] sm:$0xf]  ;;  %v4969_v49 = vld [vmem:[#allocation5 + $0xa34] sm:$0xf0]  ;;  %v3996_v56 = vld [vmem:[#allocation5 + $0x6f0] sm:$0xf]  ;;  %v4213_v60 = vor.u32 %v4921_v46, %v4212_v45 }
  0x2a   :  { %2408 = vmatpush.bf16.msra.mxu0 %v3133_v16  ;;  %v4596_v50 = vld [vmem:[#allocation5 + $0xba0] sm:$0xf]  ;;  %v5017_v51 = vld [vmem:[#allocation5 + $0xbb4] sm:$0xf0]  ;;  %v4867_v57 = vld [vmem:[#allocation5 + $0x704] sm:$0xf0]  ;;  %v4405_v61 = vor.u32 %v4969_v49, %v4404_v47 }
  0x2b   :  { %2422 = vmatpush.bf16.msra.mxu1 %v3325_v19  ;;  %v60_v52 = vld [vmem:[#allocation2] sm:$0xff]  ;;  %v70_v59 = vld [vmem:[#allocation2 + $0x50] sm:$0xff]  ;;  %v4915_v63 = vld [vmem:[#allocation5 + $0x884] sm:$0xf0]  ;;  %v4597_v2 = vor.u32 %v5017_v51, %v4596_v50  ;;  %v3997_v9 = vor.u32 %v4867_v57, %v3996_v56  ;;  %s3090_s2 = sshll.u32 %s5146_s0, 4  ;;  %s3092_s5 = sshll.u32 %s5270_s3, 4  ;;  %s3091_s2 = int_to_ptr.vmem [resolvable:$true] %s3090_s2  ;;  %s3093_s5 = int_to_ptr.hbm [resolvable:$true] %s3092_s5 }
  0x2c   :  { %2436 = vmatpush.bf16.msra.mxu2 %v3517_v20  ;;  %v68_v53 = vld [vmem:[#allocation2 + $0x40] sm:$0xff]  ;;  %v4188_v62 = vld [vmem:[#allocation5 + $0x870] sm:$0xf]  ;;  %v5180_v1 = vpack.c.bf16 %v70_v59, %v62_v54  ;;  %v4963_v3 = vld [vmem:[#allocation5 + $0xa04] sm:$0xf0]  ;;  %s5147_s6 = smov 768  }
  0x2d   :  { %2450 = vmatpush.bf16.msra.mxu3 %v3709_v24  ;;  %v5178_v58 = vpack.c.bf16 %v68_v53, %v60_v52  ;;  %v4380_v0 = vld [vmem:[#allocation5 + $0x9f0] sm:$0xf]  ;;  %v5011_v5 = vld [vmem:[#allocation5 + $0xb84] sm:$0xf0]  ;;  %v63_v8 = vld [vmem:[#allocation2 + $0x18] sm:$0xff]  ;;  %v4189_v12 = vor.u32 %v4915_v63, %v4188_v62  ;;  %s5148_s7 = smov 48  }
  0x2e   :  { %2409 = vmatpush.bf16.msra.mxu0 %v3109_v31  ;;  %v4572_v4 = vld [vmem:[#allocation5 + $0xb70] sm:$0xf]  ;;  %v61_v6 = vld [vmem:[#allocation2 + $0x8] sm:$0xff]  ;;  %v71_v11 = vld [vmem:[#allocation2 + $0x58] sm:$0xff]  ;;  %v4381_v13 = vor.u32 %v4963_v3, %v4380_v0 }
  0x2f   :  { %2423 = vmatpush.bf16.msra.mxu1 %v3301_v35  ;;  %v69_v7 = vld [vmem:[#allocation2 + $0x48] sm:$0xff]  ;;  %v3972_v14 = vld [vmem:[#allocation5 + $0x6c0] sm:$0xf]  ;;  %v4861_v15 = vld [vmem:[#allocation5 + $0x6d4] sm:$0xf0]  ;;  %v5186_v17 = vpack.c.bf16 %v71_v11, %v63_v8  ;;  %v4573_v18 = vor.u32 %v5011_v5, %v4572_v4 }
  0x30   :  { %2437 = vmatpush.bf16.msra.mxu2 %v3493_v36  ;;  %v5184_v10 = vpack.c.bf16 %v69_v7, %v61_v6  ;;  %v4164_v16 = vld [vmem:[#allocation5 + $0x840] sm:$0xf]  ;;  %v4909_v19 = vld [vmem:[#allocation5 + $0x854] sm:$0xf0]  ;;  %v3973_v24 = vor.u32 %v4861_v15, %v3972_v14  ;;  %v3948_v27 = vld [vmem:[#allocation5 + $0x690] sm:$0xf] }
  0x31   :  { %2451 = vmatpush.bf16.msra.mxu3 %v3685_v39  ;;  %2410 = vmatmul.bf16.vlgmr.msra.gmra.mxu0 %v5178_v58  ;;  %v4356_v20 = vld [vmem:[#allocation5 + $0x9c0] sm:$0xf]  ;;  %v4957_v21 = vld [vmem:[#allocation5 + $0x9d4] sm:$0xf0]  ;;  %v4165_v25 = vor.u32 %v4909_v19, %v4164_v16  ;;  %v4855_v28 = vld [vmem:[#allocation5 + $0x6a4] sm:$0xf0] }
  0x32   :  { %2458 = vmatpush.bf16.msrb.mxu0 %v4045_v40  ;;  %2424 = vmatmul.bf16.vlgmr.msra.gmra.mxu1 %v5184_v10  ;;  %v4548_v22 = vld [vmem:[#allocation5 + $0xb40] sm:$0xf]  ;;  %v5005_v23 = vld [vmem:[#allocation5 + $0xb54] sm:$0xf0]  ;;  %v4357_v26 = vor.u32 %v4957_v21, %v4356_v20  ;;  %v4140_v29 = vld [vmem:[#allocation5 + $0x810] sm:$0xf]  ;;  %v3949_v36 = vor.u32 %v4855_v28, %v3948_v27 }
  0x33   :  { %2472 = vmatpush.bf16.msrb.mxu1 %v4237_v43  ;;  %2438 = vmatmul.bf16.vlgmr.msra.gmra.mxu2 %v5180_v1  ;;  %v4549_v30 = vor.u32 %v5005_v23, %v4548_v22  ;;  %v4903_v31 = vld [vmem:[#allocation5 + $0x824] sm:$0xf0]  ;;  %v4332_v32 = vld [vmem:[#allocation5 + $0x990] sm:$0xf]  ;;  %v3924_v39 = vld [vmem:[#allocation5 + $0x660] sm:$0xf] }
  0x34   :  { %2486 = vmatpush.bf16.msrb.mxu2 %v4429_v44  ;;  %2452 = vmatmul.bf16.vlgmr.msra.gmra.mxu3 %v5186_v17  ;;  %v4951_v33 = vld [vmem:[#allocation5 + $0x9a4] sm:$0xf0]  ;;  %v4524_v34 = vld [vmem:[#allocation5 + $0xb10] sm:$0xf]  ;;  %v4141_v37 = vor.u32 %v4903_v31, %v4140_v29  ;;  %v4849_v40 = vld [vmem:[#allocation5 + $0x674] sm:$0xf0] }
  0x35   :  { %2500 = vmatpush.bf16.msrb.mxu3 %v4621_v48  ;;  %v4999_v35 = vld [vmem:[#allocation5 + $0xb24] sm:$0xf0]  ;;  %v4333_v38 = vor.u32 %v4951_v33, %v4332_v32  ;;  %v4116_v41 = vld [vmem:[#allocation5 + $0x7e0] sm:$0xf]  ;;  %v4897_v43 = vld [vmem:[#allocation5 + $0x7f4] sm:$0xf0]  ;;  %v3925_v48 = vor.u32 %v4849_v40, %v3924_v39 }
  0x36   :  { %2459 = vmatpush.bf16.msrb.mxu0 %v4021_v55  ;;  %v4525_v42 = vor.u32 %v4999_v35, %v4524_v34  ;;  %v4308_v44 = vld [vmem:[#allocation5 + $0x960] sm:$0xf]  ;;  %v4945_v45 = vld [vmem:[#allocation5 + $0x974] sm:$0xf0]  ;;  %v3900_v49 = vld [vmem:[#allocation5 + $0x630] sm:$0xf]  ;;  %v4117_v50 = vor.u32 %v4897_v43, %v4116_v41 }
  0x37   :  { %2473 = vmatpush.bf16.msrb.mxu1 %v4213_v60  ;;  %v4500_v46 = vld [vmem:[#allocation5 + $0xae0] sm:$0xf]  ;;  %v4993_v47 = vld [vmem:[#allocation5 + $0xaf4] sm:$0xf0]  ;;  %v4309_v51 = vor.u32 %v4945_v45, %v4308_v44  ;;  %v4843_v52 = vld [vmem:[#allocation5 + $0x644] sm:$0xf0] }
  0x38   :  { %2487 = vmatpush.bf16.msrb.mxu2 %v4405_v61  ;;  %v4092_v53 = vld [vmem:[#allocation5 + $0x7b0] sm:$0xf]  ;;  %v4891_v54 = vld [vmem:[#allocation5 + $0x7c4] sm:$0xf0]  ;;  %v4501_v55 = vor.u32 %v4993_v47, %v4500_v46  ;;  %v3876_v61 = vld [vmem:[#allocation5 + $0x600] sm:$0xf]  ;;  %v3901_v63 = vor.u32 %v4843_v52, %v3900_v49 }
  0x39   :  { %2501 = vmatpush.bf16.msrb.mxu3 %v4597_v2  ;;  %v4284_v56 = vld [vmem:[#allocation5 + $0x930] sm:$0xf]  ;;  %v4939_v57 = vld [vmem:[#allocation5 + $0x944] sm:$0xf0]  ;;  %v4837_v62 = vld [vmem:[#allocation5 + $0x614] sm:$0xf0]  ;;  %v4093_v5 = vor.u32 %v4891_v54, %v4092_v53 }
  0x3a   :  { %2460 = vmatpush.bf16.msrb.mxu0 %v3997_v9  ;;  %v4476_v59 = vld [vmem:[#allocation5 + $0xab0] sm:$0xf]  ;;  %v4987_v60 = vld [vmem:[#allocation5 + $0xac4] sm:$0xf0]  ;;  %v4068_v0 = vld [vmem:[#allocation5 + $0x780] sm:$0xf]  ;;  %v4285_v6 = vor.u32 %v4939_v57, %v4284_v56  ;;  %v3877_v19 = vor.u32 %v4837_v62, %v3876_v61 }
  0x3b   :  { %2474 = vmatpush.bf16.msrb.mxu1 %v4189_v12  ;;  %v4885_v2 = vld [vmem:[#allocation5 + $0x794] sm:$0xf0]  ;;  %v4260_v3 = vld [vmem:[#allocation5 + $0x900] sm:$0xf]  ;;  %v4684_v9 = vld [vmem:[#allocation5 + $0x154] sm:$0xf]  ;;  %v4477_v11 = vor.u32 %v4987_v60, %v4476_v59 }
  0x3c   :  { %2488 = vmatpush.bf16.msrb.mxu2 %v4381_v13  ;;  %v4933_v4 = vld [vmem:[#allocation5 + $0x914] sm:$0xf0]  ;;  %v4452_v7 = vld [vmem:[#allocation5 + $0xa80] sm:$0xf]  ;;  %v3278_v12 = vld [vmem:[#allocation5 + $0x168] sm:$0xf0]  ;;  %v4069_v23 = vor.u32 %v4885_v2, %v4068_v0 }
  0x3d   :  { %2502 = vmatpush.bf16.msrb.mxu3 %v4573_v18  ;;  %v4981_v8 = vld [vmem:[#allocation5 + $0xa94] sm:$0xf0]  ;;  %v4732_v13 = vld [vmem:[#allocation5 + $0x2d4] sm:$0xf]  ;;  %v3470_v14 = vld [vmem:[#allocation5 + $0x2e8] sm:$0xf0]  ;;  %v3281_v29 = vor.u32 %v4684_v9, %v3278_v12 }
  0x3e   :  { %2461 = vmatpush.bf16.msrb.mxu0 %v3973_v24  ;;  %v4780_v15 = vld [vmem:[#allocation5 + $0x454] sm:$0xf]  ;;  %v3662_v16 = vld [vmem:[#allocation5 + $0x468] sm:$0xf0]  ;;  %v64_v21 = vld [vmem:[#allocation2 + $0x20] sm:$0xff]  ;;  %v4261_v24 = vor.u32 %v4933_v4, %v4260_v3  ;;  %v4453_v28 = vor.u32 %v4981_v8, %v4452_v7  ;;  %v3473_v33 = vor.u32 %v4732_v13, %v3470_v14 }
  0x3f   :  { %2475 = vmatpush.bf16.msrb.mxu1 %v4165_v25  ;;  %v4828_v18 = vld [vmem:[#allocation5 + $0x5d4] sm:$0xf]  ;;  %v3854_v20 = vld [vmem:[#allocation5 + $0x5e8] sm:$0xf0]  ;;  %v72_v22 = vld [vmem:[#allocation2 + $0x60] sm:$0xff]  ;;  %v3665_v34 = vor.u32 %v4780_v15, %v3662_v16 }
  0x40   :  { %2489 = vmatpush.bf16.msrb.mxu2 %v4357_v26  ;;  %v66_v25 = vld [vmem:[#allocation2 + $0x30] sm:$0xff]  ;;  %v65_v27 = vld [vmem:[#allocation2 + $0x28] sm:$0xff]  ;;  %v67_v31 = vld [vmem:[#allocation2 + $0x38] sm:$0xff]  ;;  %v5190_v39 = vpack.c.bf16 %v72_v22, %v64_v21 }
  0x41   :  { %2503 = vmatpush.bf16.msrb.mxu3 %v4549_v30  ;;  %v74_v26 = vld [vmem:[#allocation2 + $0x70] sm:$0xff]  ;;  %v73_v30 = vld [vmem:[#allocation2 + $0x68] sm:$0xff]  ;;  %v75_v32 = vld [vmem:[#allocation2 + $0x78] sm:$0xff] }
  0x42   :  { %2462 = vmatpush.bf16.msrb.mxu0 %v3949_v36  ;;  %v4678_v35 = vld [vmem:[#allocation5 + $0x124] sm:$0xf]  ;;  %v3254_v36 = vld [vmem:[#allocation5 + $0x138] sm:$0xf0]  ;;  %v5192_v43 = vpack.c.bf16 %v74_v26, %v66_v25  ;;  %v5194_v44 = vpack.c.bf16 %v73_v30, %v65_v27  ;;  %v5196_v47 = vpack.c.bf16 %v75_v32, %v67_v31  ;;  %v3230_v52 = vld [vmem:[#allocation5 + $0x108] sm:$0xf0] }
  0x43   :  { %2476 = vmatpush.bf16.msrb.mxu1 %v4141_v37  ;;  %v4726_v37 = vld [vmem:[#allocation5 + $0x2a4] sm:$0xf]  ;;  %v3446_v40 = vld [vmem:[#allocation5 + $0x2b8] sm:$0xf0]  ;;  %v4720_v53 = vld [vmem:[#allocation5 + $0x274] sm:$0xf] }
  0x44   :  { %2490 = vmatpush.bf16.msrb.mxu2 %v4333_v38  ;;  %v3857_v38 = vor.u32 %v4828_v18, %v3854_v20  ;;  %v4774_v41 = vld [vmem:[#allocation5 + $0x424] sm:$0xf]  ;;  %v3830_v46 = vld [vmem:[#allocation5 + $0x5b8] sm:$0xf0]  ;;  %v3449_v49 = vor.u32 %v4726_v37, %v3446_v40  ;;  %v4768_v56 = vld [vmem:[#allocation5 + $0x3f4] sm:$0xf] }
  0x45   :  { %2504 = vmatpush.bf16.msrb.mxu3 %v4525_v42  ;;  %v3638_v42 = vld [vmem:[#allocation5 + $0x438] sm:$0xf0]  ;;  %v4822_v45 = vld [vmem:[#allocation5 + $0x5a4] sm:$0xf]  ;;  %v3614_v57 = vld [vmem:[#allocation5 + $0x408] sm:$0xf0] }
  0x46   :  { %2463 = vmatpush.bf16.msrb.mxu0 %v3925_v48  ;;  %v3257_v48 = vor.u32 %v4678_v35, %v3254_v36  ;;  %v3833_v54 = vor.u32 %v4822_v45, %v3830_v46  ;;  %v4816_v59 = vld [vmem:[#allocation5 + $0x574] sm:$0xf]  ;;  %v3806_v60 = vld [vmem:[#allocation5 + $0x588] sm:$0xf0]  ;;  %v4666_v0 = vld [vmem:[#allocation5 + $0xc4] sm:$0xf] }
  0x47   :  { %2477 = vmatpush.bf16.msrb.mxu1 %v4117_v50  ;;  %v3641_v50 = vor.u32 %v4774_v41, %v3638_v42  ;;  %v3206_v2 = vld [vmem:[#allocation5 + $0xd8] sm:$0xf0]  ;;  %v4714_v3 = vld [vmem:[#allocation5 + $0x244] sm:$0xf]  ;;  %v3809_v4 = vor.u32 %v4816_v59, %v3806_v60  ;;  %v4660_v14 = vld [vmem:[#allocation5 + $0x94] sm:$0xf] }
  0x48   :  { %2491 = vmatpush.bf16.msrb.mxu2 %v4309_v51  ;;  %v4672_v51 = vld [vmem:[#allocation5 + $0xf4] sm:$0xf]  ;;  %v3590_v7 = vld [vmem:[#allocation5 + $0x3d8] sm:$0xf0]  ;;  %v4810_v8 = vld [vmem:[#allocation5 + $0x544] sm:$0xf] }
  0x49   :  { %2505 = vmatpush.bf16.msrb.mxu3 %v4501_v55  ;;  %v3422_v55 = vld [vmem:[#allocation5 + $0x288] sm:$0xf0]  ;;  %v3233_v61 = vor.u32 %v4672_v51, %v3230_v52  ;;  %v3782_v9 = vld [vmem:[#allocation5 + $0x558] sm:$0xf0]  ;;  %v4708_v16 = vld [vmem:[#allocation5 + $0x214] sm:$0xf] }
  0x4a   :  { %2464 = vmatpush.bf16.msrb.mxu0 %v3901_v63  ;;  %v3425_v62 = vor.u32 %v4720_v53, %v3422_v55  ;;  %v3617_v63 = vor.u32 %v4768_v56, %v3614_v57  ;;  %v3182_v15 = vld [vmem:[#allocation5 + $0xa8] sm:$0xf0]  ;;  %v3785_v18 = vor.u32 %v4810_v8, %v3782_v9  ;;  %v4756_v20 = vld [vmem:[#allocation5 + $0x394] sm:$0xf]  ;;  %v4654_v27 = vld [vmem:[#allocation5 + $0x64] sm:$0xf] }
  0x4b   :  { %2478 = vmatpush.bf16.msrb.mxu1 %v4093_v5  ;;  %v3398_v5 = vld [vmem:[#allocation5 + $0x258] sm:$0xf0]  ;;  %v3566_v21 = vld [vmem:[#allocation5 + $0x3a8] sm:$0xf0]  ;;  %v4804_v22 = vld [vmem:[#allocation5 + $0x514] sm:$0xf] }
  0x4c   :  { %2492 = vmatpush.bf16.msrb.mxu2 %v4285_v6  ;;  %v4762_v6 = vld [vmem:[#allocation5 + $0x3c4] sm:$0xf]  ;;  %v3401_v12 = vor.u32 %v4714_v3, %v3398_v5  ;;  %v3569_v26 = vor.u32 %v4756_v20, %v3566_v21  ;;  %v3350_v31 = vld [vmem:[#allocation5 + $0x1f8] sm:$0xf0]  ;;  %v4648_v40 = vld [vmem:[#allocation5 + $0x34] sm:$0xf] }
  0x4d   :  { %2506 = vmatpush.bf16.msrb.mxu3 %v4477_v11  ;;  %v3209_v11 = vor.u32 %v4666_v0, %v3206_v2  ;;  %v3593_v13 = vor.u32 %v4762_v6, %v3590_v7  ;;  %v4750_v32 = vld [vmem:[#allocation5 + $0x364] sm:$0xf]  ;;  %v3734_v35 = vld [vmem:[#allocation5 + $0x4f8] sm:$0xf0]  ;;  %v3134_v41 = vld [vmem:[#allocation5 + $0x48] sm:$0xf0] }
  0x4e   :  { %2465 = vmatpush.bf16.msrb.mxu0 %v3877_v19  ;;  %v3374_v19 = vld [vmem:[#allocation5 + $0x228] sm:$0xf0]  ;;  %v4696_v42 = vld [vmem:[#allocation5 + $0x1b4] sm:$0xf]  ;;  %v3137_v52 = vor.u32 %v4648_v40, %v3134_v41  ;;  %v4642_v53 = vld [vmem:[#allocation5 + $0x4] sm:$0xf] }
  0x4f   :  { %2479 = vmatpush.bf16.msrb.mxu1 %v4069_v23  ;;  %v3758_v23 = vld [vmem:[#allocation5 + $0x528] sm:$0xf0]  ;;  %v3377_v25 = vor.u32 %v4708_v16, %v3374_v19  ;;  %v4690_v57 = vld [vmem:[#allocation5 + $0x184] sm:$0xf]  ;;  %v3302_v59 = vld [vmem:[#allocation5 + $0x198] sm:$0xf0] }
  0x50   :  { %2493 = vmatpush.bf16.msrb.mxu2 %v4261_v24  ;;  %v3185_v24 = vor.u32 %v4660_v14, %v3182_v15  ;;  %v3761_v30 = vor.u32 %v4804_v22, %v3758_v23  ;;  %v3326_v46 = vld [vmem:[#allocation5 + $0x1c8] sm:$0xf0]  ;;  %v4738_v60 = vld [vmem:[#allocation5 + $0x304] sm:$0xf]  ;;  %v3686_v0 = vld [vmem:[#allocation5 + $0x498] sm:$0xf0]  ;;  %v3305_v9 = vor.u32 %v4690_v57, %v3302_v59 }
  0x51   :  { %2507 = vmatpush.bf16.msrb.mxu3 %v4453_v28  ;;  %2466 = vmatmul.bf16.vlgmr.msrb.gmra.mxu0 %v5190_v39  ;;  %v3158_v28 = vld [vmem:[#allocation5 + $0x78] sm:$0xf0]  ;;  %v3710_v51 = vld [vmem:[#allocation5 + $0x4c8] sm:$0xf0]  ;;  %v3329_v55 = vor.u32 %v4696_v42, %v3326_v46  ;;  %v4876_v2 = vld [vmem:[#allocation5 + $0x754] sm:$0xf] }
  0x52   :  { %2514 = vmatpush.bf16.msra.mxu0 %v3281_v29  ;;  %2480 = vmatmul.bf16.vlgmr.msrb.gmra.mxu1 %v5194_v44  ;;  %v4702_v29 = vld [vmem:[#allocation5 + $0x1e4] sm:$0xf]  ;;  %v3161_v36 = vor.u32 %v4654_v27, %v3158_v28  ;;  %v4046_v3 = vld [vmem:[#allocation5 + $0x768] sm:$0xf0]  ;;  %v4972_v7 = vld [vmem:[#allocation5 + $0xa54] sm:$0xf] }
  0x53   :  { %2528 = vmatpush.bf16.msra.mxu1 %v3473_v33  ;;  %2494 = vmatmul.bf16.vlgmr.msrb.gmra.mxu2 %v5192_v43  ;;  %v3542_v33 = vld [vmem:[#allocation5 + $0x378] sm:$0xf0]  ;;  %v3353_v37 = vor.u32 %v4702_v29, %v3350_v31  ;;  %v4238_v6 = vld [vmem:[#allocation5 + $0x8e8] sm:$0xf0]  ;;  %v4049_v15 = vor.u32 %v4876_v2, %v4046_v3  ;;  %v4870_v19 = vld [vmem:[#allocation5 + $0x724] sm:$0xf] }
  0x54   :  { %2542 = vmatpush.bf16.msra.mxu2 %v3665_v34  ;;  %2508 = vmatmul.bf16.vlgmr.msrb.gmra.mxu3 %v5196_v47  ;;  %v4798_v34 = vld [vmem:[#allocation5 + $0x4e4] sm:$0xf]  ;;  %v4430_v8 = vld [vmem:[#allocation5 + $0xa68] sm:$0xf0]  ;;  %v4022_v20 = vld [vmem:[#allocation5 + $0x738] sm:$0xf0] }
  0x55   :  { %2556 = vmatpush.bf16.msra.mxu3 %v3857_v38  ;;  %v3545_v38 = vor.u32 %v4750_v32, %v3542_v33  ;;  %v3737_v45 = vor.u32 %v4798_v34, %v3734_v35  ;;  %v4918_v21 = vld [vmem:[#allocation5 + $0x8a4] sm:$0xf]  ;;  %v4214_v23 = vld [vmem:[#allocation5 + $0x8b8] sm:$0xf0]  ;;  %v4025_v28 = vor.u32 %v4870_v19, %v4022_v20  ;;  %v4864_v31 = vld [vmem:[#allocation5 + $0x6f4] sm:$0xf] }
  0x56   :  { %2515 = vmatpush.bf16.msra.mxu0 %v3257_v48  ;;  %v4744_v48 = vld [vmem:[#allocation5 + $0x334] sm:$0xf]  ;;  %v4598_v27 = vld [vmem:[#allocation5 + $0xbb8] sm:$0xf0]  ;;  %v4217_v29 = vor.u32 %v4918_v21, %v4214_v23  ;;  %v3998_v32 = vld [vmem:[#allocation5 + $0x708] sm:$0xf0] }
  0x57   :  { %2529 = vmatpush.bf16.msra.mxu1 %v3449_v49  ;;  %v3518_v49 = vld [vmem:[#allocation5 + $0x348] sm:$0xf0]  ;;  %v4912_v33 = vld [vmem:[#allocation5 + $0x874] sm:$0xf]  ;;  %v4001_v41 = vor.u32 %v4864_v31, %v3998_v32  ;;  %v4858_v46 = vld [vmem:[#allocation5 + $0x6c4] sm:$0xf] }
  0x58   :  { %2543 = vmatpush.bf16.msra.mxu2 %v3641_v50  ;;  %v4792_v50 = vld [vmem:[#allocation5 + $0x4b4] sm:$0xf]  ;;  %v3521_v56 = vor.u32 %v4744_v48, %v3518_v49  ;;  %v4190_v35 = vld [vmem:[#allocation5 + $0x888] sm:$0xf0]  ;;  %v3974_v48 = vld [vmem:[#allocation5 + $0x6d8] sm:$0xf0] }
  0x59   :  { %2557 = vmatpush.bf16.msra.mxu3 %v3833_v54  ;;  %v3110_v54 = vld [vmem:[#allocation5 + $0x18] sm:$0xf0]  ;;  %v4574_v40 = vld [vmem:[#allocation5 + $0xb88] sm:$0xf0]  ;;  %v4193_v42 = vor.u32 %v4912_v33, %v4190_v35  ;;  %v4906_v49 = vld [vmem:[#allocation5 + $0x844] sm:$0xf] }
  0x5a   :  { %2516 = vmatpush.bf16.msra.mxu0 %v3233_v61  ;;  %v3713_v61 = vor.u32 %v4792_v50, %v3710_v51  ;;  %v3113_v5 = vor.u32 %v4642_v53, %v3110_v54  ;;  %v4166_v51 = vld [vmem:[#allocation5 + $0x858] sm:$0xf0]  ;;  %v5002_v54 = vld [vmem:[#allocation5 + $0xb44] sm:$0xf]  ;;  %v4948_v2 = vld [vmem:[#allocation5 + $0x994] sm:$0xf] }
  0x5b   :  { %2530 = vmatpush.bf16.msra.mxu1 %v3425_v62  ;;  %v3494_v62 = vld [vmem:[#allocation5 + $0x318] sm:$0xf0]  ;;  %v4169_v57 = vor.u32 %v4906_v49, %v4166_v51  ;;  %v4334_v3 = vld [vmem:[#allocation5 + $0x9a8] sm:$0xf0]  ;;  %v4840_v23 = vld [vmem:[#allocation5 + $0x634] sm:$0xf] }
  0x5c   :  { %2544 = vmatpush.bf16.msra.mxu2 %v3617_v63  ;;  %v4786_v63 = vld [vmem:[#allocation5 + $0x484] sm:$0xf]  ;;  %v4358_v53 = vld [vmem:[#allocation5 + $0x9d8] sm:$0xf0]  ;;  %v4478_v31 = vld [vmem:[#allocation5 + $0xac8] sm:$0xf0] }
  0x5d   :  { %2558 = vmatpush.bf16.msra.mxu3 %v3809_v4  ;;  %v4924_v4 = vld [vmem:[#allocation5 + $0x8d4] sm:$0xf]  ;;  %v3689_v14 = vor.u32 %v4786_v63, %v3686_v0  ;;  %v4142_v0 = vld [vmem:[#allocation5 + $0x828] sm:$0xf0]  ;;  %v4502_v19 = vld [vmem:[#allocation5 + $0xaf8] sm:$0xf0] }
  0x5e   :  { %2517 = vmatpush.bf16.msra.mxu0 %v3209_v11  ;;  %v3497_v11 = vor.u32 %v4738_v60, %v3494_v62  ;;  %v4241_v16 = vor.u32 %v4924_v4, %v4238_v6  ;;  %v4852_v60 = vld [vmem:[#allocation5 + $0x694] sm:$0xf]  ;;  %v4834_v33 = vld [vmem:[#allocation5 + $0x604] sm:$0xf]  ;;  %v4688_v49 = vld [vmem:[#allocation5 + $0x16c] sm:$0xf0] }
  0x5f   :  { %2531 = vmatpush.bf16.msra.mxu1 %v3401_v12  ;;  %v5020_v12 = vld [vmem:[#allocation5 + $0xbd4] sm:$0xf] }
  0x60   :  { %2545 = vmatpush.bf16.msra.mxu2 %v3593_v13  ;;  %v4622_v13 = vld [vmem:[#allocation5 + $0xbe8] sm:$0xf0]  ;;  %v4900_v62 = vld [vmem:[#allocation5 + $0x814] sm:$0xf] }
  0x61   :  { %2559 = vmatpush.bf16.msra.mxu3 %v3785_v18  ;;  %v4433_v18 = vor.u32 %v4972_v7, %v4430_v8  ;;  %v4625_v22 = vor.u32 %v5020_v12, %v4622_v13  ;;  %v4996_v4 = vld [vmem:[#allocation5 + $0xb14] sm:$0xf]  ;;  %v4145_v7 = vor.u32 %v4900_v62, %v4142_v0  ;;  %v4337_v8 = vor.u32 %v4948_v2, %v4334_v3  ;;  %v4894_v12 = vld [vmem:[#allocation5 + $0x7e4] sm:$0xf]  ;;  %v3260_v0 = vld [vmem:[#allocation5 + $0x128] sm:$0xf] }
  0x62   :  { %2518 = vmatpush.bf16.msra.mxu0 %v3185_v24  ;;  %v4966_v24 = vld [vmem:[#allocation5 + $0xa24] sm:$0xf]  ;;  %v4682_v2 = vld [vmem:[#allocation5 + $0x13c] sm:$0xf0]  ;;  %v3452_v3 = vld [vmem:[#allocation5 + $0x2a8] sm:$0xf] }
  0x63   :  { %2532 = vmatpush.bf16.msra.mxu1 %v3377_v25  ;;  %v4406_v25 = vld [vmem:[#allocation5 + $0xa38] sm:$0xf0] }
  0x64   :  { %2546 = vmatpush.bf16.msra.mxu2 %v3569_v26  ;;  %v5014_v26 = vld [vmem:[#allocation5 + $0xba4] sm:$0xf] }
  0x65   :  { %2560 = vmatpush.bf16.msra.mxu3 %v3761_v30  ;;  %v4409_v30 = vor.u32 %v4966_v24, %v4406_v25  ;;  %v4601_v34 = vor.u32 %v5014_v26, %v4598_v27  ;;  %v3902_v24 = vld [vmem:[#allocation5 + $0x648] sm:$0xf0]  ;;  %v4888_v25 = vld [vmem:[#allocation5 + $0x7b4] sm:$0xf] }
  0x66   :  { %2519 = vmatpush.bf16.msra.mxu0 %v3161_v36  ;;  %v4960_v36 = vld [vmem:[#allocation5 + $0x9f4] sm:$0xf]  ;;  %v4094_v27 = vld [vmem:[#allocation5 + $0x7c8] sm:$0xf0]  ;;  %v3905_v32 = vor.u32 %v4840_v23, %v3902_v24  ;;  %v4820_v23 = vld [vmem:[#allocation5 + $0x58c] sm:$0xf0] }
  0x67   :  { %2533 = vmatpush.bf16.msra.mxu1 %v3353_v37  ;;  %v4382_v37 = vld [vmem:[#allocation5 + $0xa08] sm:$0xf0]  ;;  %v4097_v35 = vor.u32 %v4888_v25, %v4094_v27  ;;  %v3212_v27 = vld [vmem:[#allocation5 + $0xc8] sm:$0xf] }
  0x68   :  { %2547 = vmatpush.bf16.msra.mxu2 %v3545_v38  ;;  %v5008_v38 = vld [vmem:[#allocation5 + $0xb74] sm:$0xf] }
  0x69   :  { %2561 = vmatpush.bf16.msra.mxu3 %v3737_v45  ;;  %v4385_v45 = vor.u32 %v4960_v36, %v4382_v37  ;;  %v4577_v50 = vor.u32 %v5008_v38, %v4574_v40  ;;  %v4882_v37 = vld [vmem:[#allocation5 + $0x784] sm:$0xf]  ;;  %v4070_v38 = vld [vmem:[#allocation5 + $0x798] sm:$0xf0] }
  0x6a   :  { %2520 = vmatpush.bf16.msra.mxu0 %v3137_v52  ;;  %v4954_v52 = vld [vmem:[#allocation5 + $0x9c4] sm:$0xf] }
  0x6b   :  { %2534 = vmatpush.bf16.msra.mxu1 %v3329_v55  ;;  %v4550_v55 = vld [vmem:[#allocation5 + $0xb58] sm:$0xf0]  ;;  %v4361_v59 = vor.u32 %v4954_v52, %v4358_v53  ;;  %v4930_v40 = vld [vmem:[#allocation5 + $0x904] sm:$0xf]  ;;  %v4736_v52 = vld [vmem:[#allocation5 + $0x2ec] sm:$0xf0] }
  0x6c   :  { %2548 = vmatpush.bf16.msra.mxu2 %v3521_v56  ;;  %v3977_v56 = vor.u32 %v4858_v46, %v3974_v48  ;;  %v4553_v63 = vor.u32 %v5002_v54, %v4550_v55  ;;  %v4454_v46 = vld [vmem:[#allocation5 + $0xa98] sm:$0xf0]  ;;  %v3284_v48 = vld [vmem:[#allocation5 + $0x158] sm:$0xf]  ;;  %v4784_v54 = vld [vmem:[#allocation5 + $0x46c] sm:$0xf0]  ;;  %v4073_v55 = vor.u32 %v4882_v37, %v4070_v38 }
  0x6d   :  { %2562 = vmatpush.bf16.msra.mxu3 %v3713_v61  ;;  %v3950_v61 = vld [vmem:[#allocation5 + $0x6a8] sm:$0xf0]  ;;  %v3668_v53 = vld [vmem:[#allocation5 + $0x458] sm:$0xf] }
  0x6e   :  { %2521 = vmatpush.bf16.msra.mxu0 %v3113_v5  ;;  %v4526_v5 = vld [vmem:[#allocation5 + $0xb28] sm:$0xf0]  ;;  %v3953_v6 = vor.u32 %v4852_v60, %v3950_v61  ;;  %v3285_v61 = vor.u32 %v4688_v49, %v3284_v48  ;;  %v3572_v48 = vld [vmem:[#allocation5 + $0x398] sm:$0xf]  ;;  %v4760_v49 = vld [vmem:[#allocation5 + $0x3ac] sm:$0xf0] }
  0x6f   :  { %2535 = vmatpush.bf16.msra.mxu1 %v3305_v9  ;;  %v4846_v9 = vld [vmem:[#allocation5 + $0x664] sm:$0xf]  ;;  %v4529_v13 = vor.u32 %v4996_v4, %v4526_v5  ;;  %v4730_v5 = vld [vmem:[#allocation5 + $0x2bc] sm:$0xf0] }
  0x70   :  { %2549 = vmatpush.bf16.msra.mxu2 %v3497_v11  ;;  %v3926_v11 = vld [vmem:[#allocation5 + $0x678] sm:$0xf0] }
  0x71   :  { %2563 = vmatpush.bf16.msra.mxu3 %v3689_v14  ;;  %2522 = vmatmul.bf16.vlgmr.msra.gmra.mxu0 %v5178_v58  ;;  %v4118_v14 = vld [vmem:[#allocation5 + $0x7f8] sm:$0xf0]  ;;  %v3929_v20 = vor.u32 %v4846_v9, %v3926_v11  ;;  %v4826_v9 = vld [vmem:[#allocation5 + $0x5bc] sm:$0xf0]  ;;  %v3261_v11 = vor.u32 %v4682_v2, %v3260_v0 }
  0x72   :  { %2570 = vmatpush.bf16.msrb.mxu0 %v4049_v15  ;;  %2536 = vmatmul.bf16.vlgmr.msra.gmra.mxu1 %v5184_v10  ;;  %v4942_v15 = vld [vmem:[#allocation5 + $0x964] sm:$0xf]  ;;  %v4121_v21 = vor.u32 %v4894_v12, %v4118_v14  ;;  %v3453_v12 = vor.u32 %v4730_v5, %v3452_v3  ;;  %v3236_v14 = vld [vmem:[#allocation5 + $0xf8] sm:$0xf]  ;;  %v4802_v0 = vld [vmem:[#allocation5 + $0x4fc] sm:$0xf0] }
  0x73   :  { %2584 = vmatpush.bf16.msrb.mxu1 %v4241_v16  ;;  %2550 = vmatmul.bf16.vlgmr.msra.gmra.mxu2 %v5180_v1  ;;  %v4310_v16 = vld [vmem:[#allocation5 + $0x978] sm:$0xf0]  ;;  %v3140_v5 = vld [vmem:[#allocation5 + $0x38] sm:$0xf] }
  0x74   :  { %2598 = vmatpush.bf16.msrb.mxu2 %v4433_v18  ;;  %2564 = vmatmul.bf16.vlgmr.msra.gmra.mxu3 %v5186_v17  ;;  %v4990_v18 = vld [vmem:[#allocation5 + $0xae4] sm:$0xf] }
  0x75   :  { %2612 = vmatpush.bf16.msrb.mxu3 %v4625_v22  ;;  %v4313_v22 = vor.u32 %v4942_v15, %v4310_v16  ;;  %v4505_v26 = vor.u32 %v4990_v18, %v4502_v19  ;;  %v4676_v15 = vld [vmem:[#allocation5 + $0x10c] sm:$0xf0]  ;;  %v3428_v16 = vld [vmem:[#allocation5 + $0x278] sm:$0xf] }
  0x76   :  { %2571 = vmatpush.bf16.msrb.mxu0 %v4025_v28  ;;  %v4936_v28 = vld [vmem:[#allocation5 + $0x934] sm:$0xf]  ;;  %v4724_v19 = vld [vmem:[#allocation5 + $0x28c] sm:$0xf0]  ;;  %v3237_v24 = vor.u32 %v4676_v15, %v3236_v14 }
  0x77   :  { %2585 = vmatpush.bf16.msrb.mxu1 %v4217_v29  ;;  %v4286_v29 = vld [vmem:[#allocation5 + $0x948] sm:$0xf0]  ;;  %v3429_v25 = vor.u32 %v4724_v19, %v3428_v16  ;;  %v4796_v14 = vld [vmem:[#allocation5 + $0x4cc] sm:$0xf0]  ;;  %v3116_v16 = vld [vmem:[#allocation5 + $0x8] sm:$0xf] }
  0x78   :  { %2599 = vmatpush.bf16.msrb.mxu2 %v4409_v30  ;;  %v4984_v30 = vld [vmem:[#allocation5 + $0xab4] sm:$0xf]  ;;  %v4289_v36 = vor.u32 %v4936_v28, %v4286_v29  ;;  %v4670_v28 = vld [vmem:[#allocation5 + $0xdc] sm:$0xf0]  ;;  %v3404_v29 = vld [vmem:[#allocation5 + $0x248] sm:$0xf] }
  0x79   :  { %2613 = vmatpush.bf16.msrb.mxu3 %v4601_v34  ;;  %v3878_v34 = vld [vmem:[#allocation5 + $0x618] sm:$0xf0] }
  0x7a   :  { %2572 = vmatpush.bf16.msrb.mxu0 %v4001_v41  ;;  %v4481_v41 = vor.u32 %v4984_v30, %v4478_v31  ;;  %v3881_v51 = vor.u32 %v4834_v33, %v3878_v34  ;;  %v4718_v31 = vld [vmem:[#allocation5 + $0x25c] sm:$0xf0]  ;;  %v3788_v34 = vld [vmem:[#allocation5 + $0x548] sm:$0xf] }
  0x7b   :  { %2586 = vmatpush.bf16.msrb.mxu1 %v4193_v42  ;;  %v4262_v42 = vld [vmem:[#allocation5 + $0x918] sm:$0xf0]  ;;  %v4766_v33 = vld [vmem:[#allocation5 + $0x3dc] sm:$0xf0]  ;;  %v3405_v37 = vor.u32 %v4718_v31, %v3404_v29  ;;  %v4880_v29 = vld [vmem:[#allocation5 + $0x76c] sm:$0xf0] }
  0x7c   :  { %2600 = vmatpush.bf16.msrb.mxu2 %v4385_v45  ;;  %v4978_v45 = vld [vmem:[#allocation5 + $0xa84] sm:$0xf] }
  0x7d   :  { %2614 = vmatpush.bf16.msrb.mxu3 %v4577_v50  ;;  %v3476_v50 = vld [vmem:[#allocation5 + $0x2d8] sm:$0xf]  ;;  %v4457_v60 = vor.u32 %v4978_v45, %v4454_v46  ;;  %v4712_v46 = vld [vmem:[#allocation5 + $0x22c] sm:$0xf0] }
  0x7e   :  { %2573 = vmatpush.bf16.msrb.mxu0 %v3977_v56  ;;  %v4265_v56 = vor.u32 %v4930_v40, %v4262_v42  ;;  %v3477_v62 = vor.u32 %v4736_v52, %v3476_v50  ;;  %v3188_v40 = vld [vmem:[#allocation5 + $0x98] sm:$0xf] }
  0x7f   :  { %2587 = vmatpush.bf16.msrb.mxu1 %v4169_v57  ;;  %v3860_v57 = vld [vmem:[#allocation5 + $0x5d8] sm:$0xf] }
  0x80   :  { %2601 = vmatpush.bf16.msrb.mxu2 %v4361_v59  ;;  %v4832_v59 = vld [vmem:[#allocation5 + $0x5ec] sm:$0xf0]  ;;  %v3380_v42 = vld [vmem:[#allocation5 + $0x218] sm:$0xf] }
  0x81   :  { %2615 = vmatpush.bf16.msrb.mxu3 %v4553_v63  ;;  %v3669_v63 = vor.u32 %v4784_v54, %v3668_v53  ;;  %v3861_v4 = vor.u32 %v4832_v59, %v3860_v57  ;;  %v3764_v50 = vld [vmem:[#allocation5 + $0x518] sm:$0xf]  ;;  %v3381_v53 = vor.u32 %v4712_v46, %v3380_v42  ;;  %v3573_v54 = vor.u32 %v4760_v49, %v3572_v48  ;;  %v3356_v57 = vld [vmem:[#allocation5 + $0x1e8] sm:$0xf]  ;;  %v4874_v48 = vld [vmem:[#allocation5 + $0x73c] sm:$0xf0] }
  0x82   :  { %2574 = vmatpush.bf16.msrb.mxu0 %v3953_v6  ;;  %v3644_v6 = vld [vmem:[#allocation5 + $0x428] sm:$0xf] }
  0x83   :  { %2588 = vmatpush.bf16.msrb.mxu1 %v4145_v7  ;;  %v4778_v7 = vld [vmem:[#allocation5 + $0x43c] sm:$0xf0]  ;;  %v4028_v46 = vld [vmem:[#allocation5 + $0x728] sm:$0xf] }
  0x84   :  { %2602 = vmatpush.bf16.msrb.mxu2 %v4337_v8  ;;  %v3836_v8 = vld [vmem:[#allocation5 + $0x5a8] sm:$0xf] }
  0x85   :  { %2616 = vmatpush.bf16.msrb.mxu3 %v4529_v13  ;;  %v3645_v13 = vor.u32 %v4778_v7, %v3644_v6  ;;  %v3837_v18 = vor.u32 %v4826_v9, %v3836_v8  ;;  %v4652_v6 = vld [vmem:[#allocation5 + $0x4c] sm:$0xf0]  ;;  %v3332_v7 = vld [vmem:[#allocation5 + $0x1b8] sm:$0xf]  ;;  %v4220_v49 = vld [vmem:[#allocation5 + $0x8a8] sm:$0xf] }
  0x86   :  { %2575 = vmatpush.bf16.msrb.mxu0 %v3929_v20  ;;  %v3620_v20 = vld [vmem:[#allocation5 + $0x3f8] sm:$0xf]  ;;  %v4700_v9 = vld [vmem:[#allocation5 + $0x1cc] sm:$0xf0]  ;;  %v3141_v15 = vor.u32 %v4652_v6, %v3140_v5 }
  0x87   :  { %2589 = vmatpush.bf16.msrb.mxu1 %v4121_v21  ;;  %v4772_v21 = vld [vmem:[#allocation5 + $0x40c] sm:$0xf0]  ;;  %v3333_v19 = vor.u32 %v4700_v9, %v3332_v7  ;;  %v3980_v9 = vld [vmem:[#allocation5 + $0x6c8] sm:$0xf] }
  0x88   :  { %2603 = vmatpush.bf16.msrb.mxu2 %v4313_v22  ;;  %v3812_v22 = vld [vmem:[#allocation5 + $0x578] sm:$0xf]  ;;  %v5012_v5 = vld [vmem:[#allocation5 + $0xb8c] sm:$0xf0] }
  0x89   :  { %2617 = vmatpush.bf16.msrb.mxu3 %v4505_v26  ;;  %v3621_v26 = vor.u32 %v4772_v21, %v3620_v20  ;;  %v3813_v30 = vor.u32 %v4820_v23, %v3812_v22  ;;  %v3308_v21 = vld [vmem:[#allocation5 + $0x188] sm:$0xf]  ;;  %v4694_v22 = vld [vmem:[#allocation5 + $0x19c] sm:$0xf0] }
  0x8a   :  { %2576 = vmatpush.bf16.msrb.mxu0 %v3905_v32  ;;  %v3596_v32 = vld [vmem:[#allocation5 + $0x3c8] sm:$0xf] }
  0x8b   :  { %2590 = vmatpush.bf16.msrb.mxu1 %v4097_v35  ;;  %v4814_v35 = vld [vmem:[#allocation5 + $0x55c] sm:$0xf0]  ;;  %v3597_v38 = vor.u32 %v4766_v33, %v3596_v32  ;;  %v3500_v23 = vld [vmem:[#allocation5 + $0x308] sm:$0xf]  ;;  %v4928_v32 = vld [vmem:[#allocation5 + $0x8ec] sm:$0xf0] }
  0x8c   :  { %2604 = vmatpush.bf16.msrb.mxu2 %v4289_v36  ;;  %v3213_v36 = vor.u32 %v4670_v28, %v3212_v27  ;;  %v3789_v45 = vor.u32 %v4814_v35, %v3788_v34  ;;  %v4790_v27 = vld [vmem:[#allocation5 + $0x49c] sm:$0xf0]  ;;  %v4052_v28 = vld [vmem:[#allocation5 + $0x758] sm:$0xf]  ;;  %v4976_v34 = vld [vmem:[#allocation5 + $0xa6c] sm:$0xf0]  ;;  %v3309_v35 = vor.u32 %v4694_v22, %v3308_v21 }
  0x8d   :  { %2618 = vmatpush.bf16.msrb.mxu3 %v4481_v41  ;;  %v4664_v41 = vld [vmem:[#allocation5 + $0xac] sm:$0xf0]  ;;  %v4436_v33 = vld [vmem:[#allocation5 + $0xa58] sm:$0xf] }
  0x8e   :  { %2577 = vmatpush.bf16.msrb.mxu0 %v3881_v51  ;;  %v4808_v51 = vld [vmem:[#allocation5 + $0x52c] sm:$0xf0]  ;;  %v3189_v52 = vor.u32 %v4664_v41, %v3188_v40  ;;  %v4053_v41 = vor.u32 %v4880_v29, %v4052_v28  ;;  %v4340_v28 = vld [vmem:[#allocation5 + $0x998] sm:$0xf] }
  0x8f   :  { %2591 = vmatpush.bf16.msrb.mxu1 %v4073_v55  ;;  %v3164_v55 = vld [vmem:[#allocation5 + $0x68] sm:$0xf]  ;;  %v3765_v59 = vor.u32 %v4808_v51, %v3764_v50  ;;  %v4922_v51 = vld [vmem:[#allocation5 + $0x8bc] sm:$0xf0]  ;;  %v4952_v29 = vld [vmem:[#allocation5 + $0x9ac] sm:$0xf0] }
  0x90   :  { %2605 = vmatpush.bf16.msrb.mxu2 %v4265_v56  ;;  %v4658_v56 = vld [vmem:[#allocation5 + $0x7c] sm:$0xf0] }
  0x91   :  { %2619 = vmatpush.bf16.msrb.mxu3 %v4457_v60  ;;  %2578 = vmatmul.bf16.vlgmr.msrb.gmra.mxu0 %v5190_v39  ;;  %v4706_v60 = vld [vmem:[#allocation5 + $0x1fc] sm:$0xf0]  ;;  %v3165_v2 = vor.u32 %v4658_v56, %v3164_v55  ;;  %v4029_v56 = vor.u32 %v4874_v48, %v4028_v46  ;;  %v4508_v46 = vld [vmem:[#allocation5 + $0xae8] sm:$0xf] }
  0x92   :  { %2626 = vmatpush.bf16.msra.mxu0 %v3285_v61  ;;  %2592 = vmatmul.bf16.vlgmr.msrb.gmra.mxu1 %v5194_v44  ;;  %v3548_v61 = vld [vmem:[#allocation5 + $0x368] sm:$0xf]  ;;  %v3357_v3 = vor.u32 %v4706_v60, %v3356_v57  ;;  %v5018_v55 = vld [vmem:[#allocation5 + $0xbbc] sm:$0xf0]  ;;  %v4221_v57 = vor.u32 %v4922_v51, %v4220_v49  ;;  %v4004_v60 = vld [vmem:[#allocation5 + $0x6f8] sm:$0xf] }
  0x93   :  { %2640 = vmatpush.bf16.msra.mxu1 %v3477_v62  ;;  %2606 = vmatmul.bf16.vlgmr.msrb.gmra.mxu2 %v5192_v43  ;;  %v4754_v62 = vld [vmem:[#allocation5 + $0x37c] sm:$0xf0] }
  0x94   :  { %2654 = vmatpush.bf16.msra.mxu2 %v3669_v63  ;;  %2620 = vmatmul.bf16.vlgmr.msrb.gmra.mxu3 %v5196_v47  ;;  %v3740_v63 = vld [vmem:[#allocation5 + $0x4e8] sm:$0xf]  ;;  %v4994_v48 = vld [vmem:[#allocation5 + $0xafc] sm:$0xf0] }
  0x95   :  { %2668 = vmatpush.bf16.msra.mxu3 %v3861_v4  ;;  %v3549_v4 = vor.u32 %v4754_v62, %v3548_v61  ;;  %v3741_v8 = vor.u32 %v4802_v0, %v3740_v63  ;;  %v4868_v61 = vld [vmem:[#allocation5 + $0x70c] sm:$0xf0]  ;;  %v4196_v62 = vld [vmem:[#allocation5 + $0x878] sm:$0xf] }
  0x96   :  { %2627 = vmatpush.bf16.msra.mxu0 %v3261_v11  ;;  %v3524_v11 = vld [vmem:[#allocation5 + $0x338] sm:$0xf]  ;;  %v4916_v0 = vld [vmem:[#allocation5 + $0x88c] sm:$0xf0]  ;;  %v4005_v6 = vor.u32 %v4868_v61, %v4004_v60 }
  0x97   :  { %2641 = vmatpush.bf16.msra.mxu1 %v3453_v12  ;;  %v4748_v12 = vld [vmem:[#allocation5 + $0x34c] sm:$0xf0]  ;;  %v4197_v7 = vor.u32 %v4916_v0, %v4196_v62  ;;  %v4292_v60 = vld [vmem:[#allocation5 + $0x938] sm:$0xf] }
  0x98   :  { %2655 = vmatpush.bf16.msra.mxu2 %v3645_v13  ;;  %v3716_v13 = vld [vmem:[#allocation5 + $0x4b8] sm:$0xf]  ;;  %v3525_v20 = vor.u32 %v4748_v12, %v3524_v11  ;;  %v4862_v11 = vld [vmem:[#allocation5 + $0x6dc] sm:$0xf0]  ;;  %v4172_v12 = vld [vmem:[#allocation5 + $0x848] sm:$0xf] }
  0x99   :  { %2669 = vmatpush.bf16.msra.mxu3 %v3837_v18  ;;  %v4646_v18 = vld [vmem:[#allocation5 + $0x1c] sm:$0xf0]  ;;  %v4940_v61 = vld [vmem:[#allocation5 + $0x94c] sm:$0xf0] }
  0x9a   :  { %2628 = vmatpush.bf16.msra.mxu0 %v3237_v24  ;;  %v3717_v24 = vor.u32 %v4796_v14, %v3716_v13  ;;  %v3117_v31 = vor.u32 %v4646_v18, %v3116_v16  ;;  %v4910_v14 = vld [vmem:[#allocation5 + $0x85c] sm:$0xf0]  ;;  %v4556_v18 = vld [vmem:[#allocation5 + $0xb48] sm:$0xf]  ;;  %v4988_v0 = vld [vmem:[#allocation5 + $0xacc] sm:$0xf0] }
  0x9b   :  { %2642 = vmatpush.bf16.msra.mxu1 %v3429_v25  ;;  %v4742_v25 = vld [vmem:[#allocation5 + $0x31c] sm:$0xf0]  ;;  %v4173_v21 = vor.u32 %v4910_v14, %v4172_v12  ;;  %v4460_v14 = vld [vmem:[#allocation5 + $0xa88] sm:$0xf] }
  0x9c   :  { %2656 = vmatpush.bf16.msra.mxu2 %v3621_v26  ;;  %v3692_v26 = vld [vmem:[#allocation5 + $0x488] sm:$0xf]  ;;  %v4958_v16 = vld [vmem:[#allocation5 + $0x9dc] sm:$0xf0] }
  0x9d   :  { %2670 = vmatpush.bf16.msra.mxu3 %v3813_v30  ;;  %v4244_v30 = vld [vmem:[#allocation5 + $0x8d8] sm:$0xf]  ;;  %v3693_v40 = vor.u32 %v4790_v27, %v3692_v26  ;;  %v4904_v27 = vld [vmem:[#allocation5 + $0x82c] sm:$0xf0] }
  0x9e   :  { %2629 = vmatpush.bf16.msra.mxu0 %v3213_v36  ;;  %v3501_v36 = vor.u32 %v4742_v25, %v3500_v23  ;;  %v4245_v42 = vor.u32 %v4928_v32, %v4244_v30  ;;  %v3956_v23 = vld [vmem:[#allocation5 + $0x698] sm:$0xf] }
  0x9f   :  { %2643 = vmatpush.bf16.msra.mxu1 %v3405_v37  ;;  %v4628_v37 = vld [vmem:[#allocation5 + $0xbd8] sm:$0xf] }
  0xa0   :  { %2657 = vmatpush.bf16.msra.mxu2 %v3597_v38  ;;  %v5024_v38 = vld [vmem:[#allocation5 + $0xbec] sm:$0xf0]  ;;  %v4148_v25 = vld [vmem:[#allocation5 + $0x818] sm:$0xf] }
  0xa1   :  { %2671 = vmatpush.bf16.msra.mxu3 %v3789_v45  ;;  %v4437_v45 = vor.u32 %v4976_v34, %v4436_v33  ;;  %v4629_v50 = vor.u32 %v5024_v38, %v4628_v37  ;;  %v4532_v30 = vld [vmem:[#allocation5 + $0xb18] sm:$0xf]  ;;  %v3932_v33 = vld [vmem:[#allocation5 + $0x668] sm:$0xf]  ;;  %v4149_v34 = vor.u32 %v4904_v27, %v4148_v25  ;;  %v4898_v38 = vld [vmem:[#allocation5 + $0x7fc] sm:$0xf0] }
  0xa2   :  { %2630 = vmatpush.bf16.msra.mxu0 %v3189_v52  ;;  %v4412_v52 = vld [vmem:[#allocation5 + $0xa28] sm:$0xf]  ;;  %v4829_v27 = vld [vmem:[#allocation5 + $0x5dc] sm:$0xf] }
  0xa3   :  { %2644 = vmatpush.bf16.msra.mxu1 %v3381_v53  ;;  %v4970_v53 = vld [vmem:[#allocation5 + $0xa3c] sm:$0xf0]  ;;  %v4124_v37 = vld [vmem:[#allocation5 + $0x7e8] sm:$0xf] }
  0xa4   :  { %2658 = vmatpush.bf16.msra.mxu2 %v3573_v54  ;;  %v4604_v54 = vld [vmem:[#allocation5 + $0xba8] sm:$0xf]  ;;  %v4125_v51 = vor.u32 %v4898_v38, %v4124_v37  ;;  %v3262_v37 = vld [vmem:[#allocation5 + $0x140] sm:$0xf0]  ;;  %v4727_v38 = vld [vmem:[#allocation5 + $0x2ac] sm:$0xf] }
  0xa5   :  { %2672 = vmatpush.bf16.msra.mxu3 %v3765_v59  ;;  %v4413_v59 = vor.u32 %v4970_v53, %v4412_v52  ;;  %v4605_v63 = vor.u32 %v5018_v55, %v4604_v54  ;;  %v4844_v55 = vld [vmem:[#allocation5 + $0x64c] sm:$0xf0] }
  0xa6   :  { %2631 = vmatpush.bf16.msra.mxu0 %v3165_v2  ;;  %v4388_v2 = vld [vmem:[#allocation5 + $0x9f8] sm:$0xf] }
  0xa7   :  { %2645 = vmatpush.bf16.msra.mxu1 %v3357_v3  ;;  %v4964_v3 = vld [vmem:[#allocation5 + $0xa0c] sm:$0xf0] }
  0xa8   :  { %2659 = vmatpush.bf16.msra.mxu2 %v3549_v4  ;;  %v4580_v4 = vld [vmem:[#allocation5 + $0xb78] sm:$0xf] }
  0xa9   :  { %2673 = vmatpush.bf16.msra.mxu3 %v3741_v8  ;;  %v4389_v8 = vor.u32 %v4964_v3, %v4388_v2  ;;  %v4581_v13 = vor.u32 %v5012_v5, %v4580_v4  ;;  %v3884_v3 = vld [vmem:[#allocation5 + $0x608] sm:$0xf]  ;;  %v4838_v4 = vld [vmem:[#allocation5 + $0x61c] sm:$0xf0] }
  0xaa   :  { %2632 = vmatpush.bf16.msra.mxu0 %v3141_v15  ;;  %v4364_v15 = vld [vmem:[#allocation5 + $0x9c8] sm:$0xf] }
  0xab   :  { %2646 = vmatpush.bf16.msra.mxu1 %v3333_v19  ;;  %v5006_v19 = vld [vmem:[#allocation5 + $0xb5c] sm:$0xf0]  ;;  %v4365_v22 = vor.u32 %v4958_v16, %v4364_v15  ;;  %v4685_v16 = vld [vmem:[#allocation5 + $0x15c] sm:$0xf] }
  0xac   :  { %2660 = vmatpush.bf16.msra.mxu2 %v3525_v20  ;;  %v3981_v20 = vor.u32 %v4862_v11, %v3980_v9  ;;  %v4557_v26 = vor.u32 %v5006_v19, %v4556_v18  ;;  %v4268_v9 = vld [vmem:[#allocation5 + $0x908] sm:$0xf]  ;;  %v4982_v15 = vld [vmem:[#allocation5 + $0xa9c] sm:$0xf0]  ;;  %v3286_v18 = vld [vmem:[#allocation5 + $0x170] sm:$0xf0] }
  0xad   :  { %2674 = vmatpush.bf16.msra.mxu3 %v3717_v24  ;;  %v4856_v24 = vld [vmem:[#allocation5 + $0x6ac] sm:$0xf0]  ;;  %v4733_v19 = vld [vmem:[#allocation5 + $0x2dc] sm:$0xf] }
  0xae   :  { %2633 = vmatpush.bf16.msra.mxu0 %v3117_v31  ;;  %v5000_v31 = vld [vmem:[#allocation5 + $0xb2c] sm:$0xf0]  ;;  %v3957_v32 = vor.u32 %v4856_v24, %v3956_v23  ;;  %v2411_v54 = vpop.f32.mrf.mxu0  ;;  %v3670_v23 = vld [vmem:[#allocation5 + $0x470] sm:$0xf0] }
  0xaf   :  { %2647 = vmatpush.bf16.msra.mxu1 %v3309_v35  ;;  %v4341_v35 = vor.u32 %v4952_v29, %v4340_v28  ;;  %v2425_v62 = vpop.f32.mrf.mxu1  ;;  %v3862_v28 = vld [vmem:[#allocation5 + $0x5f0] sm:$0xf0] }
  0xb0   :  { %2661 = vmatpush.bf16.msra.mxu2 %v3501_v36  ;;  %v4850_v36 = vld [vmem:[#allocation5 + $0x67c] sm:$0xf0] }
  0xb1   :  { %2675 = vmatpush.bf16.msra.mxu3 %v3693_v40  ;;  %2634 = vmatmul.bf16.vlgmr.msra.gmra.mxu0 %v5178_v58  ;;  %v4533_v40 = vor.u32 %v5000_v31, %v4532_v30  ;;  %v3933_v49 = vor.u32 %v4850_v36, %v3932_v33  ;;  %v4461_v31 = vor.u32 %v4982_v15, %v4460_v14  ;;  %v4679_v36 = vld [vmem:[#allocation5 + $0x12c] sm:$0xf]  ;;  %v3406_v15 = vld [vmem:[#allocation5 + $0x260] sm:$0xf0] }
  0xb2   :  { %2682 = vmatpush.bf16.msrb.mxu0 %v4053_v41  ;;  %2648 = vmatmul.bf16.vlgmr.msra.gmra.mxu1 %v5184_v10  ;;  %v4316_v41 = vld [vmem:[#allocation5 + $0x968] sm:$0xf] }
  0xb3   :  { %2696 = vmatpush.bf16.msrb.mxu1 %v4245_v42  ;;  %2662 = vmatmul.bf16.vlgmr.msra.gmra.mxu2 %v5180_v1  ;;  %v4946_v42 = vld [vmem:[#allocation5 + $0x97c] sm:$0xf0] }
  0xb4   :  { %2710 = vmatpush.bf16.msrb.mxu2 %v4437_v45  ;;  %2676 = vmatmul.bf16.vlgmr.msra.gmra.mxu3 %v5186_v17  ;;  %v5214_v45 = vld [vmem:[#allocation7] sm:$0x3f]  ;;  %v4317_v52 = vor.u32 %v4946_v42, %v4316_v41  ;;  %v4775_v42 = vld [vmem:[#allocation5 + $0x42c] sm:$0xf] }
  0xb5   :  { %2724 = vmatpush.bf16.msrb.mxu3 %v4629_v50  ;;  %v3908_v50 = vld [vmem:[#allocation5 + $0x638] sm:$0xf]  ;;  %v470_v53 = vperm.slane %v5214_v45, 0  ;;  %v3454_v41 = vld [vmem:[#allocation5 + $0x2c0] sm:$0xf0] }
  0xb6   :  { %2683 = vmatpush.bf16.msrb.mxu0 %v4029_v56  ;;  %v4100_v56 = vld [vmem:[#allocation5 + $0x7b8] sm:$0xf]  ;;  %v3909_v2 = vor.u32 %v4844_v55, %v3908_v50  ;;  %v2439_v24 = vpop.f32.mrf.mxu2  ;;  %v3838_v50 = vld [vmem:[#allocation5 + $0x5c0] sm:$0xf0]  ;;  %v3457_v55 = vor.u32 %v4727_v38, %v3454_v41 }
  0xb7   :  { %2697 = vmatpush.bf16.msrb.mxu1 %v4221_v57  ;;  %v4509_v57 = vor.u32 %v4994_v48, %v4508_v46  ;;  %v2412_v11 = vadd.f32 %v2411_v54, %v470_v53  ;;  %v2453_v29 = vpop.f32.mrf.mxu3  ;;  %v3646_v46 = vld [vmem:[#allocation5 + $0x440] sm:$0xf0]  ;;  %v2427_v48 = vpop.f32.mrf.mxu1 }
  0xb8   :  { %2711 = vmatpush.bf16.msrb.mxu2 %v4413_v59  ;;  %v4892_v59 = vld [vmem:[#allocation5 + $0x7cc] sm:$0xf0] }
  0xb9   :  { %2725 = vmatpush.bf16.msrb.mxu3 %v4605_v63  ;;  %v4484_v63 = vld [vmem:[#allocation5 + $0xab8] sm:$0xf]  ;;  %v4101_v5 = vor.u32 %v4892_v59, %v4100_v56  ;;  %v2426_v30 = vadd.f32 %v2425_v62, %v2412_v11  ;;  %v3649_v56 = vor.u32 %v4775_v42, %v3646_v46  ;;  %v3238_v59 = vld [vmem:[#allocation5 + $0x110] sm:$0xf0]  ;;  %v4667_v11 = vld [vmem:[#allocation5 + $0xcc] sm:$0xf] }
  0xba   :  { %2684 = vmatpush.bf16.msrb.mxu0 %v4005_v6  ;;  %v4293_v6 = vor.u32 %v4940_v61, %v4292_v60  ;;  %v4485_v12 = vor.u32 %v4988_v0, %v4484_v63  ;;  %v4721_v60 = vld [vmem:[#allocation5 + $0x27c] sm:$0xf]  ;;  %v3430_v62 = vld [vmem:[#allocation5 + $0x290] sm:$0xf0] }
  0xbb   :  { %2698 = vmatpush.bf16.msrb.mxu1 %v4197_v7  ;;  %v4076_v7 = vld [vmem:[#allocation5 + $0x788] sm:$0xf]  ;;  %v4769_v63 = vld [vmem:[#allocation5 + $0x3fc] sm:$0xf]  ;;  %v3622_v0 = vld [vmem:[#allocation5 + $0x410] sm:$0xf0] }
  0xbc   :  { %2712 = vmatpush.bf16.msrb.mxu2 %v4389_v8  ;;  %v4886_v8 = vld [vmem:[#allocation5 + $0x79c] sm:$0xf0] }
  0xbd   :  { %2726 = vmatpush.bf16.msrb.mxu3 %v4581_v13  ;;  %v4934_v13 = vld [vmem:[#allocation5 + $0x91c] sm:$0xf0]  ;;  %v4077_v25 = vor.u32 %v4886_v8, %v4076_v7  ;;  %v3433_v7 = vor.u32 %v4721_v60, %v3430_v62  ;;  %v3625_v8 = vor.u32 %v4769_v63, %v3622_v0  ;;  %v4799_v60 = vld [vmem:[#allocation5 + $0x4ec] sm:$0xf] }
  0xbe   :  { %2685 = vmatpush.bf16.msrb.mxu0 %v3981_v20  ;;  %v3885_v20 = vor.u32 %v4838_v4, %v3884_v3  ;;  %v3814_v3 = vld [vmem:[#allocation5 + $0x590] sm:$0xf0] }
  0xbf   :  { %2699 = vmatpush.bf16.msrb.mxu1 %v4173_v21  ;;  %v3478_v21 = vld [vmem:[#allocation5 + $0x2f0] sm:$0xf0] }
  0xc0   :  { %2713 = vmatpush.bf16.msrb.mxu2 %v4365_v22  ;;  %v4781_v22 = vld [vmem:[#allocation5 + $0x45c] sm:$0xf]  ;;  %v3481_v33 = vor.u32 %v4733_v19, %v3478_v21  ;;  %v3790_v21 = vld [vmem:[#allocation5 + $0x560] sm:$0xf0] }
  0xc1   :  { %2727 = vmatpush.bf16.msrb.mxu3 %v4557_v26  ;;  %v4269_v26 = vor.u32 %v4934_v13, %v4268_v9  ;;  %v2455_v9 = vpop.f32.mrf.mxu3  ;;  %v4715_v13 = vld [vmem:[#allocation5 + $0x24c] sm:$0xf] }
  0xc2   :  { %2686 = vmatpush.bf16.msrb.mxu0 %v3957_v32  ;;  %v3289_v32 = vor.u32 %v4685_v16, %v3286_v18  ;;  %v4763_v16 = vld [vmem:[#allocation5 + $0x3cc] sm:$0xf]  ;;  %v3598_v18 = vld [vmem:[#allocation5 + $0x3e0] sm:$0xf0] }
  0xc3   :  { %2700 = vmatpush.bf16.msrb.mxu1 %v4149_v34  ;;  %v3673_v34 = vor.u32 %v4781_v22, %v3670_v23 }
  0xc4   :  { %2714 = vmatpush.bf16.msrb.mxu2 %v4341_v35  ;;  %v2413_v35 = vpop.f32.mrf.mxu0 }
  0xc5   :  { %2728 = vmatpush.bf16.msrb.mxu3 %v4533_v40  ;;  %v3865_v40 = vor.u32 %v4829_v27, %v3862_v28  ;;  %v2414_v54 = vadd.f32 %v2413_v35, %v470_v53  ;;  %v3601_v27 = vor.u32 %v4763_v16, %v3598_v18  ;;  %v4661_v28 = vld [vmem:[#allocation5 + $0x9c] sm:$0xf]  ;;  %v3118_v16 = vld [vmem:[#allocation5 + $0x20] sm:$0xf0] }
  0xc6   :  { %2687 = vmatpush.bf16.msrb.mxu0 %v3933_v49  ;;  %v4823_v49 = vld [vmem:[#allocation5 + $0x5ac] sm:$0xf] }
  0xc7   :  { %2701 = vmatpush.bf16.msrb.mxu1 %v4125_v51  ;;  %v2440_v51 = vadd.f32 %v2439_v24, %v2426_v30  ;;  %v3841_v61 = vor.u32 %v4823_v49, %v3838_v50  ;;  %v4709_v30 = vld [vmem:[#allocation5 + $0x21c] sm:$0xf]  ;;  %v4703_v49 = vld [vmem:[#allocation5 + $0x1ec] sm:$0xf]  ;;  %v3358_v50 = vld [vmem:[#allocation5 + $0x200] sm:$0xf0] }
  0xc8   :  { %2715 = vmatpush.bf16.msrb.mxu2 %v4317_v52  ;;  %v3265_v52 = vor.u32 %v4679_v36, %v3262_v37  ;;  %v4805_v36 = vld [vmem:[#allocation5 + $0x51c] sm:$0xf]  ;;  %v3766_v37 = vld [vmem:[#allocation5 + $0x530] sm:$0xf0]  ;;  %v3361_v63 = vor.u32 %v4703_v49, %v3358_v50  ;;  %v4871_v50 = vld [vmem:[#allocation5 + $0x72c] sm:$0xf] }
  0xc9   :  { %2729 = vmatpush.bf16.msrb.mxu3 %v4509_v57  ;;  %v4673_v57 = vld [vmem:[#allocation5 + $0xfc] sm:$0xf]  ;;  %v2454_v4 = vadd.f32 %v2453_v29, %v2440_v51  ;;  %v3190_v29 = vld [vmem:[#allocation5 + $0xb0] sm:$0xf0]  ;;  %v3769_v51 = vor.u32 %v4805_v36, %v3766_v37 }
  0xca   :  { %2688 = vmatpush.bf16.msrb.mxu0 %v3909_v2  ;;  %v4817_v2 = vld [vmem:[#allocation5 + $0x57c] sm:$0xf]  ;;  %v3241_v53 = vor.u32 %v4673_v57, %v3238_v59  ;;  %v3193_v38 = vor.u32 %v4661_v28, %v3190_v29  ;;  %v3694_v28 = vld [vmem:[#allocation5 + $0x4a0] sm:$0xf0]  ;;  %v4438_v37 = vld [vmem:[#allocation5 + $0xa70] sm:$0xf0] }
  0xcb   :  { %2702 = vmatpush.bf16.msrb.mxu1 %v4101_v5  ;;  %v2441_v5 = vpop.f32.mrf.mxu2  ;;  %v3817_v14 = vor.u32 %v4817_v2, %v3814_v3  ;;  %v4973_v36 = vld [vmem:[#allocation5 + $0xa5c] sm:$0xf] }
  0xcc   :  { %2716 = vmatpush.bf16.msrb.mxu2 %v4293_v6  ;;  %v2428_v6 = vadd.f32 %v2427_v48, %v2414_v54  ;;  %v3166_v48 = vld [vmem:[#allocation5 + $0x80] sm:$0xf0]  ;;  %v4751_v54 = vld [vmem:[#allocation5 + $0x36c] sm:$0xf] }
  0xcd   :  { %2730 = vmatpush.bf16.msrb.mxu3 %v4485_v12  ;;  %v3214_v12 = vld [vmem:[#allocation5 + $0xe0] sm:$0xf0] }
  0xce   :  { %2689 = vmatpush.bf16.msrb.mxu0 %v3885_v20  ;;  %v2467_v19 = vpop.f32.mrf.mxu0  ;;  %v4811_v20 = vld [vmem:[#allocation5 + $0x54c] sm:$0xf]  ;;  %v3217_v23 = vor.u32 %v4667_v11, %v3214_v12  ;;  %v3526_v11 = vld [vmem:[#allocation5 + $0x350] sm:$0xf0]  ;;  %v4793_v12 = vld [vmem:[#allocation5 + $0x4bc] sm:$0xf] }
  0xcf   :  { %2703 = vmatpush.bf16.msrb.mxu1 %v4077_v25  ;;  %v2468_v22 = vadd.f32 %v2467_v19, %v2454_v4  ;;  %v2481_v24 = vpop.f32.mrf.mxu1  ;;  %v2442_v25 = vadd.f32 %v2441_v5, %v2428_v6  ;;  %v4649_v4 = vld [vmem:[#allocation5 + $0x3c] sm:$0xf] }
  0xd0   :  { %2717 = vmatpush.bf16.msrb.mxu2 %v4269_v26  ;;  %v3409_v26 = vor.u32 %v4715_v13, %v3406_v15  ;;  %v4697_v5 = vld [vmem:[#allocation5 + $0x1bc] sm:$0xf]  ;;  %v3718_v13 = vld [vmem:[#allocation5 + $0x4d0] sm:$0xf0]  ;;  %v4643_v15 = vld [vmem:[#allocation5 + $0xc] sm:$0xf] }
  0xd1   :  { %2731 = vmatpush.bf16.msrb.mxu3 %v4461_v31  ;;  %2690 = vmatmul.bf16.vlgmr.msrb.gmra.mxu0 %v5190_v39  ;;  %v3793_v31 = vor.u32 %v4811_v20, %v3790_v21  ;;  %v2482_v35 = vadd.f32 %v2481_v24, %v2468_v22  ;;  %v2456_v41 = vadd.f32 %v2455_v9, %v2442_v25  ;;  %v4745_v9 = vld [vmem:[#allocation5 + $0x33c] sm:$0xf]  ;;  %v4691_v21 = vld [vmem:[#allocation5 + $0x18c] sm:$0xf]  ;;  %v3310_v22 = vld [vmem:[#allocation5 + $0x1a0] sm:$0xf0] }
  0xd2   :  { %2738 = vmatpush.bf16.msra.mxu0 %v3289_v32  ;;  %2704 = vmatmul.bf16.vlgmr.msrb.gmra.mxu1 %v5194_v44  ;;  %v3382_v32 = vld [vmem:[#allocation5 + $0x230] sm:$0xf0]  ;;  %v3529_v20 = vor.u32 %v4745_v9, %v3526_v11  ;;  %v3721_v24 = vor.u32 %v4793_v12, %v3718_v13  ;;  %v5009_v9 = vld [vmem:[#allocation5 + $0xb7c] sm:$0xf] }
  0xd3   :  { %2752 = vmatpush.bf16.msra.mxu1 %v3481_v33  ;;  %2718 = vmatmul.bf16.vlgmr.msrb.gmra.mxu2 %v5192_v43  ;;  %v4757_v33 = vld [vmem:[#allocation5 + $0x39c] sm:$0xf]  ;;  %v3385_v42 = vor.u32 %v4709_v30, %v3382_v32  ;;  %v4054_v32 = vld [vmem:[#allocation5 + $0x770] sm:$0xf0] }
  0xd4   :  { %2766 = vmatpush.bf16.msra.mxu2 %v3673_v34  ;;  %2732 = vmatmul.bf16.vlgmr.msrb.gmra.mxu3 %v5196_v47  ;;  %v3574_v34 = vld [vmem:[#allocation5 + $0x3b0] sm:$0xf0] }
  0xd5   :  { %2780 = vmatpush.bf16.msra.mxu3 %v3865_v40  ;;  %v4655_v40 = vld [vmem:[#allocation5 + $0x6c] sm:$0xf]  ;;  %v3577_v46 = vor.u32 %v4757_v33, %v3574_v34  ;;  %v4925_v33 = vld [vmem:[#allocation5 + $0x8dc] sm:$0xf]  ;;  %v3121_v34 = vor.u32 %v4643_v15, %v3118_v16  ;;  %v4582_v11 = vld [vmem:[#allocation5 + $0xb90] sm:$0xf0] }
  0xd6   :  { %2739 = vmatpush.bf16.msra.mxu0 %v3265_v52  ;;  %v2495_v52 = vpop.f32.mrf.mxu2  ;;  %v2469_v57 = vpop.f32.mrf.mxu0  ;;  %v3169_v62 = vor.u32 %v4655_v40, %v3166_v48  ;;  %v3313_v40 = vor.u32 %v4691_v21, %v3310_v22  ;;  %v4859_v15 = vld [vmem:[#allocation5 + $0x6cc] sm:$0xf]  ;;  %v3982_v16 = vld [vmem:[#allocation5 + $0x6e0] sm:$0xf0] }
  0xd7   :  { %2753 = vmatpush.bf16.msra.mxu1 %v3457_v55  ;;  %v3550_v55 = vld [vmem:[#allocation5 + $0x380] sm:$0xf0]  ;;  %v2509_v59 = vpop.f32.mrf.mxu3  ;;  %v2470_v0 = vadd.f32 %v2469_v57, %v2456_v41  ;;  %v4955_v21 = vld [vmem:[#allocation5 + $0x9cc] sm:$0xf] }
  0xd8   :  { %2767 = vmatpush.bf16.msra.mxu2 %v3649_v56  ;;  %v2496_v56 = vadd.f32 %v2495_v52, %v2482_v35  ;;  %v3553_v3 = vor.u32 %v4751_v54, %v3550_v55  ;;  %v4246_v35 = vld [vmem:[#allocation5 + $0x8f0] sm:$0xf0]  ;;  %v4441_v52 = vor.u32 %v4973_v36, %v4438_v37  ;;  %v4030_v54 = vld [vmem:[#allocation5 + $0x740] sm:$0xf0]  ;;  %v4919_v55 = vld [vmem:[#allocation5 + $0x8ac] sm:$0xf] }
  0xd9   :  { %2781 = vmatpush.bf16.msra.mxu3 %v3841_v61  ;;  %v3742_v61 = vld [vmem:[#allocation5 + $0x500] sm:$0xf0]  ;;  %v4534_v36 = vld [vmem:[#allocation5 + $0xb30] sm:$0xf0] }
  0xda   :  { %2740 = vmatpush.bf16.msra.mxu0 %v3241_v53  ;;  %v2510_v2 = vadd.f32 %v2509_v59, %v2496_v56  ;;  %v3142_v53 = vld [vmem:[#allocation5 + $0x50] sm:$0xf0]  ;;  %v3745_v6 = vor.u32 %v4799_v60, %v3742_v61  ;;  %v4222_v57 = vld [vmem:[#allocation5 + $0x8c0] sm:$0xf0]  ;;  %v4967_v59 = vld [vmem:[#allocation5 + $0xa2c] sm:$0xf] }
  0xdb   :  { %2754 = vmatpush.bf16.msra.mxu1 %v3433_v7  ;;  %v2483_v7 = vpop.f32.mrf.mxu1  ;;  %v4414_v60 = vld [vmem:[#allocation5 + $0xa40] sm:$0xf0]  ;;  %v5015_v61 = vld [vmem:[#allocation5 + $0xbac] sm:$0xf] }
  0xdc   :  { %2768 = vmatpush.bf16.msra.mxu2 %v3625_v8  ;;  %v3334_v8 = vld [vmem:[#allocation5 + $0x1d0] sm:$0xf0]  ;;  %3074 = vst [vmem:[#allocation8] sm:$0xff] %v2510_v2  ;;  %v2484_v18 = vadd.f32 %v2483_v7, %v2470_v0  ;;  %v4225_v0 = vor.u32 %v4919_v55, %v4222_v57  ;;  %v4417_v2 = vor.u32 %v4967_v59, %v4414_v60  ;;  %v4961_v7 = vld [vmem:[#allocation5 + $0x9fc] sm:$0xf] }
  0xdd   :  { %2782 = vmatpush.bf16.msra.mxu3 %v3817_v14  ;;  %v3145_v14 = vor.u32 %v4649_v4, %v3142_v53  ;;  %v3337_v19 = vor.u32 %v4697_v5, %v3334_v8  ;;  %v4006_v4 = vld [vmem:[#allocation5 + $0x710] sm:$0xf0]  ;;  %v4913_v53 = vld [vmem:[#allocation5 + $0x87c] sm:$0xf]  ;;  %v4366_v22 = vld [vmem:[#allocation5 + $0x9e0] sm:$0xf0] }
  0xde   :  { %2741 = vmatpush.bf16.msra.mxu0 %v3217_v23  ;;  %v4739_v23 = vld [vmem:[#allocation5 + $0x30c] sm:$0xf]  ;;  %v2497_v25 = vpop.f32.mrf.mxu2  ;;  %v4390_v8 = vld [vmem:[#allocation5 + $0xa10] sm:$0xf0] }
  0xdf   :  { %2755 = vmatpush.bf16.msra.mxu1 %v3409_v26  ;;  %v3502_v26 = vld [vmem:[#allocation5 + $0x320] sm:$0xf0]  ;;  %v2498_v29 = vadd.f32 %v2497_v25, %v2484_v18  ;;  %v2511_v30 = vpop.f32.mrf.mxu3  ;;  %v4907_v18 = vld [vmem:[#allocation5 + $0x84c] sm:$0xf]  ;;  %v3985_v25 = vor.u32 %v4859_v15, %v3982_v16 }
  0xe0   :  { %2769 = vmatpush.bf16.msra.mxu2 %v3601_v27  ;;  %v4787_v27 = vld [vmem:[#allocation5 + $0x48c] sm:$0xf]  ;;  %v3505_v41 = vor.u32 %v4739_v23, %v3502_v26 }
  0xe1   :  { %2783 = vmatpush.bf16.msra.mxu3 %v3793_v31  ;;  %v4877_v31 = vld [vmem:[#allocation5 + $0x75c] sm:$0xf]  ;;  %v3697_v48 = vor.u32 %v4787_v27, %v3694_v28  ;;  %v5003_v23 = vld [vmem:[#allocation5 + $0xb4c] sm:$0xf]  ;;  %v4369_v27 = vor.u32 %v4955_v21, %v4366_v22  ;;  %v4462_v21 = vld [vmem:[#allocation5 + $0xaa0] sm:$0xf0] }
  0xe2   :  { %2742 = vmatpush.bf16.msra.mxu0 %v3193_v38  ;;  %v2512_v38 = vadd.f32 %v2511_v30, %v2498_v29  ;;  %v4057_v49 = vor.u32 %v4877_v31, %v4054_v32  ;;  %v4853_v28 = vld [vmem:[#allocation5 + $0x69c] sm:$0xf]  ;;  %v3958_v29 = vld [vmem:[#allocation5 + $0x6b0] sm:$0xf0]  ;;  %v4931_v15 = vld [vmem:[#allocation5 + $0x90c] sm:$0xf] }
  0xe3   :  { %2756 = vmatpush.bf16.msra.mxu1 %v3385_v42  ;;  %v5021_v42 = vld [vmem:[#allocation5 + $0xbdc] sm:$0xf]  ;;  %v4150_v32 = vld [vmem:[#allocation5 + $0x830] sm:$0xf0]  ;;  %v3961_v37 = vor.u32 %v4853_v28, %v3958_v29  ;;  %v3292_v22 = vld [vmem:[#allocation5 + $0x160] sm:$0xf] }
  0xe4   :  { %2770 = vmatpush.bf16.msra.mxu2 %v3577_v46  ;;  %v4630_v46 = vld [vmem:[#allocation5 + $0xbf0] sm:$0xf0]  ;;  %3080 = vst [vmem:[#allocation8 + $0x30] sm:$0xff] %v2512_v38  ;;  %v4901_v30 = vld [vmem:[#allocation5 + $0x81c] sm:$0xf] }
  0xe5   :  { %2784 = vmatpush.bf16.msra.mxu3 %v3769_v51  ;;  %v4249_v51 = vor.u32 %v4925_v33, %v4246_v35  ;;  %v4633_v56 = vor.u32 %v5021_v42, %v4630_v46  ;;  %v4949_v33 = vld [vmem:[#allocation5 + $0x99c] sm:$0xf]  ;;  %v4153_v38 = vor.u32 %v4901_v30, %v4150_v32  ;;  %v3934_v42 = vld [vmem:[#allocation5 + $0x680] sm:$0xf0]  ;;  %v4895_v46 = vld [vmem:[#allocation5 + $0x7ec] sm:$0xf] }
  0xe6   :  { %2743 = vmatpush.bf16.msra.mxu0 %v3169_v62  ;;  %v4606_v62 = vld [vmem:[#allocation5 + $0xbc0] sm:$0xf0]  ;;  %v4997_v35 = vld [vmem:[#allocation5 + $0xb1c] sm:$0xf]  ;;  %v4785_v28 = vld [vmem:[#allocation5 + $0x474] sm:$0xf0] }
  0xe7   :  { %2757 = vmatpush.bf16.msra.mxu1 %v3361_v63  ;;  %v4033_v63 = vor.u32 %v4871_v50, %v4030_v54  ;;  %v4609_v5 = vor.u32 %v5015_v61, %v4606_v62  ;;  %v4943_v50 = vld [vmem:[#allocation5 + $0x96c] sm:$0xf]  ;;  %v4510_v54 = vld [vmem:[#allocation5 + $0xb00] sm:$0xf0]  ;;  %v4841_v61 = vld [vmem:[#allocation5 + $0x63c] sm:$0xf] }
  0xe8   :  { %2771 = vmatpush.bf16.msra.mxu2 %v3553_v3  ;;  %v4865_v3 = vld [vmem:[#allocation5 + $0x6fc] sm:$0xf]  ;;  %v3910_v62 = vld [vmem:[#allocation5 + $0x650] sm:$0xf0]  ;;  %v3868_v32 = vld [vmem:[#allocation5 + $0x5e0] sm:$0xf] }
  0xe9   :  { %2785 = vmatpush.bf16.msra.mxu3 %v3745_v6  ;;  %v4198_v6 = vld [vmem:[#allocation5 + $0x890] sm:$0xf0]  ;;  %v4009_v12 = vor.u32 %v4865_v3, %v4006_v4  ;;  %v4937_v3 = vld [vmem:[#allocation5 + $0x93c] sm:$0xf] }
  0xea   :  { %2744 = vmatpush.bf16.msra.mxu0 %v3145_v14  ;;  %v4201_v13 = vor.u32 %v4913_v53, %v4198_v6  ;;  %v4393_v14 = vor.u32 %v4961_v7, %v4390_v8  ;;  %v4294_v4 = vld [vmem:[#allocation5 + $0x950] sm:$0xf0]  ;;  %v3913_v7 = vor.u32 %v4841_v61, %v3910_v62  ;;  %v4835_v8 = vld [vmem:[#allocation5 + $0x60c] sm:$0xf] }
  0xeb   :  { %2758 = vmatpush.bf16.msra.mxu1 %v3337_v19  ;;  %v4585_v19 = vor.u32 %v5009_v9, %v4582_v11  ;;  %v4486_v6 = vld [vmem:[#allocation5 + $0xad0] sm:$0xf0]  ;;  %v3886_v9 = vld [vmem:[#allocation5 + $0x620] sm:$0xf0] }
  0xec   :  { %2772 = vmatpush.bf16.msra.mxu2 %v3529_v20  ;;  %v4174_v20 = vld [vmem:[#allocation5 + $0x860] sm:$0xf0] }
  0xed   :  { %2786 = vmatpush.bf16.msra.mxu3 %v3721_v24  ;;  %v4558_v24 = vld [vmem:[#allocation5 + $0xb60] sm:$0xf0]  ;;  %v4177_v26 = vor.u32 %v4907_v18, %v4174_v20  ;;  %v4979_v20 = vld [vmem:[#allocation5 + $0xa8c] sm:$0xf] }
  0xee   :  { %2745 = vmatpush.bf16.msra.mxu0 %v3121_v34  ;;  %v4561_v31 = vor.u32 %v5003_v23, %v4558_v24  ;;  %v4342_v34 = vld [vmem:[#allocation5 + $0x9b0] sm:$0xf0]  ;;  %v2523_v60 = vpop.f32.mrf.mxu0  ;;  %v4689_v23 = vld [vmem:[#allocation5 + $0x174] sm:$0xf0]  ;;  %v3484_v24 = vld [vmem:[#allocation5 + $0x2e0] sm:$0xf] }
  0xef   :  { %2759 = vmatpush.bf16.msra.mxu1 %v3313_v40  ;;  %v4345_v40 = vor.u32 %v4949_v33, %v4342_v34  ;;  %v2537_v53 = vpop.f32.mrf.mxu1  ;;  %v4833_v33 = vld [vmem:[#allocation5 + $0x5f4] sm:$0xf0] }
  0xf0   :  { %2773 = vmatpush.bf16.msra.mxu2 %v3505_v41  ;;  %v4847_v41 = vld [vmem:[#allocation5 + $0x66c] sm:$0xf] }
  0xf1   :  { %2787 = vmatpush.bf16.msra.mxu3 %v3697_v48  ;;  %2746 = vmatmul.bf16.vlgmr.msra.gmra.mxu0 %v5178_v58  ;;  %v4537_v48 = vor.u32 %v4997_v35, %v4534_v36  ;;  %v3937_v55 = vor.u32 %v4847_v41, %v3934_v42  ;;  %v4465_v36 = vor.u32 %v4979_v20, %v4462_v21  ;;  %v3268_v42 = vld [vmem:[#allocation5 + $0x130] sm:$0xf]  ;;  %v4719_v20 = vld [vmem:[#allocation5 + $0x264] sm:$0xf0] }
  0xf2   :  { %2794 = vmatpush.bf16.msrb.mxu0 %v4057_v49  ;;  %2760 = vmatmul.bf16.vlgmr.msra.gmra.mxu1 %v5184_v10  ;;  %v4126_v49 = vld [vmem:[#allocation5 + $0x800] sm:$0xf0]  ;;  %v3604_v21 = vld [vmem:[#allocation5 + $0x3d0] sm:$0xf] }
  0xf3   :  { %2808 = vmatpush.bf16.msrb.mxu1 %v4249_v51  ;;  %2774 = vmatmul.bf16.vlgmr.msra.gmra.mxu2 %v5180_v1  ;;  %v4318_v51 = vld [vmem:[#allocation5 + $0x980] sm:$0xf0]  ;;  %v4129_v57 = vor.u32 %v4895_v46, %v4126_v49  ;;  %v4683_v46 = vld [vmem:[#allocation5 + $0x144] sm:$0xf0]  ;;  %v3869_v49 = vor.u32 %v4833_v33, %v3868_v32  ;;  %v3196_v32 = vld [vmem:[#allocation5 + $0xa0] sm:$0xf] }
  0xf4   :  { %2822 = vmatpush.bf16.msrb.mxu2 %v4441_v52  ;;  %2788 = vmatmul.bf16.vlgmr.msra.gmra.mxu3 %v5186_v17  ;;  %v4991_v52 = vld [vmem:[#allocation5 + $0xaec] sm:$0xf]  ;;  %v4321_v59 = vor.u32 %v4943_v50, %v4318_v51  ;;  %v4731_v50 = vld [vmem:[#allocation5 + $0x2c4] sm:$0xf0]  ;;  %v3652_v51 = vld [vmem:[#allocation5 + $0x430] sm:$0xf] }
  0xf5   :  { %2836 = vmatpush.bf16.msrb.mxu3 %v4633_v56  ;;  %v471_v56 = vperm.slane %v5214_v45, 1  ;;  %v4665_v33 = vld [vmem:[#allocation5 + $0xb4] sm:$0xf0] }
  0xf6   :  { %2795 = vmatpush.bf16.msrb.mxu0 %v4033_v63  ;;  %v4889_v63 = vld [vmem:[#allocation5 + $0x7bc] sm:$0xf]  ;;  %v2551_v29 = vpop.f32.mrf.mxu2  ;;  %v2525_v41 = vpop.f32.mrf.mxu0 }
  0xf7   :  { %2809 = vmatpush.bf16.msrb.mxu1 %v4225_v0  ;;  %v4513_v0 = vor.u32 %v4991_v52, %v4510_v54  ;;  %v2524_v16 = vadd.f32 %v2523_v60, %v471_v56  ;;  %v2565_v34 = vpop.f32.mrf.mxu3  ;;  %v4779_v52 = vld [vmem:[#allocation5 + $0x444] sm:$0xf0]  ;;  %v2539_v54 = vpop.f32.mrf.mxu1  ;;  %v3269_v60 = vor.u32 %v4683_v46, %v3268_v42  ;;  %v2526_v61 = vadd.f32 %v2525_v41, %v471_v56  ;;  %v3772_v41 = vld [vmem:[#allocation5 + $0x520] sm:$0xf]  ;;  %v4809_v42 = vld [vmem:[#allocation5 + $0x534] sm:$0xf0] }
  0xf8   :  { %2823 = vmatpush.bf16.msrb.mxu2 %v4417_v2  ;;  %v4102_v2 = vld [vmem:[#allocation5 + $0x7d0] sm:$0xf0]  ;;  %v3197_v46 = vor.u32 %v4665_v33, %v3196_v32 }
  0xf9   :  { %2837 = vmatpush.bf16.msrb.mxu3 %v4609_v5  ;;  %v4985_v5 = vld [vmem:[#allocation5 + $0xabc] sm:$0xf]  ;;  %v4105_v11 = vor.u32 %v4889_v63, %v4102_v2  ;;  %v2538_v35 = vadd.f32 %v2537_v53, %v2524_v16  ;;  %v3653_v63 = vor.u32 %v4779_v52, %v3652_v51  ;;  %v4677_v2 = vld [vmem:[#allocation5 + $0x114] sm:$0xf0]  ;;  %v4671_v16 = vld [vmem:[#allocation5 + $0xe4] sm:$0xf0] }
  0xfa   :  { %2796 = vmatpush.bf16.msrb.mxu0 %v4009_v12  ;;  %v4297_v12 = vor.u32 %v4937_v3, %v4294_v4  ;;  %v4489_v18 = vor.u32 %v4985_v5, %v4486_v6  ;;  %v3436_v3 = vld [vmem:[#allocation5 + $0x280] sm:$0xf]  ;;  %v4725_v53 = vld [vmem:[#allocation5 + $0x294] sm:$0xf0]  ;;  %v4659_v52 = vld [vmem:[#allocation5 + $0x84] sm:$0xf0] }
  0xfb   :  { %2810 = vmatpush.bf16.msrb.mxu1 %v4201_v13  ;;  %v4883_v13 = vld [vmem:[#allocation5 + $0x78c] sm:$0xf]  ;;  %v3628_v5 = vld [vmem:[#allocation5 + $0x400] sm:$0xf]  ;;  %v4773_v6 = vld [vmem:[#allocation5 + $0x414] sm:$0xf0] }
  0xfc   :  { %2824 = vmatpush.bf16.msrb.mxu2 %v4393_v14  ;;  %v4078_v14 = vld [vmem:[#allocation5 + $0x7a0] sm:$0xf0] }
  0xfd   :  { %2838 = vmatpush.bf16.msrb.mxu3 %v4585_v19  ;;  %v4270_v19 = vld [vmem:[#allocation5 + $0x920] sm:$0xf0]  ;;  %v4081_v30 = vor.u32 %v4883_v13, %v4078_v14  ;;  %v3629_v13 = vor.u32 %v4773_v6, %v3628_v5 }
  0xfe   :  { %2797 = vmatpush.bf16.msrb.mxu0 %v3985_v25  ;;  %v3889_v25 = vor.u32 %v4835_v8, %v3886_v9  ;;  %v4821_v8 = vld [vmem:[#allocation5 + $0x594] sm:$0xf0]  ;;  %v2553_v9 = vpop.f32.mrf.mxu2 }
  0xff   :  { %2811 = vmatpush.bf16.msrb.mxu1 %v4177_v26  ;;  %v4737_v26 = vld [vmem:[#allocation5 + $0x2f4] sm:$0xf0]  ;;  %v2567_v14 = vpop.f32.mrf.mxu3 }
 0x100   :  { %2825 = vmatpush.bf16.msrb.mxu2 %v4369_v27  ;;  %v3676_v27 = vld [vmem:[#allocation5 + $0x460] sm:$0xf] }
 0x101   :  { %2839 = vmatpush.bf16.msrb.mxu3 %v4561_v31  ;;  %v4273_v31 = vor.u32 %v4931_v15, %v4270_v19  ;;  %v3220_v15 = vld [vmem:[#allocation5 + $0xd0] sm:$0xf] }
 0x102   :  { %2798 = vmatpush.bf16.msrb.mxu0 %v3961_v37  ;;  %v3293_v37 = vor.u32 %v4689_v23, %v3292_v22  ;;  %v4767_v22 = vld [vmem:[#allocation5 + $0x3e4] sm:$0xf0] }
 0x103   :  { %2812 = vmatpush.bf16.msrb.mxu1 %v4153_v38  ;;  %v3485_v38 = vor.u32 %v4737_v26, %v3484_v24  ;;  %v3796_v24 = vld [vmem:[#allocation5 + $0x550] sm:$0xf] }
 0x104   :  { %2826 = vmatpush.bf16.msrb.mxu2 %v4345_v40  ;;  %v3677_v40 = vor.u32 %v4785_v28, %v3676_v27  ;;  %v3221_v27 = vor.u32 %v4671_v16, %v3220_v15  ;;  %v3724_v15 = vld [vmem:[#allocation5 + $0x4c0] sm:$0xf]  ;;  %v4797_v16 = vld [vmem:[#allocation5 + $0x4d4] sm:$0xf0] }
 0x105   :  { %2840 = vmatpush.bf16.msrb.mxu3 %v4537_v48  ;;  %v3460_v48 = vld [vmem:[#allocation5 + $0x2b0] sm:$0xf] }
 0x106   :  { %2799 = vmatpush.bf16.msrb.mxu0 %v3937_v55  ;;  %v3844_v55 = vld [vmem:[#allocation5 + $0x5b0] sm:$0xf]  ;;  %v3461_v62 = vor.u32 %v4731_v50, %v3460_v48 }
 0x107   :  { %2813 = vmatpush.bf16.msrb.mxu1 %v4129_v57  ;;  %v4827_v57 = vld [vmem:[#allocation5 + $0x5c4] sm:$0xf0]  ;;  %v3172_v48 = vld [vmem:[#allocation5 + $0x70] sm:$0xf] }
 0x108   :  { %2827 = vmatpush.bf16.msrb.mxu2 %v4321_v59  ;;  %v2552_v59 = vadd.f32 %v2551_v29, %v2538_v35  ;;  %v3845_v4 = vor.u32 %v4827_v57, %v3844_v55  ;;  %v4707_v55 = vld [vmem:[#allocation5 + $0x204] sm:$0xf0]  ;;  %v3773_v57 = vor.u32 %v4809_v42, %v3772_v41  ;;  %v4977_v41 = vld [vmem:[#allocation5 + $0xa74] sm:$0xf0] }
 0x109   :  { %2841 = vmatpush.bf16.msrb.mxu3 %v4513_v0  ;;  %v3244_v0 = vld [vmem:[#allocation5 + $0x100] sm:$0xf] }
 0x10a   :  { %2800 = vmatpush.bf16.msrb.mxu0 %v3913_v7  ;;  %v3820_v7 = vld [vmem:[#allocation5 + $0x580] sm:$0xf]  ;;  %v2566_v45 = vadd.f32 %v2565_v34, %v2552_v59  ;;  %v3245_v56 = vor.u32 %v4677_v2, %v3244_v0  ;;  %v3748_v2 = vld [vmem:[#allocation5 + $0x4f0] sm:$0xf] }
 0x10b   :  { %2814 = vmatpush.bf16.msrb.mxu1 %v4105_v11  ;;  %v2540_v11 = vadd.f32 %v2539_v54, %v2526_v61  ;;  %v3821_v19 = vor.u32 %v4821_v8, %v3820_v7  ;;  %v3388_v34 = vld [vmem:[#allocation5 + $0x220] sm:$0xf]  ;;  %v3364_v54 = vld [vmem:[#allocation5 + $0x1f0] sm:$0xf]  ;;  %v4755_v61 = vld [vmem:[#allocation5 + $0x384] sm:$0xf0] }
 0x10c   :  { %2828 = vmatpush.bf16.msrb.mxu2 %v4297_v12  ;;  %v3437_v12 = vor.u32 %v4725_v53, %v3436_v3  ;;  %v4803_v3 = vld [vmem:[#allocation5 + $0x504] sm:$0xf0]  ;;  %v3365_v53 = vor.u32 %v4707_v55, %v3364_v54  ;;  %v3148_v8 = vld [vmem:[#allocation5 + $0x40] sm:$0xf]  ;;  %v4036_v54 = vld [vmem:[#allocation5 + $0x730] sm:$0xf] }
 0x10d   :  { %2842 = vmatpush.bf16.msrb.mxu3 %v4489_v18  ;;  %v3412_v18 = vld [vmem:[#allocation5 + $0x250] sm:$0xf]  ;;  %v2554_v29 = vadd.f32 %v2553_v9, %v2540_v11  ;;  %v3749_v9 = vor.u32 %v4803_v3, %v3748_v2  ;;  %v5019_v3 = vld [vmem:[#allocation5 + $0xbc4] sm:$0xf0] }
 0x10e   :  { %2801 = vmatpush.bf16.msrb.mxu0 %v3889_v25  ;;  %v2579_v23 = vpop.f32.mrf.mxu0  ;;  %v4815_v25 = vld [vmem:[#allocation5 + $0x564] sm:$0xf0]  ;;  %v4612_v2 = vld [vmem:[#allocation5 + $0xbb0] sm:$0xf] }
 0x10f   :  { %2815 = vmatpush.bf16.msrb.mxu1 %v4081_v30  ;;  %v2580_v26 = vadd.f32 %v2579_v23, %v2566_v45  ;;  %v2593_v28 = vpop.f32.mrf.mxu1  ;;  %v3413_v30 = vor.u32 %v4719_v20, %v3412_v18  ;;  %v3797_v35 = vor.u32 %v4815_v25, %v3796_v24  ;;  %v4653_v45 = vld [vmem:[#allocation5 + $0x54] sm:$0xf0]  ;;  %v4647_v20 = vld [vmem:[#allocation5 + $0x24] sm:$0xf0]  ;;  %v3316_v24 = vld [vmem:[#allocation5 + $0x190] sm:$0xf] }
 0x110   :  { %2829 = vmatpush.bf16.msrb.mxu2 %v4273_v31  ;;  %v3605_v31 = vor.u32 %v4767_v22, %v3604_v21  ;;  %v3149_v18 = vor.u32 %v4653_v45, %v3148_v8  ;;  %v4695_v25 = vld [vmem:[#allocation5 + $0x1a4] sm:$0xf0]  ;;  %v4204_v8 = vld [vmem:[#allocation5 + $0x880] sm:$0xf]  ;;  %v4613_v45 = vor.u32 %v5019_v3, %v4612_v2  ;;  %v4845_v3 = vld [vmem:[#allocation5 + $0x654] sm:$0xf0] }
 0x111   :  { %2843 = vmatpush.bf16.msrb.mxu3 %v4465_v36  ;;  %2802 = vmatmul.bf16.vlgmr.msrb.gmra.mxu0 %v5190_v39  ;;  %v4713_v36 = vld [vmem:[#allocation5 + $0x234] sm:$0xf0]  ;;  %v3916_v2 = vld [vmem:[#allocation5 + $0x640] sm:$0xf] }
 0x112   :  { %2850 = vmatpush.bf16.msra.mxu0 %v3293_v37  ;;  %2816 = vmatmul.bf16.vlgmr.msrb.gmra.mxu1 %v5194_v44  ;;  %v3580_v37 = vld [vmem:[#allocation5 + $0x3a0] sm:$0xf]  ;;  %v3389_v50 = vor.u32 %v4713_v36, %v3388_v34 }
 0x113   :  { %2864 = vmatpush.bf16.msra.mxu1 %v3485_v38  ;;  %2830 = vmatmul.bf16.vlgmr.msrb.gmra.mxu2 %v5192_v43  ;;  %v4761_v38 = vld [vmem:[#allocation5 + $0x3b4] sm:$0xf0]  ;;  %v4060_v34 = vld [vmem:[#allocation5 + $0x760] sm:$0xf] }
 0x114   :  { %2878 = vmatpush.bf16.msra.mxu2 %v3677_v40  ;;  %2844 = vmatmul.bf16.vlgmr.msrb.gmra.mxu3 %v5196_v47  ;;  %v2594_v40 = vadd.f32 %v2593_v28, %v2580_v26  ;;  %v3581_v51 = vor.u32 %v4761_v38, %v3580_v37  ;;  %v3508_v26 = vld [vmem:[#allocation5 + $0x310] sm:$0xf]  ;;  %v4252_v36 = vld [vmem:[#allocation5 + $0x8e0] sm:$0xf]  ;;  %v4929_v38 = vld [vmem:[#allocation5 + $0x8f4] sm:$0xf0] }
 0x115   :  { %2892 = vmatpush.bf16.msra.mxu3 %v3869_v49  ;;  %v2568_v49 = vadd.f32 %v2567_v14, %v2554_v29  ;;  %v4749_v14 = vld [vmem:[#allocation5 + $0x354] sm:$0xf0]  ;;  %v4743_v29 = vld [vmem:[#allocation5 + $0x324] sm:$0xf0]  ;;  %v4253_v55 = vor.u32 %v4929_v38, %v4252_v36 }
 0x116   :  { %2851 = vmatpush.bf16.msra.mxu0 %v3269_v60  ;;  %v2607_v59 = vpop.f32.mrf.mxu2  ;;  %v3556_v60 = vld [vmem:[#allocation5 + $0x370] sm:$0xf]  ;;  %v4953_v36 = vld [vmem:[#allocation5 + $0x9b4] sm:$0xf0] }
 0x117   :  { %2865 = vmatpush.bf16.msra.mxu1 %v3461_v62  ;;  %v2608_v62 = vadd.f32 %v2607_v59, %v2594_v40  ;;  %v2621_v0 = vpop.f32.mrf.mxu3  ;;  %v3557_v7 = vor.u32 %v4755_v61, %v3556_v60  ;;  %v2595_v11 = vpop.f32.mrf.mxu1  ;;  %v4444_v40 = vld [vmem:[#allocation5 + $0xa60] sm:$0xf]  ;;  %v4875_v59 = vld [vmem:[#allocation5 + $0x744] sm:$0xf0]  ;;  %v4228_v60 = vld [vmem:[#allocation5 + $0x8b0] sm:$0xf] }
 0x118   :  { %2879 = vmatpush.bf16.msra.mxu2 %v3653_v63  ;;  %v2581_v63 = vpop.f32.mrf.mxu0  ;;  %v5001_v38 = vld [vmem:[#allocation5 + $0xb34] sm:$0xf0] }
 0x119   :  { %2893 = vmatpush.bf16.msra.mxu3 %v3845_v4  ;;  %v3173_v4 = vor.u32 %v4659_v52, %v3172_v48  ;;  %v2582_v5 = vadd.f32 %v2581_v63, %v2568_v49  ;;  %v2622_v6 = vadd.f32 %v2621_v0, %v2608_v62  ;;  %v3509_v48 = vor.u32 %v4743_v29, %v3508_v26  ;;  %v4636_v49 = vld [vmem:[#allocation5 + $0xbe0] sm:$0xf]  ;;  %v4923_v62 = vld [vmem:[#allocation5 + $0x8c4] sm:$0xf0]  ;;  %v4420_v63 = vld [vmem:[#allocation5 + $0xa30] sm:$0xf] }
 0x11a   :  { %2852 = vmatpush.bf16.msra.mxu0 %v3245_v56  ;;  %v3340_v56 = vld [vmem:[#allocation5 + $0x1c0] sm:$0xf]  ;;  %v4971_v0 = vld [vmem:[#allocation5 + $0xa44] sm:$0xf0] }
 0x11b   :  { %2866 = vmatpush.bf16.msra.mxu1 %v3437_v12  ;;  %v4701_v12 = vld [vmem:[#allocation5 + $0x1d4] sm:$0xf0]  ;;  %3075 = vst [vmem:[#allocation8 + $0x8] sm:$0xff] %v2622_v6  ;;  %v2596_v21 = vadd.f32 %v2595_v11, %v2582_v5  ;;  %v4421_v5 = vor.u32 %v4971_v0, %v4420_v63  ;;  %v4012_v6 = vld [vmem:[#allocation5 + $0x700] sm:$0xf] }
 0x11c   :  { %2880 = vmatpush.bf16.msra.mxu2 %v3629_v13  ;;  %v3532_v13 = vld [vmem:[#allocation5 + $0x340] sm:$0xf]  ;;  %v3341_v22 = vor.u32 %v4701_v12, %v3340_v56  ;;  %v4917_v56 = vld [vmem:[#allocation5 + $0x894] sm:$0xf0]  ;;  %v5007_v26 = vld [vmem:[#allocation5 + $0xb64] sm:$0xf0] }
 0x11d   :  { %2894 = vmatpush.bf16.msra.mxu3 %v3821_v19  ;;  %v3124_v19 = vld [vmem:[#allocation5 + $0x10] sm:$0xf]  ;;  %v3533_v23 = vor.u32 %v4749_v14, %v3532_v13  ;;  %v4965_v11 = vld [vmem:[#allocation5 + $0xa14] sm:$0xf0]  ;;  %v4588_v12 = vld [vmem:[#allocation5 + $0xb80] sm:$0xf] }
 0x11e   :  { %2853 = vmatpush.bf16.msra.mxu0 %v3221_v27  ;;  %v3725_v27 = vor.u32 %v4797_v16, %v3724_v15  ;;  %v2609_v28 = vpop.f32.mrf.mxu2  ;;  %v3125_v37 = vor.u32 %v4647_v20, %v3124_v19  ;;  %v5013_v13 = vld [vmem:[#allocation5 + $0xb94] sm:$0xf0]  ;;  %v4205_v15 = vor.u32 %v4917_v56, %v4204_v8  ;;  %v4863_v19 = vld [vmem:[#allocation5 + $0x6e4] sm:$0xf0]  ;;  %v4180_v20 = vld [vmem:[#allocation5 + $0x850] sm:$0xf] }
 0x11f   :  { %2867 = vmatpush.bf16.msra.mxu1 %v3413_v30  ;;  %v3700_v30 = vld [vmem:[#allocation5 + $0x490] sm:$0xf]  ;;  %v2610_v32 = vadd.f32 %v2609_v28, %v2596_v21  ;;  %v2623_v33 = vpop.f32.mrf.mxu3  ;;  %v4589_v21 = vor.u32 %v5013_v13, %v4588_v12  ;;  %v4989_v56 = vld [vmem:[#allocation5 + $0xad4] sm:$0xf0]  ;;  %v4839_v12 = vld [vmem:[#allocation5 + $0x624] sm:$0xf0] }
 0x120   :  { %2881 = vmatpush.bf16.msra.mxu2 %v3605_v31  ;;  %v4791_v31 = vld [vmem:[#allocation5 + $0x4a4] sm:$0xf0] }
 0x121   :  { %2895 = vmatpush.bf16.msra.mxu3 %v3797_v35  ;;  %v4881_v35 = vld [vmem:[#allocation5 + $0x774] sm:$0xf0]  ;;  %v2624_v42 = vadd.f32 %v2623_v33, %v2610_v32  ;;  %v4156_v32 = vld [vmem:[#allocation5 + $0x820] sm:$0xf] }
 0x122   :  { %2854 = vmatpush.bf16.msra.mxu0 %v3197_v46  ;;  %v3317_v46 = vor.u32 %v4695_v25, %v3316_v24  ;;  %v4061_v52 = vor.u32 %v4881_v35, %v4060_v34  ;;  %v4959_v24 = vld [vmem:[#allocation5 + $0x9e4] sm:$0xf0]  ;;  %v4564_v25 = vld [vmem:[#allocation5 + $0xb50] sm:$0xf]  ;;  %v4905_v34 = vld [vmem:[#allocation5 + $0x834] sm:$0xf0] }
 0x123   :  { %2868 = vmatpush.bf16.msra.mxu1 %v3389_v50  ;;  %v5025_v50 = vld [vmem:[#allocation5 + $0xbf4] sm:$0xf0]  ;;  %3081 = vst [vmem:[#allocation8 + $0x38] sm:$0xff] %v2624_v42  ;;  %v4565_v33 = vor.u32 %v5007_v26, %v4564_v25  ;;  %v4348_v35 = vld [vmem:[#allocation5 + $0x9a0] sm:$0xf] }
 0x124   :  { %2882 = vmatpush.bf16.msra.mxu2 %v3581_v51  ;;  %v3701_v51 = vor.u32 %v4791_v31, %v3700_v30  ;;  %v4637_v61 = vor.u32 %v5025_v50, %v4636_v49  ;;  %v3964_v30 = vld [vmem:[#allocation5 + $0x6a0] sm:$0xf]  ;;  %v4857_v31 = vld [vmem:[#allocation5 + $0x6b4] sm:$0xf0]  ;;  %v4349_v42 = vor.u32 %v4953_v36, %v4348_v35  ;;  %v4132_v49 = vld [vmem:[#allocation5 + $0x7f0] sm:$0xf] }
 0x125   :  { %2896 = vmatpush.bf16.msra.mxu3 %v3773_v57  ;;  %v4445_v57 = vor.u32 %v4977_v41, %v4444_v40  ;;  %v3965_v40 = vor.u32 %v4857_v31, %v3964_v30  ;;  %v4157_v41 = vor.u32 %v4905_v34, %v4156_v32  ;;  %v3294_v25 = vld [vmem:[#allocation5 + $0x178] sm:$0xf0]  ;;  %v4734_v26 = vld [vmem:[#allocation5 + $0x2e4] sm:$0xf] }
 0x126   :  { %2855 = vmatpush.bf16.msra.mxu0 %v3173_v4  ;;  %v4037_v4 = vor.u32 %v4875_v59, %v4036_v54  ;;  %v4947_v54 = vld [vmem:[#allocation5 + $0x984] sm:$0xf0]  ;;  %v3678_v30 = vld [vmem:[#allocation5 + $0x478] sm:$0xf0]  ;;  %v4830_v34 = vld [vmem:[#allocation5 + $0x5e4] sm:$0xf] }
 0x127   :  { %2869 = vmatpush.bf16.msra.mxu1 %v3365_v53  ;;  %v4229_v53 = vor.u32 %v4923_v62, %v4228_v60  ;;  %v5242_v60 = vld [vmem:[#allocation7] sm:$0x3f]  ;;  %v3870_v35 = vld [vmem:[#allocation5 + $0x5f8] sm:$0xf0] }
 0x128   :  { %2883 = vmatpush.bf16.msra.mxu2 %v3557_v7  ;;  %v4869_v7 = vld [vmem:[#allocation5 + $0x714] sm:$0xf0] }
 0x129   :  { %2897 = vmatpush.bf16.msra.mxu3 %v3749_v9  ;;  %v4396_v9 = vld [vmem:[#allocation5 + $0xa00] sm:$0xf]  ;;  %v4013_v14 = vor.u32 %v4869_v7, %v4012_v6  ;;  %v4941_v7 = vld [vmem:[#allocation5 + $0x954] sm:$0xf0] }
 0x12a   :  { %2856 = vmatpush.bf16.msra.mxu0 %v3149_v18  ;;  %v4397_v16 = vor.u32 %v4965_v11, %v4396_v9  ;;  %v3988_v18 = vld [vmem:[#allocation5 + $0x6d0] sm:$0xf]  ;;  %v4300_v6 = vld [vmem:[#allocation5 + $0x940] sm:$0xf]  ;;  %v3917_v9 = vor.u32 %v4845_v3, %v3916_v2 }
 0x12b   :  { %2870 = vmatpush.bf16.msra.mxu1 %v3341_v22  ;;  %v4911_v22 = vld [vmem:[#allocation5 + $0x864] sm:$0xf0]  ;;  %v3892_v11 = vld [vmem:[#allocation5 + $0x610] sm:$0xf] }
 0x12c   :  { %2884 = vmatpush.bf16.msra.mxu2 %v3533_v23  ;;  %v4372_v23 = vld [vmem:[#allocation5 + $0x9d0] sm:$0xf]  ;;  %v4181_v28 = vor.u32 %v4911_v22, %v4180_v20 }
 0x12d   :  { %2898 = vmatpush.bf16.msra.mxu3 %v3725_v27  ;;  %v3989_v27 = vor.u32 %v4863_v19, %v3988_v18  ;;  %v4373_v29 = vor.u32 %v4959_v24, %v4372_v23  ;;  %v4276_v18 = vld [vmem:[#allocation5 + $0x910] sm:$0xf]  ;;  %v4983_v23 = vld [vmem:[#allocation5 + $0xaa4] sm:$0xf0]  ;;  %v4686_v24 = vld [vmem:[#allocation5 + $0x164] sm:$0xf] }
 0x12e   :  { %2857 = vmatpush.bf16.msra.mxu0 %v3125_v37  ;;  %v4540_v37 = vld [vmem:[#allocation5 + $0xb20] sm:$0xf]  ;;  %v2635_v0 = vpop.f32.mrf.mxu0  ;;  %v4468_v22 = vld [vmem:[#allocation5 + $0xa90] sm:$0xf] }
 0x12f   :  { %2871 = vmatpush.bf16.msra.mxu1 %v3317_v46  ;;  %v3940_v46 = vld [vmem:[#allocation5 + $0x670] sm:$0xf]  ;;  %v4541_v50 = vor.u32 %v5001_v38, %v4540_v37  ;;  %v2649_v8 = vpop.f32.mrf.mxu1  ;;  %v4469_v38 = vor.u32 %v4983_v23, %v4468_v22  ;;  %v3414_v23 = vld [vmem:[#allocation5 + $0x268] sm:$0xf0] }
 0x130   :  { %2885 = vmatpush.bf16.msra.mxu2 %v3509_v48  ;;  %v4851_v48 = vld [vmem:[#allocation5 + $0x684] sm:$0xf0] }
 0x131   :  { %2899 = vmatpush.bf16.msra.mxu3 %v3701_v51  ;;  %2858 = vmatmul.bf16.vlgmr.msra.gmra.mxu0 %v5178_v58  ;;  %v4899_v51 = vld [vmem:[#allocation5 + $0x804] sm:$0xf0]  ;;  %v3941_v59 = vor.u32 %v4851_v48, %v3940_v46  ;;  %v4680_v48 = vld [vmem:[#allocation5 + $0x134] sm:$0xf] }
 0x132   :  { %2906 = vmatpush.bf16.msrb.mxu0 %v4061_v52  ;;  %2872 = vmatmul.bf16.vlgmr.msra.gmra.mxu1 %v5184_v10  ;;  %v4324_v52 = vld [vmem:[#allocation5 + $0x970] sm:$0xf]  ;;  %v4133_v62 = vor.u32 %v4899_v51, %v4132_v49  ;;  %v3270_v49 = vld [vmem:[#allocation5 + $0x148] sm:$0xf0]  ;;  %v3873_v51 = vor.u32 %v4830_v34, %v3870_v35  ;;  %v4662_v35 = vld [vmem:[#allocation5 + $0xa4] sm:$0xf] }
 0x133   :  { %2920 = vmatpush.bf16.msrb.mxu1 %v4253_v55  ;;  %2886 = vmatmul.bf16.vlgmr.msra.gmra.mxu2 %v5180_v1  ;;  %v4516_v55 = vld [vmem:[#allocation5 + $0xaf0] sm:$0xf]  ;;  %v4325_v63 = vor.u32 %v4947_v54, %v4324_v52  ;;  %v3462_v52 = vld [vmem:[#allocation5 + $0x2c8] sm:$0xf0]  ;;  %v4776_v54 = vld [vmem:[#allocation5 + $0x434] sm:$0xf] }
 0x134   :  { %2934 = vmatpush.bf16.msrb.mxu2 %v4445_v57  ;;  %2900 = vmatmul.bf16.vlgmr.msra.gmra.mxu3 %v5186_v17  ;;  %v4995_v57 = vld [vmem:[#allocation5 + $0xb04] sm:$0xf0] }
 0x135   :  { %2948 = vmatpush.bf16.msrb.mxu3 %v4637_v61  ;;  %v472_v61 = vperm.slane %v5242_v60, 2 }
 0x136   :  { %2907 = vmatpush.bf16.msrb.mxu0 %v4037_v4  ;;  %v4108_v4 = vld [vmem:[#allocation5 + $0x7c0] sm:$0xf]  ;;  %v2663_v31 = vpop.f32.mrf.mxu2  ;;  %v2637_v46 = vpop.f32.mrf.mxu0 }
 0x137   :  { %2921 = vmatpush.bf16.msrb.mxu1 %v4229_v53  ;;  %v4517_v53 = vor.u32 %v4995_v57, %v4516_v55  ;;  %v2636_v19 = vadd.f32 %v2635_v0, %v472_v61  ;;  %v2677_v36 = vpop.f32.mrf.mxu3  ;;  %v3654_v55 = vld [vmem:[#allocation5 + $0x448] sm:$0xf0]  ;;  %v2651_v57 = vpop.f32.mrf.mxu1  ;;  %v3273_v0 = vor.u32 %v4680_v48, %v3270_v49  ;;  %v2638_v2 = vadd.f32 %v2637_v46, %v472_v61  ;;  %v4806_v48 = vld [vmem:[#allocation5 + $0x524] sm:$0xf]  ;;  %v3774_v49 = vld [vmem:[#allocation5 + $0x538] sm:$0xf0] }
 0x138   :  { %2935 = vmatpush.bf16.msrb.mxu2 %v4421_v5  ;;  %v4893_v5 = vld [vmem:[#allocation5 + $0x7d4] sm:$0xf0] }
 0x139   :  { %2949 = vmatpush.bf16.msrb.mxu3 %v4613_v45  ;;  %v4492_v45 = vld [vmem:[#allocation5 + $0xac0] sm:$0xf]  ;;  %v4109_v13 = vor.u32 %v4893_v5, %v4108_v4  ;;  %v2650_v37 = vadd.f32 %v2649_v8, %v2636_v19  ;;  %v3657_v4 = vor.u32 %v4776_v54, %v3654_v55  ;;  %v3246_v5 = vld [vmem:[#allocation5 + $0x118] sm:$0xf0]  ;;  %v4668_v19 = vld [vmem:[#allocation5 + $0xd4] sm:$0xf] }
 0x13a   :  { %2908 = vmatpush.bf16.msrb.mxu0 %v4013_v14  ;;  %v4301_v14 = vor.u32 %v4941_v7, %v4300_v6  ;;  %v4493_v20 = vor.u32 %v4989_v56, %v4492_v45  ;;  %v4722_v6 = vld [vmem:[#allocation5 + $0x284] sm:$0xf]  ;;  %v3438_v8 = vld [vmem:[#allocation5 + $0x298] sm:$0xf0] }
 0x13b   :  { %2922 = vmatpush.bf16.msrb.mxu1 %v4205_v15  ;;  %v4084_v15 = vld [vmem:[#allocation5 + $0x790] sm:$0xf]  ;;  %v4770_v45 = vld [vmem:[#allocation5 + $0x404] sm:$0xf]  ;;  %v3630_v56 = vld [vmem:[#allocation5 + $0x418] sm:$0xf0] }
 0x13c   :  { %2936 = vmatpush.bf16.msrb.mxu2 %v4397_v16  ;;  %v4887_v16 = vld [vmem:[#allocation5 + $0x7a4] sm:$0xf0] }
 0x13d   :  { %2950 = vmatpush.bf16.msrb.mxu3 %v4589_v21  ;;  %v4935_v21 = vld [vmem:[#allocation5 + $0x924] sm:$0xf0]  ;;  %v4085_v32 = vor.u32 %v4887_v16, %v4084_v15  ;;  %v3441_v15 = vor.u32 %v4722_v6, %v3438_v8  ;;  %v3633_v16 = vor.u32 %v4770_v45, %v3630_v56  ;;  %v4800_v6 = vld [vmem:[#allocation5 + $0x4f4] sm:$0xf] }
 0x13e   :  { %2909 = vmatpush.bf16.msrb.mxu0 %v3989_v27  ;;  %v3893_v27 = vor.u32 %v4839_v12, %v3892_v11  ;;  %v3822_v11 = vld [vmem:[#allocation5 + $0x598] sm:$0xf0] }
 0x13f   :  { %2923 = vmatpush.bf16.msrb.mxu1 %v4181_v28  ;;  %v3486_v28 = vld [vmem:[#allocation5 + $0x2f8] sm:$0xf0] }
 0x140   :  { %2937 = vmatpush.bf16.msrb.mxu2 %v4373_v29  ;;  %v4782_v29 = vld [vmem:[#allocation5 + $0x464] sm:$0xf] }
 0x141   :  { %2951 = vmatpush.bf16.msrb.mxu3 %v4565_v33  ;;  %v4277_v33 = vor.u32 %v4935_v21, %v4276_v18  ;;  %v2679_v18 = vpop.f32.mrf.mxu3  ;;  %v4716_v21 = vld [vmem:[#allocation5 + $0x254] sm:$0xf] }
 0x142   :  { %2910 = vmatpush.bf16.msrb.mxu0 %v3965_v40  ;;  %v3297_v40 = vor.u32 %v4686_v24, %v3294_v25  ;;  %v4764_v24 = vld [vmem:[#allocation5 + $0x3d4] sm:$0xf]  ;;  %v3606_v25 = vld [vmem:[#allocation5 + $0x3e8] sm:$0xf0] }
 0x143   :  { %2924 = vmatpush.bf16.msrb.mxu1 %v4157_v41  ;;  %v3489_v41 = vor.u32 %v4734_v26, %v3486_v28  ;;  %v3798_v28 = vld [vmem:[#allocation5 + $0x568] sm:$0xf0]  ;;  %v3609_v34 = vor.u32 %v4764_v24, %v3606_v25 }
 0x144   :  { %2938 = vmatpush.bf16.msrb.mxu2 %v4349_v42  ;;  %v3681_v42 = vor.u32 %v4782_v29, %v3678_v30  ;;  %v3126_v24 = vld [vmem:[#allocation5 + $0x28] sm:$0xf0] }
 0x145   :  { %2952 = vmatpush.bf16.msrb.mxu3 %v4541_v50  ;;  %v4728_v50 = vld [vmem:[#allocation5 + $0x2b4] sm:$0xf] }
 0x146   :  { %2911 = vmatpush.bf16.msrb.mxu0 %v3941_v59  ;;  %v4824_v59 = vld [vmem:[#allocation5 + $0x5b4] sm:$0xf]  ;;  %v3465_v3 = vor.u32 %v4728_v50, %v3462_v52 }
 0x147   :  { %2925 = vmatpush.bf16.msrb.mxu1 %v4133_v62  ;;  %v3846_v62 = vld [vmem:[#allocation5 + $0x5c8] sm:$0xf0] }
 0x148   :  { %2939 = vmatpush.bf16.msrb.mxu2 %v4325_v63  ;;  %v2664_v63 = vadd.f32 %v2663_v31, %v2650_v37  ;;  %v3849_v7 = vor.u32 %v4824_v59, %v3846_v62  ;;  %v4710_v37 = vld [vmem:[#allocation5 + $0x224] sm:$0xf]  ;;  %v4704_v59 = vld [vmem:[#allocation5 + $0x1f4] sm:$0xf]  ;;  %v3366_v62 = vld [vmem:[#allocation5 + $0x208] sm:$0xf0] }
 0x149   :  { %2953 = vmatpush.bf16.msrb.mxu3 %v4517_v53  ;;  %v4674_v53 = vld [vmem:[#allocation5 + $0x104] sm:$0xf]  ;;  %v3369_v45 = vor.u32 %v4704_v59, %v3366_v62  ;;  %v4872_v62 = vld [vmem:[#allocation5 + $0x734] sm:$0xf] }
 0x14a   :  { %2912 = vmatpush.bf16.msrb.mxu0 %v3917_v9  ;;  %v4818_v9 = vld [vmem:[#allocation5 + $0x584] sm:$0xf]  ;;  %v2678_v12 = vadd.f32 %v2677_v36, %v2664_v63  ;;  %v3249_v61 = vor.u32 %v4674_v53, %v3246_v5  ;;  %v3198_v36 = vld [vmem:[#allocation5 + $0xb8] sm:$0xf0]  ;;  %v3777_v63 = vor.u32 %v4806_v48, %v3774_v49 }
 0x14b   :  { %2926 = vmatpush.bf16.msrb.mxu1 %v4109_v13  ;;  %v2665_v13 = vpop.f32.mrf.mxu2  ;;  %v3825_v22 = vor.u32 %v4818_v9, %v3822_v11  ;;  %v3201_v50 = vor.u32 %v4662_v35, %v3198_v36  ;;  %v3702_v35 = vld [vmem:[#allocation5 + $0x4a8] sm:$0xf0]  ;;  %v4974_v48 = vld [vmem:[#allocation5 + $0xa64] sm:$0xf]  ;;  %v4446_v49 = vld [vmem:[#allocation5 + $0xa78] sm:$0xf0] }
 0x14c   :  { %2940 = vmatpush.bf16.msrb.mxu2 %v4301_v14  ;;  %v2652_v14 = vadd.f32 %v2651_v57, %v2638_v2  ;;  %v3174_v57 = vld [vmem:[#allocation5 + $0x88] sm:$0xf0]  ;;  %v4752_v2 = vld [vmem:[#allocation5 + $0x374] sm:$0xf] }
 0x14d   :  { %2954 = vmatpush.bf16.msrb.mxu3 %v4493_v20  ;;  %v3222_v20 = vld [vmem:[#allocation5 + $0xe8] sm:$0xf0] }
 0x14e   :  { %2913 = vmatpush.bf16.msrb.mxu0 %v3893_v27  ;;  %v2691_v26 = vpop.f32.mrf.mxu0  ;;  %v4812_v27 = vld [vmem:[#allocation5 + $0x554] sm:$0xf]  ;;  %v3225_v30 = vor.u32 %v4668_v19, %v3222_v20  ;;  %v3534_v19 = vld [vmem:[#allocation5 + $0x358] sm:$0xf0]  ;;  %v4794_v20 = vld [vmem:[#allocation5 + $0x4c4] sm:$0xf] }
 0x14f   :  { %2927 = vmatpush.bf16.msrb.mxu1 %v4085_v32  ;;  %v2692_v29 = vadd.f32 %v2691_v26, %v2678_v12  ;;  %v2705_v31 = vpop.f32.mrf.mxu1  ;;  %v2666_v32 = vadd.f32 %v2665_v13, %v2652_v14  ;;  %v4650_v12 = vld [vmem:[#allocation5 + $0x44] sm:$0xf] }
 0x150   :  { %2941 = vmatpush.bf16.msrb.mxu2 %v4277_v33  ;;  %v3417_v33 = vor.u32 %v4716_v21, %v3414_v23  ;;  %v4698_v13 = vld [vmem:[#allocation5 + $0x1c4] sm:$0xf]  ;;  %v3726_v21 = vld [vmem:[#allocation5 + $0x4d8] sm:$0xf0]  ;;  %v4644_v23 = vld [vmem:[#allocation5 + $0x14] sm:$0xf] }
 0x151   :  { %2955 = vmatpush.bf16.msrb.mxu3 %v4469_v38  ;;  %2914 = vmatmul.bf16.vlgmr.msrb.gmra.mxu0 %v5190_v39  ;;  %v3801_v38 = vor.u32 %v4812_v27, %v3798_v28  ;;  %v2706_v46 = vadd.f32 %v2705_v31, %v2692_v29  ;;  %v2680_v52 = vadd.f32 %v2679_v18, %v2666_v32  ;;  %v4746_v18 = vld [vmem:[#allocation5 + $0x344] sm:$0xf]  ;;  %v4692_v28 = vld [vmem:[#allocation5 + $0x194] sm:$0xf]  ;;  %v3318_v29 = vld [vmem:[#allocation5 + $0x1a8] sm:$0xf0] }
 0x152   :  { %2962 = vmatpush.bf16.msra.mxu0 %v3297_v40  ;;  %2928 = vmatmul.bf16.vlgmr.msrb.gmra.mxu1 %v5194_v44  ;;  %v3390_v40 = vld [vmem:[#allocation5 + $0x238] sm:$0xf0]  ;;  %v3537_v27 = vor.u32 %v4746_v18, %v3534_v19  ;;  %v3729_v31 = vor.u32 %v4794_v20, %v3726_v21  ;;  %v5010_v18 = vld [vmem:[#allocation5 + $0xb84] sm:$0xf] }
 0x153   :  { %2976 = vmatpush.bf16.msra.mxu1 %v3489_v41  ;;  %2942 = vmatmul.bf16.vlgmr.msrb.gmra.mxu2 %v5192_v43  ;;  %v4758_v41 = vld [vmem:[#allocation5 + $0x3a4] sm:$0xf]  ;;  %v3393_v54 = vor.u32 %v4710_v37, %v3390_v40  ;;  %v4062_v40 = vld [vmem:[#allocation5 + $0x778] sm:$0xf0] }
 0x154   :  { %2990 = vmatpush.bf16.msra.mxu2 %v3681_v42  ;;  %2956 = vmatmul.bf16.vlgmr.msrb.gmra.mxu3 %v5196_v47  ;;  %v3582_v42 = vld [vmem:[#allocation5 + $0x3b8] sm:$0xf0] }
 0x155   :  { %3004 = vmatpush.bf16.msra.mxu3 %v3873_v51  ;;  %v4656_v51 = vld [vmem:[#allocation5 + $0x74] sm:$0xf]  ;;  %v3585_v55 = vor.u32 %v4758_v41, %v3582_v42  ;;  %v4926_v41 = vld [vmem:[#allocation5 + $0x8e4] sm:$0xf]  ;;  %v3129_v42 = vor.u32 %v4644_v23, %v3126_v24  ;;  %v4590_v19 = vld [vmem:[#allocation5 + $0xb98] sm:$0xf0] }
 0x156   :  { %2963 = vmatpush.bf16.msra.mxu0 %v3273_v0  ;;  %v2719_v0 = vpop.f32.mrf.mxu2  ;;  %v2693_v53 = vpop.f32.mrf.mxu0  ;;  %v3177_v8 = vor.u32 %v4656_v51, %v3174_v57  ;;  %v3321_v51 = vor.u32 %v4692_v28, %v3318_v29  ;;  %v4860_v23 = vld [vmem:[#allocation5 + $0x6d4] sm:$0xf]  ;;  %v3990_v24 = vld [vmem:[#allocation5 + $0x6e8] sm:$0xf0] }
 0x157   :  { %2977 = vmatpush.bf16.msra.mxu1 %v3465_v3  ;;  %v3558_v3 = vld [vmem:[#allocation5 + $0x388] sm:$0xf0]  ;;  %v2733_v5 = vpop.f32.mrf.mxu3  ;;  %v2694_v56 = vadd.f32 %v2693_v53, %v2680_v52  ;;  %v5004_v29 = vld [vmem:[#allocation5 + $0xb54] sm:$0xf] }
 0x158   :  { %2991 = vmatpush.bf16.msra.mxu2 %v3657_v4  ;;  %v2720_v4 = vadd.f32 %v2719_v0, %v2706_v46  ;;  %v3561_v11 = vor.u32 %v4752_v2, %v3558_v3  ;;  %v4254_v46 = vld [vmem:[#allocation5 + $0x8f8] sm:$0xf0]  ;;  %v4449_v0 = vor.u32 %v4974_v48, %v4446_v49  ;;  %v4038_v2 = vld [vmem:[#allocation5 + $0x748] sm:$0xf0]  ;;  %v4920_v3 = vld [vmem:[#allocation5 + $0x8b4] sm:$0xf] }
 0x159   :  { %3005 = vmatpush.bf16.msra.mxu3 %v3849_v7  ;;  %v3750_v7 = vld [vmem:[#allocation5 + $0x508] sm:$0xf0]  ;;  %v4848_v48 = vld [vmem:[#allocation5 + $0x674] sm:$0xf] }
 0x15a   :  { %2964 = vmatpush.bf16.msra.mxu0 %v3249_v61  ;;  %v2734_v9 = vadd.f32 %v2733_v5, %v2720_v4  ;;  %v3150_v61 = vld [vmem:[#allocation5 + $0x58] sm:$0xf0]  ;;  %v3753_v14 = vor.u32 %v4800_v6, %v3750_v7  ;;  %v4230_v53 = vld [vmem:[#allocation5 + $0x8c8] sm:$0xf0]  ;;  %v4968_v5 = vld [vmem:[#allocation5 + $0xa34] sm:$0xf] }
 0x15b   :  { %2978 = vmatpush.bf16.msra.mxu1 %v3441_v15  ;;  %v2707_v15 = vpop.f32.mrf.mxu1  ;;  %v4422_v6 = vld [vmem:[#allocation5 + $0xa48] sm:$0xf0]  ;;  %v5016_v7 = vld [vmem:[#allocation5 + $0xbb4] sm:$0xf] }
 0x15c   :  { %2992 = vmatpush.bf16.msra.mxu2 %v3633_v16  ;;  %v3342_v16 = vld [vmem:[#allocation5 + $0x1d8] sm:$0xf0]  ;;  %3076 = vst [vmem:[#allocation8 + $0x10] sm:$0xff] %v2734_v9  ;;  %v2708_v25 = vadd.f32 %v2707_v15, %v2694_v56  ;;  %v4233_v56 = vor.u32 %v4920_v3, %v4230_v53  ;;  %v4425_v9 = vor.u32 %v4968_v5, %v4422_v6  ;;  %v4962_v15 = vld [vmem:[#allocation5 + $0xa04] sm:$0xf] }
 0x15d   :  { %3006 = vmatpush.bf16.msra.mxu3 %v3825_v22  ;;  %v3153_v22 = vor.u32 %v4650_v12, %v3150_v61  ;;  %v3345_v26 = vor.u32 %v4698_v13, %v3342_v16  ;;  %v4014_v12 = vld [vmem:[#allocation5 + $0x718] sm:$0xf0]  ;;  %v4914_v61 = vld [vmem:[#allocation5 + $0x884] sm:$0xf]  ;;  %v4374_v28 = vld [vmem:[#allocation5 + $0x9e8] sm:$0xf0] }
 0x15e   :  { %2965 = vmatpush.bf16.msra.mxu0 %v3225_v30  ;;  %v4740_v30 = vld [vmem:[#allocation5 + $0x314] sm:$0xf]  ;;  %v2721_v32 = vpop.f32.mrf.mxu2  ;;  %v4398_v16 = vld [vmem:[#allocation5 + $0xa18] sm:$0xf0]  ;;  %v3942_v49 = vld [vmem:[#allocation5 + $0x688] sm:$0xf0] }
 0x15f   :  { %2979 = vmatpush.bf16.msra.mxu1 %v3417_v33  ;;  %v3510_v33 = vld [vmem:[#allocation5 + $0x328] sm:$0xf0]  ;;  %v2722_v36 = vadd.f32 %v2721_v32, %v2708_v25  ;;  %v2735_v37 = vpop.f32.mrf.mxu3  ;;  %v4593_v25 = vor.u32 %v5010_v18, %v4590_v19  ;;  %v3966_v32 = vld [vmem:[#allocation5 + $0x6b8] sm:$0xf0]  ;;  %v4890_v5 = vld [vmem:[#allocation5 + $0x7c4] sm:$0xf] }
 0x160   :  { %2993 = vmatpush.bf16.msra.mxu2 %v3609_v34  ;;  %v4788_v34 = vld [vmem:[#allocation5 + $0x494] sm:$0xf]  ;;  %v3513_v52 = vor.u32 %v4740_v30, %v3510_v33  ;;  %v4902_v33 = vld [vmem:[#allocation5 + $0x824] sm:$0xf]  ;;  %v3918_v53 = vld [vmem:[#allocation5 + $0x658] sm:$0xf0] }
 0x161   :  { %3007 = vmatpush.bf16.msra.mxu3 %v3801_v38  ;;  %v4878_v38 = vld [vmem:[#allocation5 + $0x764] sm:$0xf]  ;;  %v3705_v57 = vor.u32 %v4788_v34, %v3702_v35  ;;  %v4158_v35 = vld [vmem:[#allocation5 + $0x838] sm:$0xf0] }
 0x162   :  { %2966 = vmatpush.bf16.msra.mxu0 %v3201_v50  ;;  %v2736_v50 = vadd.f32 %v2735_v37, %v2722_v36  ;;  %v4065_v59 = vor.u32 %v4878_v38, %v4062_v40  ;;  %v4950_v36 = vld [vmem:[#allocation5 + $0x9a4] sm:$0xf]  ;;  %v4350_v37 = vld [vmem:[#allocation5 + $0x9b8] sm:$0xf0] }
 0x163   :  { %2980 = vmatpush.bf16.msra.mxu1 %v3393_v54  ;;  %v5022_v54 = vld [vmem:[#allocation5 + $0xbe4] sm:$0xf]  ;;  %v4542_v40 = vld [vmem:[#allocation5 + $0xb38] sm:$0xf0] }
 0x164   :  { %2994 = vmatpush.bf16.msra.mxu2 %v3585_v55  ;;  %v4638_v55 = vld [vmem:[#allocation5 + $0xbf8] sm:$0xf0]  ;;  %3082 = vst [vmem:[#allocation8 + $0x40] sm:$0xff] %v2736_v50  ;;  %v4998_v38 = vld [vmem:[#allocation5 + $0xb24] sm:$0xf] }
 0x165   :  { %3008 = vmatpush.bf16.msra.mxu3 %v3777_v63  ;;  %v4257_v63 = vor.u32 %v4926_v41, %v4254_v46  ;;  %v4641_v4 = vor.u32 %v5022_v54, %v4638_v55  ;;  %v4353_v46 = vor.u32 %v4950_v36, %v4350_v37  ;;  %v4896_v50 = vld [vmem:[#allocation5 + $0x7f4] sm:$0xf]  ;;  %v4326_v55 = vld [vmem:[#allocation5 + $0x988] sm:$0xf0] }
 0x166   :  { %2967 = vmatpush.bf16.msra.mxu0 %v3177_v8  ;;  %v4614_v8 = vld [vmem:[#allocation5 + $0xbc8] sm:$0xf0]  ;;  %v4944_v54 = vld [vmem:[#allocation5 + $0x974] sm:$0xf] }
 0x167   :  { %2981 = vmatpush.bf16.msra.mxu1 %v3369_v45  ;;  %v4041_v45 = vor.u32 %v4872_v62, %v4038_v2  ;;  %v4617_v13 = vor.u32 %v5016_v7, %v4614_v8  ;;  %v3945_v62 = vor.u32 %v4848_v48, %v3942_v49  ;;  %v4329_v2 = vor.u32 %v4944_v54, %v4326_v55  ;;  %v4110_v7 = vld [vmem:[#allocation5 + $0x7d8] sm:$0xf0]  ;;  %v4938_v8 = vld [vmem:[#allocation5 + $0x944] sm:$0xf] }
 0x168   :  { %2995 = vmatpush.bf16.msra.mxu2 %v3561_v11  ;;  %v4866_v11 = vld [vmem:[#allocation5 + $0x704] sm:$0xf] }
 0x169   :  { %3009 = vmatpush.bf16.msra.mxu3 %v3753_v14  ;;  %v4206_v14 = vld [vmem:[#allocation5 + $0x898] sm:$0xf0]  ;;  %v4017_v20 = vor.u32 %v4866_v11, %v4014_v12 }
 0x16a   :  { %2968 = vmatpush.bf16.msra.mxu0 %v3153_v22  ;;  %v4209_v21 = vor.u32 %v4914_v61, %v4206_v14  ;;  %v4401_v22 = vor.u32 %v4962_v15, %v4398_v16  ;;  %v4494_v11 = vld [vmem:[#allocation5 + $0xad8] sm:$0xf0]  ;;  %v4113_v61 = vor.u32 %v4890_v5, %v4110_v7  ;;  %v4836_v14 = vld [vmem:[#allocation5 + $0x614] sm:$0xf]  ;;  %v3894_v15 = vld [vmem:[#allocation5 + $0x628] sm:$0xf0] }
 0x16b   :  { %2982 = vmatpush.bf16.msra.mxu1 %v3345_v26  ;;  %v4182_v26 = vld [vmem:[#allocation5 + $0x868] sm:$0xf0]  ;;  %v4884_v16 = vld [vmem:[#allocation5 + $0x794] sm:$0xf] }
 0x16c   :  { %2996 = vmatpush.bf16.msra.mxu2 %v3537_v27  ;;  %v4956_v27 = vld [vmem:[#allocation5 + $0x9d4] sm:$0xf] }
 0x16d   :  { %3010 = vmatpush.bf16.msra.mxu3 %v3729_v31  ;;  %v4854_v31 = vld [vmem:[#allocation5 + $0x6a4] sm:$0xf] }
 0x16e   :  { %2969 = vmatpush.bf16.msra.mxu0 %v3129_v42  ;;  %v3969_v41 = vor.u32 %v4854_v31, %v3966_v32  ;;  %v4161_v42 = vor.u32 %v4902_v33, %v4158_v35  ;;  %v2747_v3 = vpop.f32.mrf.mxu0 }
 0x16f   :  { %2983 = vmatpush.bf16.msra.mxu1 %v3321_v51  ;;  %v4545_v51 = vor.u32 %v4998_v38, %v4542_v40 }
 0x170   :  { %2997 = vmatpush.bf16.msra.mxu2 %v3513_v52  ;;  %v4134_v52 = vld [vmem:[#allocation5 + $0x808] sm:$0xf0] }
 0x171   :  { %3011 = vmatpush.bf16.msra.mxu3 %v3705_v57  ;;  %2970 = vmatmul.bf16.vlgmr.msra.gmra.mxu0 %v5178_v58  ;;  %v4566_v58 = vld [vmem:[#allocation5 + $0xb68] sm:$0xf0]  ;;  %v4992_v57 = vld [vmem:[#allocation5 + $0xaf4] sm:$0xf] }
 0x172   :  { %3018 = vmatpush.bf16.msrb.mxu0 %v4065_v59  ;;  %2984 = vmatmul.bf16.vlgmr.msra.gmra.mxu1 %v5184_v10  ;;  %v4377_v10 = vor.u32 %v4956_v27, %v4374_v28  ;;  %v4569_v34 = vor.u32 %v5004_v29, %v4566_v58  ;;  %v4518_v59 = vld [vmem:[#allocation5 + $0xb08] sm:$0xf0] }
 0x173   :  { %3032 = vmatpush.bf16.msrb.mxu1 %v4257_v63  ;;  %2998 = vmatmul.bf16.vlgmr.msra.gmra.mxu2 %v5180_v1  ;;  %v4908_v1 = vld [vmem:[#allocation5 + $0x854] sm:$0xf]  ;;  %v473_v63 = vperm.slane %v5242_v60, 3  ;;  %v4521_v6 = vor.u32 %v4992_v57, %v4518_v59  ;;  %v474_v59 = vperm.slane %v5242_v60, 4 }
 0x174   :  { %3046 = vmatpush.bf16.msrb.mxu2 %v4449_v0  ;;  %3012 = vmatmul.bf16.vlgmr.msra.gmra.mxu3 %v5186_v17  ;;  %v3993_v17 = vor.u32 %v4860_v23, %v3990_v24  ;;  %v4185_v30 = vor.u32 %v4908_v1, %v4182_v26  ;;  %v4137_v0 = vor.u32 %v4896_v50, %v4134_v52  ;;  %v4980_v23 = vld [vmem:[#allocation5 + $0xa94] sm:$0xf]  ;;  %v4470_v24 = vld [vmem:[#allocation5 + $0xaa8] sm:$0xf0] }
 0x175   :  { %3060 = vmatpush.bf16.msrb.mxu3 %v4641_v4  ;;  %v4842_v4 = vld [vmem:[#allocation5 + $0x644] sm:$0xf]  ;;  %v2748_v18 = vadd.f32 %v2747_v3, %v473_v63  ;;  %v3897_v1 = vor.u32 %v4836_v14, %v3894_v15  ;;  %v4473_v58 = vor.u32 %v4980_v23, %v4470_v24 }
 0x176   :  { %3019 = vmatpush.bf16.msrb.mxu0 %v4041_v45  ;;  %v4302_v45 = vld [vmem:[#allocation5 + $0x958] sm:$0xf0]  ;;  %v3921_v12 = vor.u32 %v4842_v4, %v3918_v53 }
 0x177   :  { %3033 = vmatpush.bf16.msrb.mxu1 %v4233_v56  ;;  %v2761_v56 = vpop.f32.mrf.mxu1  ;;  %v2789_v28 = vpop.f32.mrf.mxu3 }
 0x178   :  { %3047 = vmatpush.bf16.msrb.mxu2 %v4425_v9  ;;  %v4986_v9 = vld [vmem:[#allocation5 + $0xac4] sm:$0xf]  ;;  %v2762_v29 = vadd.f32 %v2761_v56, %v2748_v18 }
 0x179   :  { %3061 = vmatpush.bf16.msrb.mxu3 %v4617_v13  ;;  %v4305_v13 = vor.u32 %v4938_v8, %v4302_v45  ;;  %v4497_v19 = vor.u32 %v4986_v9, %v4494_v11 }
 0x17a   :  { %3020 = vmatpush.bf16.msrb.mxu0 %v4017_v20  ;;  %v4086_v20 = vld [vmem:[#allocation5 + $0x7a8] sm:$0xf0] }
 0x17b   :  { %3034 = vmatpush.bf16.msrb.mxu1 %v4209_v21  ;;  %v4932_v21 = vld [vmem:[#allocation5 + $0x914] sm:$0xf]  ;;  %v4089_v26 = vor.u32 %v4884_v16, %v4086_v20 }
 0x17c   :  { %3048 = vmatpush.bf16.msrb.mxu2 %v4401_v22  ;;  %v4278_v22 = vld [vmem:[#allocation5 + $0x928] sm:$0xf0] }
 0x17d   :  { %3062 = vmatpush.bf16.msrb.mxu3 %v4593_v25  ;;  %v2775_v25 = vpop.f32.mrf.mxu2  ;;  %v4281_v27 = vor.u32 %v4932_v21, %v4278_v22 }
 0x17e   :  { %3021 = vmatpush.bf16.msrb.mxu0 %v3993_v17  ;;  %v2749_v17 = vpop.f32.mrf.mxu0 }
 0x17f   :  { %3035 = vmatpush.bf16.msrb.mxu1 %v4185_v30  ;;  %v2763_v30 = vpop.f32.mrf.mxu1  ;;  %v2750_v31 = vadd.f32 %v2749_v17, %v473_v63  ;;  %v2791_v35 = vpop.f32.mrf.mxu3 }
 0x180   :  { %3049 = vmatpush.bf16.msrb.mxu2 %v4377_v10  ;;  %v2776_v10 = vadd.f32 %v2775_v25, %v2762_v29 }
 0x181   :  { %3063 = vmatpush.bf16.msrb.mxu3 %v4569_v34  ;;  %v2764_v34 = vadd.f32 %v2763_v30, %v2750_v31 }
 0x182   :  { %3022 = vmatpush.bf16.msrb.mxu0 %v3969_v41  ;;  %v2790_v32 = vadd.f32 %v2789_v28, %v2776_v10  ;;  %v475_v28 = vperm.slane %v5242_v60, 5 }
 0x183   :  { %3036 = vmatpush.bf16.msrb.mxu1 %v4161_v42 }
 0x184   :  { %3050 = vmatpush.bf16.msrb.mxu2 %v4353_v46 }
 0x185   :  { %3064 = vmatpush.bf16.msrb.mxu3 %v4545_v51  ;;  %v2777_v33 = vpop.f32.mrf.mxu2 }
 0x186   :  { %3023 = vmatpush.bf16.msrb.mxu0 %v3945_v62  ;;  %v2778_v40 = vadd.f32 %v2777_v33, %v2764_v34 }
 0x187   :  { %3037 = vmatpush.bf16.msrb.mxu1 %v4137_v0 }
 0x188   :  { %3051 = vmatpush.bf16.msrb.mxu2 %v4329_v2  ;;  %v2792_v42 = vadd.f32 %v2791_v35, %v2778_v40 }
 0x189   :  { %3065 = vmatpush.bf16.msrb.mxu3 %v4521_v6 }
 0x18a   :  { %3024 = vmatpush.bf16.msrb.mxu0 %v3921_v12 }
 0x18b   :  { %3038 = vmatpush.bf16.msrb.mxu1 %v4113_v61 }
 0x18c   :  { %3052 = vmatpush.bf16.msrb.mxu2 %v4305_v13 }
 0x18d   :  { %3066 = vmatpush.bf16.msrb.mxu3 %v4497_v19 }
 0x18e   :  { %3025 = vmatpush.bf16.msrb.mxu0 %v3897_v1  ;;  %v2803_v36 = vpop.f32.mrf.mxu0 }
 0x18f   :  { %3039 = vmatpush.bf16.msrb.mxu1 %v4089_v26  ;;  %v2804_v37 = vadd.f32 %v2803_v36, %v2790_v32  ;;  %v2817_v38 = vpop.f32.mrf.mxu1 }
 0x190   :  { %3053 = vmatpush.bf16.msrb.mxu2 %v4281_v27 }
 0x191   :  { %3067 = vmatpush.bf16.msrb.mxu3 %v4473_v58  ;;  %3026 = vmatmul.bf16.vlgmr.msrb.gmra.mxu0 %v5190_v39  ;;  %v2818_v41 = vadd.f32 %v2817_v38, %v2804_v37 }
 0x192   :  { %3040 = vmatmul.bf16.vlgmr.msrb.gmra.mxu1 %v5194_v44 }
 0x193   :  { %3054 = vmatmul.bf16.vlgmr.msrb.gmra.mxu2 %v5192_v43 }
 0x194   :  { %3068 = vmatmul.bf16.vlgmr.msrb.gmra.mxu3 %v5196_v47 }
 0x196   :  { %v2831_v46 = vpop.f32.mrf.mxu2  ;;  %v2805_v39 = vpop.f32.mrf.mxu0 }
 0x197   :  { %v2832_v48 = vadd.f32 %v2831_v46, %v2818_v41  ;;  %v2845_v49 = vpop.f32.mrf.mxu3  ;;  %v2806_v50 = vadd.f32 %v2805_v39, %v2792_v42  ;;  %v2819_v51 = vpop.f32.mrf.mxu1 }
 0x199   :  { %v2846_v44 = vadd.f32 %v2845_v49, %v2832_v48  ;;  %v2820_v43 = vadd.f32 %v2819_v51, %v2806_v50 }
 0x19b   :  { %3077 = vst [vmem:[#allocation8 + $0x18] sm:$0xff] %v2846_v44 }
 0x19e   :  { %v2833_v47 = vpop.f32.mrf.mxu2 }
 0x19f   :  { %v2834_v52 = vadd.f32 %v2833_v47, %v2820_v43  ;;  %v2847_v54 = vpop.f32.mrf.mxu3 }
 0x1a1   :  { %v2848_v55 = vadd.f32 %v2847_v54, %v2834_v52 }
 0x1a3   :  { %3083 = vst [vmem:[#allocation8 + $0x48] sm:$0xff] %v2848_v55 }
 0x1ae   :  { %v2859_v57 = vpop.f32.mrf.mxu0 }
 0x1af   :  { %v2873_v62 = vpop.f32.mrf.mxu1  ;;  %v2860_v63 = vadd.f32 %v2859_v57, %v474_v59 }
 0x1b1   :  { %v2874_v3 = vadd.f32 %v2873_v62, %v2860_v63 }
 0x1b6   :  { %v2887_v0 = vpop.f32.mrf.mxu2  ;;  %v2861_v4 = vpop.f32.mrf.mxu0 }
 0x1b7   :  { %v2901_v2 = vpop.f32.mrf.mxu3  ;;  %v2875_v53 = vpop.f32.mrf.mxu1  ;;  %v2888_v5 = vadd.f32 %v2887_v0, %v2874_v3  ;;  %v2862_v6 = vadd.f32 %v2861_v4, %v474_v59 }
 0x1b9   :  { %v2902_v7 = vadd.f32 %v2901_v2, %v2888_v5  ;;  %v2876_v45 = vadd.f32 %v2875_v53, %v2862_v6 }
 0x1be   :  { %v2889_v8 = vpop.f32.mrf.mxu2 }
 0x1bf   :  { %v2903_v56 = vpop.f32.mrf.mxu3  ;;  %v2890_v61 = vadd.f32 %v2889_v8, %v2876_v45 }
 0x1c1   :  { %v2904_v14 = vadd.f32 %v2903_v56, %v2890_v61 }
 0x1ce   :  { %v2915_v9 = vpop.f32.mrf.mxu0 }
 0x1cf   :  { %v2916_v11 = vadd.f32 %v2915_v9, %v2902_v7  ;;  %v2929_v12 = vpop.f32.mrf.mxu1 }
 0x1d1   :  { %v2930_v13 = vadd.f32 %v2929_v12, %v2916_v11 }
 0x1d6   :  { %v2943_v15 = vpop.f32.mrf.mxu2  ;;  %v2917_v18 = vpop.f32.mrf.mxu0 }
 0x1d7   :  { %v2944_v16 = vadd.f32 %v2943_v15, %v2930_v13  ;;  %v2957_v19 = vpop.f32.mrf.mxu3  ;;  %v2918_v20 = vadd.f32 %v2917_v18, %v2904_v14  ;;  %v2931_v22 = vpop.f32.mrf.mxu1 }
 0x1d9   :  { %v2958_v21 = vadd.f32 %v2957_v19, %v2944_v16  ;;  %v2932_v23 = vadd.f32 %v2931_v22, %v2918_v20 }
 0x1db   :  { %3078 = vst [vmem:[#allocation8 + $0x20] sm:$0xff] %v2958_v21 }
 0x1de   :  { %v2945_v24 = vpop.f32.mrf.mxu2 }
 0x1df   :  { %v2946_v1 = vadd.f32 %v2945_v24, %v2932_v23  ;;  %v2959_v25 = vpop.f32.mrf.mxu3 }
 0x1e1   :  { %v2960_v26 = vadd.f32 %v2959_v25, %v2946_v1 }
 0x1e3   :  { %3084 = vst [vmem:[#allocation8 + $0x50] sm:$0xff] %v2960_v26 }
 0x1ee   :  { %v2971_v27 = vpop.f32.mrf.mxu0 }
 0x1ef   :  { %v2985_v29 = vpop.f32.mrf.mxu1  ;;  %v2972_v58 = vadd.f32 %v2971_v27, %v475_v28 }
 0x1f1   :  { %v2986_v10 = vadd.f32 %v2985_v29, %v2972_v58 }
 0x1f6   :  { %v2999_v17 = vpop.f32.mrf.mxu2  ;;  %v2973_v31 = vpop.f32.mrf.mxu0 }
 0x1f7   :  { %v3013_v30 = vpop.f32.mrf.mxu3  ;;  %v2987_v32 = vpop.f32.mrf.mxu1  ;;  %v3000_v33 = vadd.f32 %v2999_v17, %v2986_v10  ;;  %v2974_v34 = vadd.f32 %v2973_v31, %v475_v28 }
 0x1f9   :  { %v3014_v36 = vadd.f32 %v3013_v30, %v3000_v33  ;;  %v2988_v37 = vadd.f32 %v2987_v32, %v2974_v34 }
 0x1fe   :  { %v3001_v35 = vpop.f32.mrf.mxu2 }
 0x1ff   :  { %v3015_v38 = vpop.f32.mrf.mxu3  ;;  %v3002_v46 = vadd.f32 %v3001_v35, %v2988_v37 }
 0x201   :  { %v3016_v60 = vadd.f32 %v3015_v38, %v3002_v46 }
 0x20e   :  { %v3027_v40 = vpop.f32.mrf.mxu0 }
 0x20f   :  { %v3028_v41 = vadd.f32 %v3027_v40, %v3014_v36  ;;  %v3041_v42 = vpop.f32.mrf.mxu1 }
 0x211   :  { %v3042_v48 = vadd.f32 %v3041_v42, %v3028_v41 }
 0x216   :  { %v3055_v39 = vpop.f32.mrf.mxu2  ;;  %v3029_v44 = vpop.f32.mrf.mxu0 }
 0x217   :  { %v3056_v49 = vadd.f32 %v3055_v39, %v3042_v48  ;;  %v3069_v50 = vpop.f32.mrf.mxu3  ;;  %v3030_v43 = vadd.f32 %v3029_v44, %v3016_v60  ;;  %v3043_v47 = vpop.f32.mrf.mxu1 }
 0x219   :  { %v3070_v51 = vadd.f32 %v3069_v50, %v3056_v49  ;;  %v3044_v52 = vadd.f32 %v3043_v47, %v3030_v43 }
 0x21b   :  { %3079 = vst [vmem:[#allocation8 + $0x28] sm:$0xff] %v3070_v51 }
 0x21e   :  { %v3057_v54 = vpop.f32.mrf.mxu2 }
 0x21f   :  { %v3058_v55 = vadd.f32 %v3057_v54, %v3044_v52  ;;  %v3071_v57 = vpop.f32.mrf.mxu3 }
 0x221   :  { %v3072_v59 = vadd.f32 %v3071_v57, %v3058_v55 }
 0x223   :  { %3085 = vst [vmem:[#allocation8 + $0x58] sm:$0xff] %v3072_v59 }
 0x224   :  { %3098 = dma.vmem_to_hbm [thread:$0]  %s3091_s2, 1536, %s3093_s5, [#allocation4], %s5147_s6, %s5147_s6, %s5148_s7  }
 0x225   :  { %5137 = dma.done.wait [#allocation4], 1536  }
 0x226   :  { %5138 = vsyncadd [#allocation4], 4294965760 }
 0x227   :  { %3103 = vsyncpa [#allocation3], 1 }
 0x228   :  { %3104 = vsyncpa [#allocation6], 1 }
 0x229   :  { %3105 = vsyncpa [#allocation4], 1 }

// kernel: tpu_custom_call.1
= control target key start
LH: loop header
LB: loop body
LE: loop exit
PB: predicated region body
PF: predicated region fallthrough
CT: control target
= control target key end

     0   :  { %8 = vsyncpa [#allocation3], 0  ;;  %s5267_s0 = inlined_call_operand.hbm [shape: f32[16,1024], index: 0, kind: input, shape index: {}]   ;;  %s5268_s1 = inlined_call_operand.hbm [shape: bf16[1024,768], index: 1, kind: input, shape index: {}]   ;;  %s5269_s2 = inlined_call_operand.hbm [shape: f32[1,768], index: 2, kind: input, shape index: {}]   ;;  %s5270_s3 = inlined_call_operand.hbm [shape: f32[16,768], index: 3, kind: output, shape index: {}]  }
   0x1   :  { %9 = vsyncpa [#allocation6], 0  ;;  %s28_s14 = sshll.u32 %s5268_s1, 4  ;;  %s29_s14 = int_to_ptr.hbm [resolvable:$true] %s28_s14 }
   0x2   :  { %10 = vsyncpa [#allocation4], 0  ;;  %s5139_s15 = smov [#allocation5]   ;;  %s15_s19 = sshll.u32 %s5267_s0, 4  ;;  %s16_s19 = int_to_ptr.hbm [resolvable:$true] %s15_s19 }
   0x3   :  { %s30_s16 = sshll.u32 %s5139_s15, 4  ;;  %s5140_s20 = smov 384   ;;  %s31_s16 = int_to_ptr.vmem [resolvable:$true] %s30_s16 }
   0x4   :  { %s5141_s21 = smov 24   ;;  %s5142_s22 = smov [#allocation2]  }
   0x5   :  { %36 = dma.hbm_to_vmem [thread:$0]  %s29_s14, 49152, %s31_s16, [#allocation6], %s5140_s20, %s5140_s20, %s5141_s21  }
   0x6   :  { %s17_s23 = sshll.u32 %s5142_s22, 4  ;;  %s5143_s24 = smov 1024   ;;  %s18_s23 = int_to_ptr.vmem [resolvable:$true] %s17_s23 }
   0x7   :  { %s5144_s25 = smov 64   ;;  %s42_s27 = sshll.u32 %s5269_s2, 4  ;;  %s43_s27 = int_to_ptr.hbm [resolvable:$true] %s42_s27 }
   0x8   :  { %23 = dma.hbm_to_vmem [thread:$0]  %s16_s19, 2048, %s18_s23, [#allocation3], %s5143_s24, %s5143_s24, %s5144_s25  }
   0x9   :  { %s5145_s28 = smov [#allocation7]  }
   0xa   :  { %s44_s29 = sshll.u32 %s5145_s28, 4  ;;  %s45_s29 = int_to_ptr.vmem [resolvable:$true] %s44_s29 }
   0xb   :  { %47 = dma.hbm_to_vmem [thread:$0]  %s43_s27, 96, %s45_s29, [#allocation6]  }
   0xc   :  { %5133 = dma.done.wait [#allocation3], 2048  }
   0xd   :  { %5134 = vsyncadd [#allocation3], 4294965248 }
   0xe   :  { %5135 = dma.done.wait [#allocation6], 49248  }
   0xf   :  { %5136 = vsyncadd [#allocation6], 4294918048  ;;  %v3276_v0 = vld [vmem:[#allocation5 + $0x150] sm:$0xf]  ;;  %v4687_v1 = vld [vmem:[#allocation5 + $0x164] sm:$0xf0] }
  0x10   :  { %v3468_v2 = vld [vmem:[#allocation5 + $0x2d0] sm:$0xf]  ;;  %v3277_v3 = vor.u32 %v4687_v1, %v3276_v0  ;;  %v4735_v4 = vld [vmem:[#allocation5 + $0x2e4] sm:$0xf0]  ;;  %v3252_v11 = vld [vmem:[#allocation5 + $0x120] sm:$0xf] }
  0x11   :  { %v3660_v5 = vld [vmem:[#allocation5 + $0x450] sm:$0xf]  ;;  %v4783_v6 = vld [vmem:[#allocation5 + $0x464] sm:$0xf0]  ;;  %v3469_v7 = vor.u32 %v4735_v4, %v3468_v2  ;;  %v4681_v13 = vld [vmem:[#allocation5 + $0x134] sm:$0xf0] }
  0x12   :  { %v3661_v8 = vor.u32 %v4783_v6, %v3660_v5  ;;  %v3852_v9 = vld [vmem:[#allocation5 + $0x5d0] sm:$0xf]  ;;  %v4831_v10 = vld [vmem:[#allocation5 + $0x5e4] sm:$0xf0]  ;;  %2402 = vmatpush.bf16.msra.mxu0 %v3277_v3  ;;  %v3444_v14 = vld [vmem:[#allocation5 + $0x2a0] sm:$0xf]  ;;  %v3253_v16 = vor.u32 %v4681_v13, %v3252_v11 }
  0x13   :  { %v3853_v12 = vor.u32 %v4831_v10, %v3852_v9  ;;  %v4729_v15 = vld [vmem:[#allocation5 + $0x2b4] sm:$0xf0]  ;;  %2416 = vmatpush.bf16.msra.mxu1 %v3469_v7  ;;  %v3636_v18 = vld [vmem:[#allocation5 + $0x420] sm:$0xf]  ;;  %v3228_v23 = vld [vmem:[#allocation5 + $0xf0] sm:$0xf] }
  0x14   :  { %2430 = vmatpush.bf16.msra.mxu2 %v3661_v8  ;;  %v3445_v17 = vor.u32 %v4729_v15, %v3444_v14  ;;  %v4777_v19 = vld [vmem:[#allocation5 + $0x434] sm:$0xf0]  ;;  %v3828_v20 = vld [vmem:[#allocation5 + $0x5a0] sm:$0xf]  ;;  %v4675_v24 = vld [vmem:[#allocation5 + $0x104] sm:$0xf0] }
  0x15   :  { %2444 = vmatpush.bf16.msra.mxu3 %v3853_v12  ;;  %v3637_v21 = vor.u32 %v4777_v19, %v3636_v18  ;;  %v4825_v22 = vld [vmem:[#allocation5 + $0x5b4] sm:$0xf0]  ;;  %v3420_v26 = vld [vmem:[#allocation5 + $0x270] sm:$0xf]  ;;  %v4723_v27 = vld [vmem:[#allocation5 + $0x284] sm:$0xf0]  ;;  %v3229_v29 = vor.u32 %v4675_v24, %v3228_v23 }
  0x16   :  { %v3829_v25 = vor.u32 %v4825_v22, %v3828_v20  ;;  %v3612_v28 = vld [vmem:[#allocation5 + $0x3f0] sm:$0xf]  ;;  %2403 = vmatpush.bf16.msra.mxu0 %v3253_v16  ;;  %v4771_v30 = vld [vmem:[#allocation5 + $0x404] sm:$0xf0]  ;;  %v3421_v33 = vor.u32 %v4723_v27, %v3420_v26  ;;  %v3204_v35 = vld [vmem:[#allocation5 + $0xc0] sm:$0xf] }
  0x17   :  { %v3804_v31 = vld [vmem:[#allocation5 + $0x570] sm:$0xf]  ;;  %v4819_v32 = vld [vmem:[#allocation5 + $0x584] sm:$0xf0]  ;;  %2417 = vmatpush.bf16.msra.mxu1 %v3445_v17  ;;  %v3613_v34 = vor.u32 %v4771_v30, %v3612_v28  ;;  %v4669_v36 = vld [vmem:[#allocation5 + $0xd4] sm:$0xf0] }
  0x18   :  { %2431 = vmatpush.bf16.msra.mxu2 %v3637_v21  ;;  %v3396_v37 = vld [vmem:[#allocation5 + $0x240] sm:$0xf]  ;;  %v3805_v38 = vor.u32 %v4819_v32, %v3804_v31  ;;  %v4717_v39 = vld [vmem:[#allocation5 + $0x254] sm:$0xf0]  ;;  %v3205_v44 = vor.u32 %v4669_v36, %v3204_v35  ;;  %v3180_v47 = vld [vmem:[#allocation5 + $0x90] sm:$0xf] }
  0x19   :  { %2445 = vmatpush.bf16.msra.mxu3 %v3829_v25  ;;  %v3588_v40 = vld [vmem:[#allocation5 + $0x3c0] sm:$0xf]  ;;  %v4765_v41 = vld [vmem:[#allocation5 + $0x3d4] sm:$0xf0]  ;;  %v3397_v45 = vor.u32 %v4717_v39, %v3396_v37  ;;  %v4663_v48 = vld [vmem:[#allocation5 + $0xa4] sm:$0xf0] }
  0x1a   :  { %v3780_v42 = vld [vmem:[#allocation5 + $0x540] sm:$0xf]  ;;  %v4813_v43 = vld [vmem:[#allocation5 + $0x554] sm:$0xf0]  ;;  %2404 = vmatpush.bf16.msra.mxu0 %v3229_v29  ;;  %v3589_v46 = vor.u32 %v4765_v41, %v3588_v40  ;;  %v3372_v49 = vld [vmem:[#allocation5 + $0x210] sm:$0xf]  ;;  %v3181_v56 = vor.u32 %v4663_v48, %v3180_v47 }
  0x1b   :  { %2418 = vmatpush.bf16.msra.mxu1 %v3421_v33  ;;  %v3781_v50 = vor.u32 %v4813_v43, %v3780_v42  ;;  %v4711_v51 = vld [vmem:[#allocation5 + $0x224] sm:$0xf0]  ;;  %v3564_v52 = vld [vmem:[#allocation5 + $0x390] sm:$0xf]  ;;  %v3156_v59 = vld [vmem:[#allocation5 + $0x60] sm:$0xf] }
  0x1c   :  { %2432 = vmatpush.bf16.msra.mxu2 %v3613_v34  ;;  %v4759_v53 = vld [vmem:[#allocation5 + $0x3a4] sm:$0xf0]  ;;  %v3756_v54 = vld [vmem:[#allocation5 + $0x510] sm:$0xf]  ;;  %v3373_v57 = vor.u32 %v4711_v51, %v3372_v49  ;;  %v4657_v60 = vld [vmem:[#allocation5 + $0x74] sm:$0xf0] }
  0x1d   :  { %2446 = vmatpush.bf16.msra.mxu3 %v3805_v38  ;;  %v4807_v55 = vld [vmem:[#allocation5 + $0x524] sm:$0xf0]  ;;  %v3565_v58 = vor.u32 %v4759_v53, %v3564_v52  ;;  %v3348_v61 = vld [vmem:[#allocation5 + $0x1e0] sm:$0xf]  ;;  %v4705_v63 = vld [vmem:[#allocation5 + $0x1f4] sm:$0xf0]  ;;  %v3157_v4 = vor.u32 %v4657_v60, %v3156_v59 }
  0x1e   :  { %2405 = vmatpush.bf16.msra.mxu0 %v3205_v44  ;;  %v3757_v62 = vor.u32 %v4807_v55, %v3756_v54  ;;  %v3540_v0 = vld [vmem:[#allocation5 + $0x360] sm:$0xf]  ;;  %v4753_v1 = vld [vmem:[#allocation5 + $0x374] sm:$0xf0]  ;;  %v3349_v5 = vor.u32 %v4705_v63, %v3348_v61  ;;  %v3132_v7 = vld [vmem:[#allocation5 + $0x30] sm:$0xf] }
  0x1f   :  { %2419 = vmatpush.bf16.msra.mxu1 %v3397_v45  ;;  %v3732_v2 = vld [vmem:[#allocation5 + $0x4e0] sm:$0xf]  ;;  %v4801_v3 = vld [vmem:[#allocation5 + $0x4f4] sm:$0xf0]  ;;  %v3541_v6 = vor.u32 %v4753_v1, %v3540_v0  ;;  %v4651_v8 = vld [vmem:[#allocation5 + $0x44] sm:$0xf0] }
  0x20   :  { %2433 = vmatpush.bf16.msra.mxu2 %v3589_v46  ;;  %v3324_v9 = vld [vmem:[#allocation5 + $0x1b0] sm:$0xf]  ;;  %v3733_v10 = vor.u32 %v4801_v3, %v3732_v2  ;;  %v4699_v11 = vld [vmem:[#allocation5 + $0x1c4] sm:$0xf0]  ;;  %v3133_v16 = vor.u32 %v4651_v8, %v3132_v7  ;;  %v3108_v17 = vld [vmem:[#allocation5] sm:$0xf] }
  0x21   :  { %2447 = vmatpush.bf16.msra.mxu3 %v3781_v50  ;;  %v3516_v12 = vld [vmem:[#allocation5 + $0x330] sm:$0xf]  ;;  %v4747_v13 = vld [vmem:[#allocation5 + $0x344] sm:$0xf0]  ;;  %v4645_v18 = vld [vmem:[#allocation5 + $0x14] sm:$0xf0]  ;;  %v3325_v19 = vor.u32 %v4699_v11, %v3324_v9 }
  0x22   :  { %2406 = vmatpush.bf16.msra.mxu0 %v3181_v56  ;;  %v3708_v14 = vld [vmem:[#allocation5 + $0x4b0] sm:$0xf]  ;;  %v4795_v15 = vld [vmem:[#allocation5 + $0x4c4] sm:$0xf0]  ;;  %v3517_v20 = vor.u32 %v4747_v13, %v3516_v12  ;;  %v3300_v21 = vld [vmem:[#allocation5 + $0x180] sm:$0xf]  ;;  %v3109_v31 = vor.u32 %v4645_v18, %v3108_v17 }
  0x23   :  { %2420 = vmatpush.bf16.msra.mxu1 %v3373_v57  ;;  %v4693_v22 = vld [vmem:[#allocation5 + $0x194] sm:$0xf0]  ;;  %v3492_v23 = vld [vmem:[#allocation5 + $0x300] sm:$0xf]  ;;  %v3709_v24 = vor.u32 %v4795_v15, %v3708_v14  ;;  %v4044_v28 = vld [vmem:[#allocation5 + $0x750] sm:$0xf] }
  0x24   :  { %2434 = vmatpush.bf16.msra.mxu2 %v3565_v58  ;;  %v4741_v25 = vld [vmem:[#allocation5 + $0x314] sm:$0xf0]  ;;  %v3684_v26 = vld [vmem:[#allocation5 + $0x480] sm:$0xf]  ;;  %v4879_v29 = vld [vmem:[#allocation5 + $0x764] sm:$0xf0]  ;;  %v3301_v35 = vor.u32 %v4693_v22, %v3300_v21 }
  0x25   :  { %2448 = vmatpush.bf16.msra.mxu3 %v3757_v62  ;;  %v4789_v27 = vld [vmem:[#allocation5 + $0x494] sm:$0xf0]  ;;  %v4236_v30 = vld [vmem:[#allocation5 + $0x8d0] sm:$0xf]  ;;  %v4927_v32 = vld [vmem:[#allocation5 + $0x8e4] sm:$0xf0]  ;;  %v3493_v36 = vor.u32 %v4741_v25, %v3492_v23  ;;  %v4045_v40 = vor.u32 %v4879_v29, %v4044_v28 }
  0x26   :  { %2407 = vmatpush.bf16.msra.mxu0 %v3157_v4  ;;  %v4428_v33 = vld [vmem:[#allocation5 + $0xa50] sm:$0xf]  ;;  %v4975_v34 = vld [vmem:[#allocation5 + $0xa64] sm:$0xf0]  ;;  %v3685_v39 = vor.u32 %v4789_v27, %v3684_v26  ;;  %v4020_v41 = vld [vmem:[#allocation5 + $0x720] sm:$0xf]  ;;  %v4237_v43 = vor.u32 %v4927_v32, %v4236_v30 }
  0x27   :  { %2421 = vmatpush.bf16.msra.mxu1 %v3349_v5  ;;  %v4620_v37 = vld [vmem:[#allocation5 + $0xbd0] sm:$0xf]  ;;  %v5023_v38 = vld [vmem:[#allocation5 + $0xbe4] sm:$0xf0]  ;;  %v4873_v42 = vld [vmem:[#allocation5 + $0x734] sm:$0xf0]  ;;  %v4429_v44 = vor.u32 %v4975_v34, %v4428_v33 }
  0x28   :  { %2435 = vmatpush.bf16.msra.mxu2 %v3541_v6  ;;  %v4212_v45 = vld [vmem:[#allocation5 + $0x8a0] sm:$0xf]  ;;  %v4921_v46 = vld [vmem:[#allocation5 + $0x8b4] sm:$0xf0]  ;;  %v4621_v48 = vor.u32 %v5023_v38, %v4620_v37  ;;  %v62_v54 = vld [vmem:[#allocation2 + $0x10] sm:$0xff]  ;;  %v4021_v55 = vor.u32 %v4873_v42, %v4020_v41  ;;  %s5146_s0 = smov [#allocation8]  }
  0x29   :  { %2449 = vmatpush.bf16.msra.mxu3 %v3733_v10  ;;  %v4404_v47 = vld [vmem:[#allocation5 + $0xa20] sm:$0xf]  ;;  %v4969_v49 = vld [vmem:[#allocation5 + $0xa34] sm:$0xf0]  ;;  %v3996_v56 = vld [vmem:[#allocation5 + $0x6f0] sm:$0xf]  ;;  %v4213_v60 = vor.u32 %v4921_v46, %v4212_v45 }
  0x2a   :  { %2408 = vmatpush.bf16.msra.mxu0 %v3133_v16  ;;  %v4596_v50 = vld [vmem:[#allocation5 + $0xba0] sm:$0xf]  ;;  %v5017_v51 = vld [vmem:[#allocation5 + $0xbb4] sm:$0xf0]  ;;  %v4867_v57 = vld [vmem:[#allocation5 + $0x704] sm:$0xf0]  ;;  %v4405_v61 = vor.u32 %v4969_v49, %v4404_v47 }
  0x2b   :  { %2422 = vmatpush.bf16.msra.mxu1 %v3325_v19  ;;  %v60_v52 = vld [vmem:[#allocation2] sm:$0xff]  ;;  %v70_v59 = vld [vmem:[#allocation2 + $0x50] sm:$0xff]  ;;  %v4915_v63 = vld [vmem:[#allocation5 + $0x884] sm:$0xf0]  ;;  %v4597_v2 = vor.u32 %v5017_v51, %v4596_v50  ;;  %v3997_v9 = vor.u32 %v4867_v57, %v3996_v56  ;;  %s3090_s2 = sshll.u32 %s5146_s0, 4  ;;  %s3092_s5 = sshll.u32 %s5270_s3, 4  ;;  %s3091_s2 = int_to_ptr.vmem [resolvable:$true] %s3090_s2  ;;  %s3093_s5 = int_to_ptr.hbm [resolvable:$true] %s3092_s5 }
  0x2c   :  { %2436 = vmatpush.bf16.msra.mxu2 %v3517_v20  ;;  %v68_v53 = vld [vmem:[#allocation2 + $0x40] sm:$0xff]  ;;  %v4188_v62 = vld [vmem:[#allocation5 + $0x870] sm:$0xf]  ;;  %v5180_v1 = vpack.c.bf16 %v70_v59, %v62_v54  ;;  %v4963_v3 = vld [vmem:[#allocation5 + $0xa04] sm:$0xf0]  ;;  %s5147_s6 = smov 768  }
  0x2d   :  { %2450 = vmatpush.bf16.msra.mxu3 %v3709_v24  ;;  %v5178_v58 = vpack.c.bf16 %v68_v53, %v60_v52  ;;  %v4380_v0 = vld [vmem:[#allocation5 + $0x9f0] sm:$0xf]  ;;  %v5011_v5 = vld [vmem:[#allocation5 + $0xb84] sm:$0xf0]  ;;  %v63_v8 = vld [vmem:[#allocation2 + $0x18] sm:$0xff]  ;;  %v4189_v12 = vor.u32 %v4915_v63, %v4188_v62  ;;  %s5148_s7 = smov 48  }
  0x2e   :  { %2409 = vmatpush.bf16.msra.mxu0 %v3109_v31  ;;  %v4572_v4 = vld [vmem:[#allocation5 + $0xb70] sm:$0xf]  ;;  %v61_v6 = vld [vmem:[#allocation2 + $0x8] sm:$0xff]  ;;  %v71_v11 = vld [vmem:[#allocation2 + $0x58] sm:$0xff]  ;;  %v4381_v13 = vor.u32 %v4963_v3, %v4380_v0 }
  0x2f   :  { %2423 = vmatpush.bf16.msra.mxu1 %v3301_v35  ;;  %v69_v7 = vld [vmem:[#allocation2 + $0x48] sm:$0xff]  ;;  %v3972_v14 = vld [vmem:[#allocation5 + $0x6c0] sm:$0xf]  ;;  %v4861_v15 = vld [vmem:[#allocation5 + $0x6d4] sm:$0xf0]  ;;  %v5186_v17 = vpack.c.bf16 %v71_v11, %v63_v8  ;;  %v4573_v18 = vor.u32 %v5011_v5, %v4572_v4 }
  0x30   :  { %2437 = vmatpush.bf16.msra.mxu2 %v3493_v36  ;;  %v5184_v10 = vpack.c.bf16 %v69_v7, %v61_v6  ;;  %v4164_v16 = vld [vmem:[#allocation5 + $0x840] sm:$0xf]  ;;  %v4909_v19 = vld [vmem:[#allocation5 + $0x854] sm:$0xf0]  ;;  %v3973_v24 = vor.u32 %v4861_v15, %v3972_v14  ;;  %v3948_v27 = vld [vmem:[#allocation5 + $0x690] sm:$0xf] }
  0x31   :  { %2451 = vmatpush.bf16.msra.mxu3 %v3685_v39  ;;  %2410 = vmatmul.bf16.vlgmr.msra.gmra.mxu0 %v5178_v58  ;;  %v4356_v20 = vld [vmem:[#allocation5 + $0x9c0] sm:$0xf]  ;;  %v4957_v21 = vld [vmem:[#allocation5 + $0x9d4] sm:$0xf0]  ;;  %v4165_v25 = vor.u32 %v4909_v19, %v4164_v16  ;;  %v4855_v28 = vld [vmem:[#allocation5 + $0x6a4] sm:$0xf0] }
  0x32   :  { %2458 = vmatpush.bf16.msrb.mxu0 %v4045_v40  ;;  %2424 = vmatmul.bf16.vlgmr.msra.gmra.mxu1 %v5184_v10  ;;  %v4548_v22 = vld [vmem:[#allocation5 + $0xb40] sm:$0xf]  ;;  %v5005_v23 = vld [vmem:[#allocation5 + $0xb54] sm:$0xf0]  ;;  %v4357_v26 = vor.u32 %v4957_v21, %v4356_v20  ;;  %v4140_v29 = vld [vmem:[#allocation5 + $0x810] sm:$0xf]  ;;  %v3949_v36 = vor.u32 %v4855_v28, %v3948_v27 }
  0x33   :  { %2472 = vmatpush.bf16.msrb.mxu1 %v4237_v43  ;;  %2438 = vmatmul.bf16.vlgmr.msra.gmra.mxu2 %v5180_v1  ;;  %v4549_v30 = vor.u32 %v5005_v23, %v4548_v22  ;;  %v4903_v31 = vld [vmem:[#allocation5 + $0x824] sm:$0xf0]  ;;  %v4332_v32 = vld [vmem:[#allocation5 + $0x990] sm:$0xf]  ;;  %v3924_v39 = vld [vmem:[#allocation5 + $0x660] sm:$0xf] }
  0x34   :  { %2486 = vmatpush.bf16.msrb.mxu2 %v4429_v44  ;;  %2452 = vmatmul.bf16.vlgmr.msra.gmra.mxu3 %v5186_v17  ;;  %v4951_v33 = vld [vmem:[#allocation5 + $0x9a4] sm:$0xf0]  ;;  %v4524_v34 = vld [vmem:[#allocation5 + $0xb10] sm:$0xf]  ;;  %v4141_v37 = vor.u32 %v4903_v31, %v4140_v29  ;;  %v4849_v40 = vld [vmem:[#allocation5 + $0x674] sm:$0xf0] }
  0x35   :  { %2500 = vmatpush.bf16.msrb.mxu3 %v4621_v48  ;;  %v4999_v35 = vld [vmem:[#allocation5 + $0xb24] sm:$0xf0]  ;;  %v4333_v38 = vor.u32 %v4951_v33, %v4332_v32  ;;  %v4116_v41 = vld [vmem:[#allocation5 + $0x7e0] sm:$0xf]  ;;  %v4897_v43 = vld [vmem:[#allocation5 + $0x7f4] sm:$0xf0]  ;;  %v3925_v48 = vor.u32 %v4849_v40, %v3924_v39 }
  0x36   :  { %2459 = vmatpush.bf16.msrb.mxu0 %v4021_v55  ;;  %v4525_v42 = vor.u32 %v4999_v35, %v4524_v34  ;;  %v4308_v44 = vld [vmem:[#allocation5 + $0x960] sm:$0xf]  ;;  %v4945_v45 = vld [vmem:[#allocation5 + $0x974] sm:$0xf0]  ;;  %v3900_v49 = vld [vmem:[#allocation5 + $0x630] sm:$0xf]  ;;  %v4117_v50 = vor.u32 %v4897_v43, %v4116_v41 }
  0x37   :  { %2473 = vmatpush.bf16.msrb.mxu1 %v4213_v60  ;;  %v4500_v46 = vld [vmem:[#allocation5 + $0xae0] sm:$0xf]  ;;  %v4993_v47 = vld [vmem:[#allocation5 + $0xaf4] sm:$0xf0]  ;;  %v4309_v51 = vor.u32 %v4945_v45, %v4308_v44  ;;  %v4843_v52 = vld [vmem:[#allocation5 + $0x644] sm:$0xf0] }
  0x38   :  { %2487 = vmatpush.bf16.msrb.mxu2 %v4405_v61  ;;  %v4092_v53 = vld [vmem:[#allocation5 + $0x7b0] sm:$0xf]  ;;  %v4891_v54 = vld [vmem:[#allocation5 + $0x7c4] sm:$0xf0]  ;;  %v4501_v55 = vor.u32 %v4993_v47, %v4500_v46  ;;  %v3876_v61 = vld [vmem:[#allocation5 + $0x600] sm:$0xf]  ;;  %v3901_v63 = vor.u32 %v4843_v52, %v3900_v49 }
  0x39   :  { %2501 = vmatpush.bf16.msrb.mxu3 %v4597_v2  ;;  %v4284_v56 = vld [vmem:[#allocation5 + $0x930] sm:$0xf]  ;;  %v4939_v57 = vld [vmem:[#allocation5 + $0x944] sm:$0xf0]  ;;  %v4837_v62 = vld [vmem:[#allocation5 + $0x614] sm:$0xf0]  ;;  %v4093_v5 = vor.u32 %v4891_v54, %v4092_v53 }
  0x3a   :  { %2460 = vmatpush.bf16.msrb.mxu0 %v3997_v9  ;;  %v4476_v59 = vld [vmem:[#allocation5 + $0xab0] sm:$0xf]  ;;  %v4987_v60 = vld [vmem:[#allocation5 + $0xac4] sm:$0xf0]  ;;  %v4068_v0 = vld [vmem:[#allocation5 + $0x780] sm:$0xf]  ;;  %v4285_v6 = vor.u32 %v4939_v57, %v4284_v56  ;;  %v3877_v19 = vor.u32 %v4837_v62, %v3876_v61 }
  0x3b   :  { %2474 = vmatpush.bf16.msrb.mxu1 %v4189_v12  ;;  %v4885_v2 = vld [vmem:[#allocation5 + $0x794] sm:$0xf0]  ;;  %v4260_v3 = vld [vmem:[#allocation5 + $0x900] sm:$0xf]  ;;  %v4684_v9 = vld [vmem:[#allocation5 + $0x154] sm:$0xf]  ;;  %v4477_v11 = vor.u32 %v4987_v60, %v4476_v59 }
  0x3c   :  { %2488 = vmatpush.bf16.msrb.mxu2 %v4381_v13  ;;  %v4933_v4 = vld [vmem:[#allocation5 + $0x914] sm:$0xf0]  ;;  %v4452_v7 = vld [vmem:[#allocation5 + $0xa80] sm:$0xf]  ;;  %v3278_v12 = vld [vmem:[#allocation5 + $0x168] sm:$0xf0]  ;;  %v4069_v23 = vor.u32 %v4885_v2, %v4068_v0 }
  0x3d   :  { %2502 = vmatpush.bf16.msrb.mxu3 %v4573_v18  ;;  %v4981_v8 = vld [vmem:[#allocation5 + $0xa94] sm:$0xf0]  ;;  %v4732_v13 = vld [vmem:[#allocation5 + $0x2d4] sm:$0xf]  ;;  %v3470_v14 = vld [vmem:[#allocation5 + $0x2e8] sm:$0xf0]  ;;  %v3281_v29 = vor.u32 %v4684_v9, %v3278_v12 }
  0x3e   :  { %2461 = vmatpush.bf16.msrb.mxu0 %v3973_v24  ;;  %v4780_v15 = vld [vmem:[#allocation5 + $0x454] sm:$0xf]  ;;  %v3662_v16 = vld [vmem:[#allocation5 + $0x468] sm:$0xf0]  ;;  %v64_v21 = vld [vmem:[#allocation2 + $0x20] sm:$0xff]  ;;  %v4261_v24 = vor.u32 %v4933_v4, %v4260_v3  ;;  %v4453_v28 = vor.u32 %v4981_v8, %v4452_v7  ;;  %v3473_v33 = vor.u32 %v4732_v13, %v3470_v14 }
  0x3f   :  { %2475 = vmatpush.bf16.msrb.mxu1 %v4165_v25  ;;  %v4828_v18 = vld [vmem:[#allocation5 + $0x5d4] sm:$0xf]  ;;  %v3854_v20 = vld [vmem:[#allocation5 + $0x5e8] sm:$0xf0]  ;;  %v72_v22 = vld [vmem:[#allocation2 + $0x60] sm:$0xff]  ;;  %v3665_v34 = vor.u32 %v4780_v15, %v3662_v16 }
  0x40   :  { %2489 = vmatpush.bf16.msrb.mxu2 %v4357_v26  ;;  %v66_v25 = vld [vmem:[#allocation2 + $0x30] sm:$0xff]  ;;  %v65_v27 = vld [vmem:[#allocation2 + $0x28] sm:$0xff]  ;;  %v67_v31 = vld [vmem:[#allocation2 + $0x38] sm:$0xff]  ;;  %v5190_v39 = vpack.c.bf16 %v72_v22, %v64_v21 }
  0x41   :  { %2503 = vmatpush.bf16.msrb.mxu3 %v4549_v30  ;;  %v74_v26 = vld [vmem:[#allocation2 + $0x70] sm:$0xff]  ;;  %v73_v30 = vld [vmem:[#allocation2 + $0x68] sm:$0xff]  ;;  %v75_v32 = vld [vmem:[#allocation2 + $0x78] sm:$0xff] }
  0x42   :  { %2462 = vmatpush.bf16.msrb.mxu0 %v3949_v36  ;;  %v4678_v35 = vld [vmem:[#allocation5 + $0x124] sm:$0xf]  ;;  %v3254_v36 = vld [vmem:[#allocation5 + $0x138] sm:$0xf0]  ;;  %v5192_v43 = vpack.c.bf16 %v74_v26, %v66_v25  ;;  %v5194_v44 = vpack.c.bf16 %v73_v30, %v65_v27  ;;  %v5196_v47 = vpack.c.bf16 %v75_v32, %v67_v31  ;;  %v3230_v52 = vld [vmem:[#allocation5 + $0x108] sm:$0xf0] }
  0x43   :  { %2476 = vmatpush.bf16.msrb.mxu1 %v4141_v37  ;;  %v4726_v37 = vld [vmem:[#allocation5 + $0x2a4] sm:$0xf]  ;;  %v3446_v40 = vld [vmem:[#allocation5 + $0x2b8] sm:$0xf0]  ;;  %v4720_v53 = vld [vmem:[#allocation5 + $0x274] sm:$0xf] }
  0x44   :  { %2490 = vmatpush.bf16.msrb.mxu2 %v4333_v38  ;;  %v3857_v38 = vor.u32 %v4828_v18, %v3854_v20  ;;  %v4774_v41 = vld [vmem:[#allocation5 + $0x424] sm:$0xf]  ;;  %v3830_v46 = vld [vmem:[#allocation5 + $0x5b8] sm:$0xf0]  ;;  %v3449_v49 = vor.u32 %v4726_v37, %v3446_v40  ;;  %v4768_v56 = vld [vmem:[#allocation5 + $0x3f4] sm:$0xf] }
  0x45   :  { %2504 = vmatpush.bf16.msrb.mxu3 %v4525_v42  ;;  %v3638_v42 = vld [vmem:[#allocation5 + $0x438] sm:$0xf0]  ;;  %v4822_v45 = vld [vmem:[#allocation5 + $0x5a4] sm:$0xf]  ;;  %v3614_v57 = vld [vmem:[#allocation5 + $0x408] sm:$0xf0] }
  0x46   :  { %2463 = vmatpush.bf16.msrb.mxu0 %v3925_v48  ;;  %v3257_v48 = vor.u32 %v4678_v35, %v3254_v36  ;;  %v3833_v54 = vor.u32 %v4822_v45, %v3830_v46  ;;  %v4816_v59 = vld [vmem:[#allocation5 + $0x574] sm:$0xf]  ;;  %v3806_v60 = vld [vmem:[#allocation5 + $0x588] sm:$0xf0]  ;;  %v4666_v0 = vld [vmem:[#allocation5 + $0xc4] sm:$0xf] }
  0x47   :  { %2477 = vmatpush.bf16.msrb.mxu1 %v4117_v50  ;;  %v3641_v50 = vor.u32 %v4774_v41, %v3638_v42  ;;  %v3206_v2 = vld [vmem:[#allocation5 + $0xd8] sm:$0xf0]  ;;  %v4714_v3 = vld [vmem:[#allocation5 + $0x244] sm:$0xf]  ;;  %v3809_v4 = vor.u32 %v4816_v59, %v3806_v60  ;;  %v4660_v14 = vld [vmem:[#allocation5 + $0x94] sm:$0xf] }
  0x48   :  { %2491 = vmatpush.bf16.msrb.mxu2 %v4309_v51  ;;  %v4672_v51 = vld [vmem:[#allocation5 + $0xf4] sm:$0xf]  ;;  %v3590_v7 = vld [vmem:[#allocation5 + $0x3d8] sm:$0xf0]  ;;  %v4810_v8 = vld [vmem:[#allocation5 + $0x544] sm:$0xf] }
  0x49   :  { %2505 = vmatpush.bf16.msrb.mxu3 %v4501_v55  ;;  %v3422_v55 = vld [vmem:[#allocation5 + $0x288] sm:$0xf0]  ;;  %v3233_v61 = vor.u32 %v4672_v51, %v3230_v52  ;;  %v3782_v9 = vld [vmem:[#allocation5 + $0x558] sm:$0xf0]  ;;  %v4708_v16 = vld [vmem:[#allocation5 + $0x214] sm:$0xf] }
  0x4a   :  { %2464 = vmatpush.bf16.msrb.mxu0 %v3901_v63  ;;  %v3425_v62 = vor.u32 %v4720_v53, %v3422_v55  ;;  %v3617_v63 = vor.u32 %v4768_v56, %v3614_v57  ;;  %v3182_v15 = vld [vmem:[#allocation5 + $0xa8] sm:$0xf0]  ;;  %v3785_v18 = vor.u32 %v4810_v8, %v3782_v9  ;;  %v4756_v20 = vld [vmem:[#allocation5 + $0x394] sm:$0xf]  ;;  %v4654_v27 = vld [vmem:[#allocation5 + $0x64] sm:$0xf] }
  0x4b   :  { %2478 = vmatpush.bf16.msrb.mxu1 %v4093_v5  ;;  %v3398_v5 = vld [vmem:[#allocation5 + $0x258] sm:$0xf0]  ;;  %v3566_v21 = vld [vmem:[#allocation5 + $0x3a8] sm:$0xf0]  ;;  %v4804_v22 = vld [vmem:[#allocation5 + $0x514] sm:$0xf] }
  0x4c   :  { %2492 = vmatpush.bf16.msrb.mxu2 %v4285_v6  ;;  %v4762_v6 = vld [vmem:[#allocation5 + $0x3c4] sm:$0xf]  ;;  %v3401_v12 = vor.u32 %v4714_v3, %v3398_v5  ;;  %v3569_v26 = vor.u32 %v4756_v20, %v3566_v21  ;;  %v3350_v31 = vld [vmem:[#allocation5 + $0x1f8] sm:$0xf0]  ;;  %v4648_v40 = vld [vmem:[#allocation5 + $0x34] sm:$0xf] }
  0x4d   :  { %2506 = vmatpush.bf16.msrb.mxu3 %v4477_v11  ;;  %v3209_v11 = vor.u32 %v4666_v0, %v3206_v2  ;;  %v3593_v13 = vor.u32 %v4762_v6, %v3590_v7  ;;  %v4750_v32 = vld [vmem:[#allocation5 + $0x364] sm:$0xf]  ;;  %v3734_v35 = vld [vmem:[#allocation5 + $0x4f8] sm:$0xf0]  ;;  %v3134_v41 = vld [vmem:[#allocation5 + $0x48] sm:$0xf0] }
  0x4e   :  { %2465 = vmatpush.bf16.msrb.mxu0 %v3877_v19  ;;  %v3374_v19 = vld [vmem:[#allocation5 + $0x228] sm:$0xf0]  ;;  %v4696_v42 = vld [vmem:[#allocation5 + $0x1b4] sm:$0xf]  ;;  %v3137_v52 = vor.u32 %v4648_v40, %v3134_v41  ;;  %v4642_v53 = vld [vmem:[#allocation5 + $0x4] sm:$0xf] }
  0x4f   :  { %2479 = vmatpush.bf16.msrb.mxu1 %v4069_v23  ;;  %v3758_v23 = vld [vmem:[#allocation5 + $0x528] sm:$0xf0]  ;;  %v3377_v25 = vor.u32 %v4708_v16, %v3374_v19  ;;  %v4690_v57 = vld [vmem:[#allocation5 + $0x184] sm:$0xf]  ;;  %v3302_v59 = vld [vmem:[#allocation5 + $0x198] sm:$0xf0] }
  0x50   :  { %2493 = vmatpush.bf16.msrb.mxu2 %v4261_v24  ;;  %v3185_v24 = vor.u32 %v4660_v14, %v3182_v15  ;;  %v3761_v30 = vor.u32 %v4804_v22, %v3758_v23  ;;  %v3326_v46 = vld [vmem:[#allocation5 + $0x1c8] sm:$0xf0]  ;;  %v4738_v60 = vld [vmem:[#allocation5 + $0x304] sm:$0xf]  ;;  %v3686_v0 = vld [vmem:[#allocation5 + $0x498] sm:$0xf0]  ;;  %v3305_v9 = vor.u32 %v4690_v57, %v3302_v59 }
  0x51   :  { %2507 = vmatpush.bf16.msrb.mxu3 %v4453_v28  ;;  %2466 = vmatmul.bf16.vlgmr.msrb.gmra.mxu0 %v5190_v39  ;;  %v3158_v28 = vld [vmem:[#allocation5 + $0x78] sm:$0xf0]  ;;  %v3710_v51 = vld [vmem:[#allocation5 + $0x4c8] sm:$0xf0]  ;;  %v3329_v55 = vor.u32 %v4696_v42, %v3326_v46  ;;  %v4876_v2 = vld [vmem:[#allocation5 + $0x754] sm:$0xf] }
  0x52   :  { %2514 = vmatpush.bf16.msra.mxu0 %v3281_v29  ;;  %2480 = vmatmul.bf16.vlgmr.msrb.gmra.mxu1 %v5194_v44  ;;  %v4702_v29 = vld [vmem:[#allocation5 + $0x1e4] sm:$0xf]  ;;  %v3161_v36 = vor.u32 %v4654_v27, %v3158_v28  ;;  %v4046_v3 = vld [vmem:[#allocation5 + $0x768] sm:$0xf0]  ;;  %v4972_v7 = vld [vmem:[#allocation5 + $0xa54] sm:$0xf] }
  0x53   :  { %2528 = vmatpush.bf16.msra.mxu1 %v3473_v33  ;;  %2494 = vmatmul.bf16.vlgmr.msrb.gmra.mxu2 %v5192_v43  ;;  %v3542_v33 = vld [vmem:[#allocation5 + $0x378] sm:$0xf0]  ;;  %v3353_v37 = vor.u32 %v4702_v29, %v3350_v31  ;;  %v4238_v6 = vld [vmem:[#allocation5 + $0x8e8] sm:$0xf0]  ;;  %v4049_v15 = vor.u32 %v4876_v2, %v4046_v3  ;;  %v4870_v19 = vld [vmem:[#allocation5 + $0x724] sm:$0xf] }
  0x54   :  { %2542 = vmatpush.bf16.msra.mxu2 %v3665_v34  ;;  %2508 = vmatmul.bf16.vlgmr.msrb.gmra.mxu3 %v5196_v47  ;;  %v4798_v34 = vld [vmem:[#allocation5 + $0x4e4] sm:$0xf]  ;;  %v4430_v8 = vld [vmem:[#allocation5 + $0xa68] sm:$0xf0]  ;;  %v4022_v20 = vld [vmem:[#allocation5 + $0x738] sm:$0xf0] }
  0x55   :  { %2556 = vmatpush.bf16.msra.mxu3 %v3857_v38  ;;  %v3545_v38 = vor.u32 %v4750_v32, %v3542_v33  ;;  %v3737_v45 = vor.u32 %v4798_v34, %v3734_v35  ;;  %v4918_v21 = vld [vmem:[#allocation5 + $0x8a4] sm:$0xf]  ;;  %v4214_v23 = vld [vmem:[#allocation5 + $0x8b8] sm:$0xf0]  ;;  %v4025_v28 = vor.u32 %v4870_v19, %v4022_v20  ;;  %v4864_v31 = vld [vmem:[#allocation5 + $0x6f4] sm:$0xf] }
  0x56   :  { %2515 = vmatpush.bf16.msra.mxu0 %v3257_v48  ;;  %v4744_v48 = vld [vmem:[#allocation5 + $0x334] sm:$0xf]  ;;  %v4598_v27 = vld [vmem:[#allocation5 + $0xbb8] sm:$0xf0]  ;;  %v4217_v29 = vor.u32 %v4918_v21, %v4214_v23  ;;  %v3998_v32 = vld [vmem:[#allocation5 + $0x708] sm:$0xf0] }
  0x57   :  { %2529 = vmatpush.bf16.msra.mxu1 %v3449_v49  ;;  %v3518_v49 = vld [vmem:[#allocation5 + $0x348] sm:$0xf0]  ;;  %v4912_v33 = vld [vmem:[#allocation5 + $0x874] sm:$0xf]  ;;  %v4001_v41 = vor.u32 %v4864_v31, %v3998_v32  ;;  %v4858_v46 = vld [vmem:[#allocation5 + $0x6c4] sm:$0xf] }
  0x58   :  { %2543 = vmatpush.bf16.msra.mxu2 %v3641_v50  ;;  %v4792_v50 = vld [vmem:[#allocation5 + $0x4b4] sm:$0xf]  ;;  %v3521_v56 = vor.u32 %v4744_v48, %v3518_v49  ;;  %v4190_v35 = vld [vmem:[#allocation5 + $0x888] sm:$0xf0]  ;;  %v3974_v48 = vld [vmem:[#allocation5 + $0x6d8] sm:$0xf0] }
  0x59   :  { %2557 = vmatpush.bf16.msra.mxu3 %v3833_v54  ;;  %v3110_v54 = vld [vmem:[#allocation5 + $0x18] sm:$0xf0]  ;;  %v4574_v40 = vld [vmem:[#allocation5 + $0xb88] sm:$0xf0]  ;;  %v4193_v42 = vor.u32 %v4912_v33, %v4190_v35  ;;  %v4906_v49 = vld [vmem:[#allocation5 + $0x844] sm:$0xf] }
  0x5a   :  { %2516 = vmatpush.bf16.msra.mxu0 %v3233_v61  ;;  %v3713_v61 = vor.u32 %v4792_v50, %v3710_v51  ;;  %v3113_v5 = vor.u32 %v4642_v53, %v3110_v54  ;;  %v4166_v51 = vld [vmem:[#allocation5 + $0x858] sm:$0xf0]  ;;  %v5002_v54 = vld [vmem:[#allocation5 + $0xb44] sm:$0xf]  ;;  %v4948_v2 = vld [vmem:[#allocation5 + $0x994] sm:$0xf] }
  0x5b   :  { %2530 = vmatpush.bf16.msra.mxu1 %v3425_v62  ;;  %v3494_v62 = vld [vmem:[#allocation5 + $0x318] sm:$0xf0]  ;;  %v4169_v57 = vor.u32 %v4906_v49, %v4166_v51  ;;  %v4334_v3 = vld [vmem:[#allocation5 + $0x9a8] sm:$0xf0]  ;;  %v4840_v23 = vld [vmem:[#allocation5 + $0x634] sm:$0xf] }
  0x5c   :  { %2544 = vmatpush.bf16.msra.mxu2 %v3617_v63  ;;  %v4786_v63 = vld [vmem:[#allocation5 + $0x484] sm:$0xf]  ;;  %v4358_v53 = vld [vmem:[#allocation5 + $0x9d8] sm:$0xf0]  ;;  %v4478_v31 = vld [vmem:[#allocation5 + $0xac8] sm:$0xf0] }
  0x5d   :  { %2558 = vmatpush.bf16.msra.mxu3 %v3809_v4  ;;  %v4924_v4 = vld [vmem:[#allocation5 + $0x8d4] sm:$0xf]  ;;  %v3689_v14 = vor.u32 %v4786_v63, %v3686_v0  ;;  %v4142_v0 = vld [vmem:[#allocation5 + $0x828] sm:$0xf0]  ;;  %v4502_v19 = vld [vmem:[#allocation5 + $0xaf8] sm:$0xf0] }
  0x5e   :  { %2517 = vmatpush.bf16.msra.mxu0 %v3209_v11  ;;  %v3497_v11 = vor.u32 %v4738_v60, %v3494_v62  ;;  %v4241_v16 = vor.u32 %v4924_v4, %v4238_v6  ;;  %v4852_v60 = vld [vmem:[#allocation5 + $0x694] sm:$0xf]  ;;  %v4834_v33 = vld [vmem:[#allocation5 + $0x604] sm:$0xf]  ;;  %v4688_v49 = vld [vmem:[#allocation5 + $0x16c] sm:$0xf0] }
  0x5f   :  { %2531 = vmatpush.bf16.msra.mxu1 %v3401_v12  ;;  %v5020_v12 = vld [vmem:[#allocation5 + $0xbd4] sm:$0xf] }
  0x60   :  { %2545 = vmatpush.bf16.msra.mxu2 %v3593_v13  ;;  %v4622_v13 = vld [vmem:[#allocation5 + $0xbe8] sm:$0xf0]  ;;  %v4900_v62 = vld [vmem:[#allocation5 + $0x814] sm:$0xf] }
  0x61   :  { %2559 = vmatpush.bf16.msra.mxu3 %v3785_v18  ;;  %v4433_v18 = vor.u32 %v4972_v7, %v4430_v8  ;;  %v4625_v22 = vor.u32 %v5020_v12, %v4622_v13  ;;  %v4996_v4 = vld [vmem:[#allocation5 + $0xb14] sm:$0xf]  ;;  %v4145_v7 = vor.u32 %v4900_v62, %v4142_v0  ;;  %v4337_v8 = vor.u32 %v4948_v2, %v4334_v3  ;;  %v4894_v12 = vld [vmem:[#allocation5 + $0x7e4] sm:$0xf]  ;;  %v3260_v0 = vld [vmem:[#allocation5 + $0x128] sm:$0xf] }
  0x62   :  { %2518 = vmatpush.bf16.msra.mxu0 %v3185_v24  ;;  %v4966_v24 = vld [vmem:[#allocation5 + $0xa24] sm:$0xf]  ;;  %v4682_v2 = vld [vmem:[#allocation5 + $0x13c] sm:$0xf0]  ;;  %v3452_v3 = vld [vmem:[#allocation5 + $0x2a8] sm:$0xf] }
  0x63   :  { %2532 = vmatpush.bf16.msra.mxu1 %v3377_v25  ;;  %v4406_v25 = vld [vmem:[#allocation5 + $0xa38] sm:$0xf0] }
  0x64   :  { %2546 = vmatpush.bf16.msra.mxu2 %v3569_v26  ;;  %v5014_v26 = vld [vmem:[#allocation5 + $0xba4] sm:$0xf] }
  0x65   :  { %2560 = vmatpush.bf16.msra.mxu3 %v3761_v30  ;;  %v4409_v30 = vor.u32 %v4966_v24, %v4406_v25  ;;  %v4601_v34 = vor.u32 %v5014_v26, %v4598_v27  ;;  %v3902_v24 = vld [vmem:[#allocation5 + $0x648] sm:$0xf0]  ;;  %v4888_v25 = vld [vmem:[#allocation5 + $0x7b4] sm:$0xf] }
  0x66   :  { %2519 = vmatpush.bf16.msra.mxu0 %v3161_v36  ;;  %v4960_v36 = vld [vmem:[#allocation5 + $0x9f4] sm:$0xf]  ;;  %v4094_v27 = vld [vmem:[#allocation5 + $0x7c8] sm:$0xf0]  ;;  %v3905_v32 = vor.u32 %v4840_v23, %v3902_v24  ;;  %v4820_v23 = vld [vmem:[#allocation5 + $0x58c] sm:$0xf0] }
  0x67   :  { %2533 = vmatpush.bf16.msra.mxu1 %v3353_v37  ;;  %v4382_v37 = vld [vmem:[#allocation5 + $0xa08] sm:$0xf0]  ;;  %v4097_v35 = vor.u32 %v4888_v25, %v4094_v27  ;;  %v3212_v27 = vld [vmem:[#allocation5 + $0xc8] sm:$0xf] }
  0x68   :  { %2547 = vmatpush.bf16.msra.mxu2 %v3545_v38  ;;  %v5008_v38 = vld [vmem:[#allocation5 + $0xb74] sm:$0xf] }
  0x69   :  { %2561 = vmatpush.bf16.msra.mxu3 %v3737_v45  ;;  %v4385_v45 = vor.u32 %v4960_v36, %v4382_v37  ;;  %v4577_v50 = vor.u32 %v5008_v38, %v4574_v40  ;;  %v4882_v37 = vld [vmem:[#allocation5 + $0x784] sm:$0xf]  ;;  %v4070_v38 = vld [vmem:[#allocation5 + $0x798] sm:$0xf0] }
  0x6a   :  { %2520 = vmatpush.bf16.msra.mxu0 %v3137_v52  ;;  %v4954_v52 = vld [vmem:[#allocation5 + $0x9c4] sm:$0xf] }
  0x6b   :  { %2534 = vmatpush.bf16.msra.mxu1 %v3329_v55  ;;  %v4550_v55 = vld [vmem:[#allocation5 + $0xb58] sm:$0xf0]  ;;  %v4361_v59 = vor.u32 %v4954_v52, %v4358_v53  ;;  %v4930_v40 = vld [vmem:[#allocation5 + $0x904] sm:$0xf]  ;;  %v4736_v52 = vld [vmem:[#allocation5 + $0x2ec] sm:$0xf0] }
  0x6c   :  { %2548 = vmatpush.bf16.msra.mxu2 %v3521_v56  ;;  %v3977_v56 = vor.u32 %v4858_v46, %v3974_v48  ;;  %v4553_v63 = vor.u32 %v5002_v54, %v4550_v55  ;;  %v4454_v46 = vld [vmem:[#allocation5 + $0xa98] sm:$0xf0]  ;;  %v3284_v48 = vld [vmem:[#allocation5 + $0x158] sm:$0xf]  ;;  %v4784_v54 = vld [vmem:[#allocation5 + $0x46c] sm:$0xf0]  ;;  %v4073_v55 = vor.u32 %v4882_v37, %v4070_v38 }
  0x6d   :  { %2562 = vmatpush.bf16.msra.mxu3 %v3713_v61  ;;  %v3950_v61 = vld [vmem:[#allocation5 + $0x6a8] sm:$0xf0]  ;;  %v3668_v53 = vld [vmem:[#allocation5 + $0x458] sm:$0xf] }
  0x6e   :  { %2521 = vmatpush.bf16.msra.mxu0 %v3113_v5  ;;  %v4526_v5 = vld [vmem:[#allocation5 + $0xb28] sm:$0xf0]  ;;  %v3953_v6 = vor.u32 %v4852_v60, %v3950_v61  ;;  %v3285_v61 = vor.u32 %v4688_v49, %v3284_v48  ;;  %v3572_v48 = vld [vmem:[#allocation5 + $0x398] sm:$0xf]  ;;  %v4760_v49 = vld [vmem:[#allocation5 + $0x3ac] sm:$0xf0] }
  0x6f   :  { %2535 = vmatpush.bf16.msra.mxu1 %v3305_v9  ;;  %v4846_v9 = vld [vmem:[#allocation5 + $0x664] sm:$0xf]  ;;  %v4529_v13 = vor.u32 %v4996_v4, %v4526_v5  ;;  %v4730_v5 = vld [vmem:[#allocation5 + $0x2bc] sm:$0xf0] }
  0x70   :  { %2549 = vmatpush.bf16.msra.mxu2 %v3497_v11  ;;  %v3926_v11 = vld [vmem:[#allocation5 + $0x678] sm:$0xf0] }
  0x71   :  { %2563 = vmatpush.bf16.msra.mxu3 %v3689_v14  ;;  %2522 = vmatmul.bf16.vlgmr.msra.gmra.mxu0 %v5178_v58  ;;  %v4118_v14 = vld [vmem:[#allocation5 + $0x7f8] sm:$0xf0]  ;;  %v3929_v20 = vor.u32 %v4846_v9, %v3926_v11  ;;  %v4826_v9 = vld [vmem:[#allocation5 + $0x5bc] sm:$0xf0]  ;;  %v3261_v11 = vor.u32 %v4682_v2, %v3260_v0 }
  0x72   :  { %2570 = vmatpush.bf16.msrb.mxu0 %v4049_v15  ;;  %2536 = vmatmul.bf16.vlgmr.msra.gmra.mxu1 %v5184_v10  ;;  %v4942_v15 = vld [vmem:[#allocation5 + $0x964] sm:$0xf]  ;;  %v4121_v21 = vor.u32 %v4894_v12, %v4118_v14  ;;  %v3453_v12 = vor.u32 %v4730_v5, %v3452_v3  ;;  %v3236_v14 = vld [vmem:[#allocation5 + $0xf8] sm:$0xf]  ;;  %v4802_v0 = vld [vmem:[#allocation5 + $0x4fc] sm:$0xf0] }
  0x73   :  { %2584 = vmatpush.bf16.msrb.mxu1 %v4241_v16  ;;  %2550 = vmatmul.bf16.vlgmr.msra.gmra.mxu2 %v5180_v1  ;;  %v4310_v16 = vld [vmem:[#allocation5 + $0x978] sm:$0xf0]  ;;  %v3140_v5 = vld [vmem:[#allocation5 + $0x38] sm:$0xf] }
  0x74   :  { %2598 = vmatpush.bf16.msrb.mxu2 %v4433_v18  ;;  %2564 = vmatmul.bf16.vlgmr.msra.gmra.mxu3 %v5186_v17  ;;  %v4990_v18 = vld [vmem:[#allocation5 + $0xae4] sm:$0xf] }
  0x75   :  { %2612 = vmatpush.bf16.msrb.mxu3 %v4625_v22  ;;  %v4313_v22 = vor.u32 %v4942_v15, %v4310_v16  ;;  %v4505_v26 = vor.u32 %v4990_v18, %v4502_v19  ;;  %v4676_v15 = vld [vmem:[#allocation5 + $0x10c] sm:$0xf0]  ;;  %v3428_v16 = vld [vmem:[#allocation5 + $0x278] sm:$0xf] }
  0x76   :  { %2571 = vmatpush.bf16.msrb.mxu0 %v4025_v28  ;;  %v4936_v28 = vld [vmem:[#allocation5 + $0x934] sm:$0xf]  ;;  %v4724_v19 = vld [vmem:[#allocation5 + $0x28c] sm:$0xf0]  ;;  %v3237_v24 = vor.u32 %v4676_v15, %v3236_v14 }
  0x77   :  { %2585 = vmatpush.bf16.msrb.mxu1 %v4217_v29  ;;  %v4286_v29 = vld [vmem:[#allocation5 + $0x948] sm:$0xf0]  ;;  %v3429_v25 = vor.u32 %v4724_v19, %v3428_v16  ;;  %v4796_v14 = vld [vmem:[#allocation5 + $0x4cc] sm:$0xf0]  ;;  %v3116_v16 = vld [vmem:[#allocation5 + $0x8] sm:$0xf] }
  0x78   :  { %2599 = vmatpush.bf16.msrb.mxu2 %v4409_v30  ;;  %v4984_v30 = vld [vmem:[#allocation5 + $0xab4] sm:$0xf]  ;;  %v4289_v36 = vor.u32 %v4936_v28, %v4286_v29  ;;  %v4670_v28 = vld [vmem:[#allocation5 + $0xdc] sm:$0xf0]  ;;  %v3404_v29 = vld [vmem:[#allocation5 + $0x248] sm:$0xf] }
  0x79   :  { %2613 = vmatpush.bf16.msrb.mxu3 %v4601_v34  ;;  %v3878_v34 = vld [vmem:[#allocation5 + $0x618] sm:$0xf0] }
  0x7a   :  { %2572 = vmatpush.bf16.msrb.mxu0 %v4001_v41  ;;  %v4481_v41 = vor.u32 %v4984_v30, %v4478_v31  ;;  %v3881_v51 = vor.u32 %v4834_v33, %v3878_v34  ;;  %v4718_v31 = vld [vmem:[#allocation5 + $0x25c] sm:$0xf0]  ;;  %v3788_v34 = vld [vmem:[#allocation5 + $0x548] sm:$0xf] }
  0x7b   :  { %2586 = vmatpush.bf16.msrb.mxu1 %v4193_v42  ;;  %v4262_v42 = vld [vmem:[#allocation5 + $0x918] sm:$0xf0]  ;;  %v4766_v33 = vld [vmem:[#allocation5 + $0x3dc] sm:$0xf0]  ;;  %v3405_v37 = vor.u32 %v4718_v31, %v3404_v29  ;;  %v4880_v29 = vld [vmem:[#allocation5 + $0x76c] sm:$0xf0] }
  0x7c   :  { %2600 = vmatpush.bf16.msrb.mxu2 %v4385_v45  ;;  %v4978_v45 = vld [vmem:[#allocation5 + $0xa84] sm:$0xf] }
  0x7d   :  { %2614 = vmatpush.bf16.msrb.mxu3 %v4577_v50  ;;  %v3476_v50 = vld [vmem:[#allocation5 + $0x2d8] sm:$0xf]  ;;  %v4457_v60 = vor.u32 %v4978_v45, %v4454_v46  ;;  %v4712_v46 = vld [vmem:[#allocation5 + $0x22c] sm:$0xf0] }
  0x7e   :  { %2573 = vmatpush.bf16.msrb.mxu0 %v3977_v56  ;;  %v4265_v56 = vor.u32 %v4930_v40, %v4262_v42  ;;  %v3477_v62 = vor.u32 %v4736_v52, %v3476_v50  ;;  %v3188_v40 = vld [vmem:[#allocation5 + $0x98] sm:$0xf] }
  0x7f   :  { %2587 = vmatpush.bf16.msrb.mxu1 %v4169_v57  ;;  %v3860_v57 = vld [vmem:[#allocation5 + $0x5d8] sm:$0xf] }
  0x80   :  { %2601 = vmatpush.bf16.msrb.mxu2 %v4361_v59  ;;  %v4832_v59 = vld [vmem:[#allocation5 + $0x5ec] sm:$0xf0]  ;;  %v3380_v42 = vld [vmem:[#allocation5 + $0x218] sm:$0xf] }
  0x81   :  { %2615 = vmatpush.bf16.msrb.mxu3 %v4553_v63  ;;  %v3669_v63 = vor.u32 %v4784_v54, %v3668_v53  ;;  %v3861_v4 = vor.u32 %v4832_v59, %v3860_v57  ;;  %v3764_v50 = vld [vmem:[#allocation5 + $0x518] sm:$0xf]  ;;  %v3381_v53 = vor.u32 %v4712_v46, %v3380_v42  ;;  %v3573_v54 = vor.u32 %v4760_v49, %v3572_v48  ;;  %v3356_v57 = vld [vmem:[#allocation5 + $0x1e8] sm:$0xf]  ;;  %v4874_v48 = vld [vmem:[#allocation5 + $0x73c] sm:$0xf0] }
  0x82   :  { %2574 = vmatpush.bf16.msrb.mxu0 %v3953_v6  ;;  %v3644_v6 = vld [vmem:[#allocation5 + $0x428] sm:$0xf] }
  0x83   :  { %2588 = vmatpush.bf16.msrb.mxu1 %v4145_v7  ;;  %v4778_v7 = vld [vmem:[#allocation5 + $0x43c] sm:$0xf0]  ;;  %v4028_v46 = vld [vmem:[#allocation5 + $0x728] sm:$0xf] }
  0x84   :  { %2602 = vmatpush.bf16.msrb.mxu2 %v4337_v8  ;;  %v3836_v8 = vld [vmem:[#allocation5 + $0x5a8] sm:$0xf] }
  0x85   :  { %2616 = vmatpush.bf16.msrb.mxu3 %v4529_v13  ;;  %v3645_v13 = vor.u32 %v4778_v7, %v3644_v6  ;;  %v3837_v18 = vor.u32 %v4826_v9, %v3836_v8  ;;  %v4652_v6 = vld [vmem:[#allocation5 + $0x4c] sm:$0xf0]  ;;  %v3332_v7 = vld [vmem:[#allocation5 + $0x1b8] sm:$0xf]  ;;  %v4220_v49 = vld [vmem:[#allocation5 + $0x8a8] sm:$0xf] }
  0x86   :  { %2575 = vmatpush.bf16.msrb.mxu0 %v3929_v20  ;;  %v3620_v20 = vld [vmem:[#allocation5 + $0x3f8] sm:$0xf]  ;;  %v4700_v9 = vld [vmem:[#allocation5 + $0x1cc] sm:$0xf0]  ;;  %v3141_v15 = vor.u32 %v4652_v6, %v3140_v5 }
  0x87   :  { %2589 = vmatpush.bf16.msrb.mxu1 %v4121_v21  ;;  %v4772_v21 = vld [vmem:[#allocation5 + $0x40c] sm:$0xf0]  ;;  %v3333_v19 = vor.u32 %v4700_v9, %v3332_v7  ;;  %v3980_v9 = vld [vmem:[#allocation5 + $0x6c8] sm:$0xf] }
  0x88   :  { %2603 = vmatpush.bf16.msrb.mxu2 %v4313_v22  ;;  %v3812_v22 = vld [vmem:[#allocation5 + $0x578] sm:$0xf]  ;;  %v5012_v5 = vld [vmem:[#allocation5 + $0xb8c] sm:$0xf0] }
  0x89   :  { %2617 = vmatpush.bf16.msrb.mxu3 %v4505_v26  ;;  %v3621_v26 = vor.u32 %v4772_v21, %v3620_v20  ;;  %v3813_v30 = vor.u32 %v4820_v23, %v3812_v22  ;;  %v3308_v21 = vld [vmem:[#allocation5 + $0x188] sm:$0xf]  ;;  %v4694_v22 = vld [vmem:[#allocation5 + $0x19c] sm:$0xf0] }
  0x8a   :  { %2576 = vmatpush.bf16.msrb.mxu0 %v3905_v32  ;;  %v3596_v32 = vld [vmem:[#allocation5 + $0x3c8] sm:$0xf] }
  0x8b   :  { %2590 = vmatpush.bf16.msrb.mxu1 %v4097_v35  ;;  %v4814_v35 = vld [vmem:[#allocation5 + $0x55c] sm:$0xf0]  ;;  %v3597_v38 = vor.u32 %v4766_v33, %v3596_v32  ;;  %v3500_v23 = vld [vmem:[#allocation5 + $0x308] sm:$0xf]  ;;  %v4928_v32 = vld [vmem:[#allocation5 + $0x8ec] sm:$0xf0] }
  0x8c   :  { %2604 = vmatpush.bf16.msrb.mxu2 %v4289_v36  ;;  %v3213_v36 = vor.u32 %v4670_v28, %v3212_v27  ;;  %v3789_v45 = vor.u32 %v4814_v35, %v3788_v34  ;;  %v4790_v27 = vld [vmem:[#allocation5 + $0x49c] sm:$0xf0]  ;;  %v4052_v28 = vld [vmem:[#allocation5 + $0x758] sm:$0xf]  ;;  %v4976_v34 = vld [vmem:[#allocation5 + $0xa6c] sm:$0xf0]  ;;  %v3309_v35 = vor.u32 %v4694_v22, %v3308_v21 }
  0x8d   :  { %2618 = vmatpush.bf16.msrb.mxu3 %v4481_v41  ;;  %v4664_v41 = vld [vmem:[#allocation5 + $0xac] sm:$0xf0]  ;;  %v4436_v33 = vld [vmem:[#allocation5 + $0xa58] sm:$0xf] }
  0x8e   :  { %2577 = vmatpush.bf16.msrb.mxu0 %v3881_v51  ;;  %v4808_v51 = vld [vmem:[#allocation5 + $0x52c] sm:$0xf0]  ;;  %v3189_v52 = vor.u32 %v4664_v41, %v3188_v40  ;;  %v4053_v41 = vor.u32 %v4880_v29, %v4052_v28  ;;  %v4340_v28 = vld [vmem:[#allocation5 + $0x998] sm:$0xf] }
  0x8f   :  { %2591 = vmatpush.bf16.msrb.mxu1 %v4073_v55  ;;  %v3164_v55 = vld [vmem:[#allocation5 + $0x68] sm:$0xf]  ;;  %v3765_v59 = vor.u32 %v4808_v51, %v3764_v50  ;;  %v4922_v51 = vld [vmem:[#allocation5 + $0x8bc] sm:$0xf0]  ;;  %v4952_v29 = vld [vmem:[#allocation5 + $0x9ac] sm:$0xf0] }
  0x90   :  { %2605 = vmatpush.bf16.msrb.mxu2 %v4265_v56  ;;  %v4658_v56 = vld [vmem:[#allocation5 + $0x7c] sm:$0xf0] }
  0x91   :  { %2619 = vmatpush.bf16.msrb.mxu3 %v4457_v60  ;;  %2578 = vmatmul.bf16.vlgmr.msrb.gmra.mxu0 %v5190_v39  ;;  %v4706_v60 = vld [vmem:[#allocation5 + $0x1fc] sm:$0xf0]  ;;  %v3165_v2 = vor.u32 %v4658_v56, %v3164_v55  ;;  %v4029_v56 = vor.u32 %v4874_v48, %v4028_v46  ;;  %v4508_v46 = vld [vmem:[#allocation5 + $0xae8] sm:$0xf] }
  0x92   :  { %2626 = vmatpush.bf16.msra.mxu0 %v3285_v61  ;;  %2592 = vmatmul.bf16.vlgmr.msrb.gmra.mxu1 %v5194_v44  ;;  %v3548_v61 = vld [vmem:[#allocation5 + $0x368] sm:$0xf]  ;;  %v3357_v3 = vor.u32 %v4706_v60, %v3356_v57  ;;  %v5018_v55 = vld [vmem:[#allocation5 + $0xbbc] sm:$0xf0]  ;;  %v4221_v57 = vor.u32 %v4922_v51, %v4220_v49  ;;  %v4004_v60 = vld [vmem:[#allocation5 + $0x6f8] sm:$0xf] }
  0x93   :  { %2640 = vmatpush.bf16.msra.mxu1 %v3477_v62  ;;  %2606 = vmatmul.bf16.vlgmr.msrb.gmra.mxu2 %v5192_v43  ;;  %v4754_v62 = vld [vmem:[#allocation5 + $0x37c] sm:$0xf0] }
  0x94   :  { %2654 = vmatpush.bf16.msra.mxu2 %v3669_v63  ;;  %2620 = vmatmul.bf16.vlgmr.msrb.gmra.mxu3 %v5196_v47  ;;  %v3740_v63 = vld [vmem:[#allocation5 + $0x4e8] sm:$0xf]  ;;  %v4994_v48 = vld [vmem:[#allocation5 + $0xafc] sm:$0xf0] }
  0x95   :  { %2668 = vmatpush.bf16.msra.mxu3 %v3861_v4  ;;  %v3549_v4 = vor.u32 %v4754_v62, %v3548_v61  ;;  %v3741_v8 = vor.u32 %v4802_v0, %v3740_v63  ;;  %v4868_v61 = vld [vmem:[#allocation5 + $0x70c] sm:$0xf0]  ;;  %v4196_v62 = vld [vmem:[#allocation5 + $0x878] sm:$0xf] }
  0x96   :  { %2627 = vmatpush.bf16.msra.mxu0 %v3261_v11  ;;  %v3524_v11 = vld [vmem:[#allocation5 + $0x338] sm:$0xf]  ;;  %v4916_v0 = vld [vmem:[#allocation5 + $0x88c] sm:$0xf0]  ;;  %v4005_v6 = vor.u32 %v4868_v61, %v4004_v60 }
  0x97   :  { %2641 = vmatpush.bf16.msra.mxu1 %v3453_v12  ;;  %v4748_v12 = vld [vmem:[#allocation5 + $0x34c] sm:$0xf0]  ;;  %v4197_v7 = vor.u32 %v4916_v0, %v4196_v62  ;;  %v4292_v60 = vld [vmem:[#allocation5 + $0x938] sm:$0xf] }
  0x98   :  { %2655 = vmatpush.bf16.msra.mxu2 %v3645_v13  ;;  %v3716_v13 = vld [vmem:[#allocation5 + $0x4b8] sm:$0xf]  ;;  %v3525_v20 = vor.u32 %v4748_v12, %v3524_v11  ;;  %v4862_v11 = vld [vmem:[#allocation5 + $0x6dc] sm:$0xf0]  ;;  %v4172_v12 = vld [vmem:[#allocation5 + $0x848] sm:$0xf] }
  0x99   :  { %2669 = vmatpush.bf16.msra.mxu3 %v3837_v18  ;;  %v4646_v18 = vld [vmem:[#allocation5 + $0x1c] sm:$0xf0]  ;;  %v4940_v61 = vld [vmem:[#allocation5 + $0x94c] sm:$0xf0] }
  0x9a   :  { %2628 = vmatpush.bf16.msra.mxu0 %v3237_v24  ;;  %v3717_v24 = vor.u32 %v4796_v14, %v3716_v13  ;;  %v3117_v31 = vor.u32 %v4646_v18, %v3116_v16  ;;  %v4910_v14 = vld [vmem:[#allocation5 + $0x85c] sm:$0xf0]  ;;  %v4556_v18 = vld [vmem:[#allocation5 + $0xb48] sm:$0xf]  ;;  %v4988_v0 = vld [vmem:[#allocation5 + $0xacc] sm:$0xf0] }
  0x9b   :  { %2642 = vmatpush.bf16.msra.mxu1 %v3429_v25  ;;  %v4742_v25 = vld [vmem:[#allocation5 + $0x31c] sm:$0xf0]  ;;  %v4173_v21 = vor.u32 %v4910_v14, %v4172_v12  ;;  %v4460_v14 = vld [vmem:[#allocation5 + $0xa88] sm:$0xf] }
  0x9c   :  { %2656 = vmatpush.bf16.msra.mxu2 %v3621_v26  ;;  %v3692_v26 = vld [vmem:[#allocation5 + $0x488] sm:$0xf]  ;;  %v4958_v16 = vld [vmem:[#allocation5 + $0x9dc] sm:$0xf0] }
  0x9d   :  { %2670 = vmatpush.bf16.msra.mxu3 %v3813_v30  ;;  %v4244_v30 = vld [vmem:[#allocation5 + $0x8d8] sm:$0xf]  ;;  %v3693_v40 = vor.u32 %v4790_v27, %v3692_v26  ;;  %v4904_v27 = vld [vmem:[#allocation5 + $0x82c] sm:$0xf0] }
  0x9e   :  { %2629 = vmatpush.bf16.msra.mxu0 %v3213_v36  ;;  %v3501_v36 = vor.u32 %v4742_v25, %v3500_v23  ;;  %v4245_v42 = vor.u32 %v4928_v32, %v4244_v30  ;;  %v3956_v23 = vld [vmem:[#allocation5 + $0x698] sm:$0xf] }
  0x9f   :  { %2643 = vmatpush.bf16.msra.mxu1 %v3405_v37  ;;  %v4628_v37 = vld [vmem:[#allocation5 + $0xbd8] sm:$0xf] }
  0xa0   :  { %2657 = vmatpush.bf16.msra.mxu2 %v3597_v38  ;;  %v5024_v38 = vld [vmem:[#allocation5 + $0xbec] sm:$0xf0]  ;;  %v4148_v25 = vld [vmem:[#allocation5 + $0x818] sm:$0xf] }
  0xa1   :  { %2671 = vmatpush.bf16.msra.mxu3 %v3789_v45  ;;  %v4437_v45 = vor.u32 %v4976_v34, %v4436_v33  ;;  %v4629_v50 = vor.u32 %v5024_v38, %v4628_v37  ;;  %v4532_v30 = vld [vmem:[#allocation5 + $0xb18] sm:$0xf]  ;;  %v3932_v33 = vld [vmem:[#allocation5 + $0x668] sm:$0xf]  ;;  %v4149_v34 = vor.u32 %v4904_v27, %v4148_v25  ;;  %v4898_v38 = vld [vmem:[#allocation5 + $0x7fc] sm:$0xf0] }
  0xa2   :  { %2630 = vmatpush.bf16.msra.mxu0 %v3189_v52  ;;  %v4412_v52 = vld [vmem:[#allocation5 + $0xa28] sm:$0xf]  ;;  %v4829_v27 = vld [vmem:[#allocation5 + $0x5dc] sm:$0xf] }
  0xa3   :  { %2644 = vmatpush.bf16.msra.mxu1 %v3381_v53  ;;  %v4970_v53 = vld [vmem:[#allocation5 + $0xa3c] sm:$0xf0]  ;;  %v4124_v37 = vld [vmem:[#allocation5 + $0x7e8] sm:$0xf] }
  0xa4   :  { %2658 = vmatpush.bf16.msra.mxu2 %v3573_v54  ;;  %v4604_v54 = vld [vmem:[#allocation5 + $0xba8] sm:$0xf]  ;;  %v4125_v51 = vor.u32 %v4898_v38, %v4124_v37  ;;  %v3262_v37 = vld [vmem:[#allocation5 + $0x140] sm:$0xf0]  ;;  %v4727_v38 = vld [vmem:[#allocation5 + $0x2ac] sm:$0xf] }
  0xa5   :  { %2672 = vmatpush.bf16.msra.mxu3 %v3765_v59  ;;  %v4413_v59 = vor.u32 %v4970_v53, %v4412_v52  ;;  %v4605_v63 = vor.u32 %v5018_v55, %v4604_v54  ;;  %v4844_v55 = vld [vmem:[#allocation5 + $0x64c] sm:$0xf0] }
  0xa6   :  { %2631 = vmatpush.bf16.msra.mxu0 %v3165_v2  ;;  %v4388_v2 = vld [vmem:[#allocation5 + $0x9f8] sm:$0xf] }
  0xa7   :  { %2645 = vmatpush.bf16.msra.mxu1 %v3357_v3  ;;  %v4964_v3 = vld [vmem:[#allocation5 + $0xa0c] sm:$0xf0] }
  0xa8   :  { %2659 = vmatpush.bf16.msra.mxu2 %v3549_v4  ;;  %v4580_v4 = vld [vmem:[#allocation5 + $0xb78] sm:$0xf] }
  0xa9   :  { %2673 = vmatpush.bf16.msra.mxu3 %v3741_v8  ;;  %v4389_v8 = vor.u32 %v4964_v3, %v4388_v2  ;;  %v4581_v13 = vor.u32 %v5012_v5, %v4580_v4  ;;  %v3884_v3 = vld [vmem:[#allocation5 + $0x608] sm:$0xf]  ;;  %v4838_v4 = vld [vmem:[#allocation5 + $0x61c] sm:$0xf0] }
  0xaa   :  { %2632 = vmatpush.bf16.msra.mxu0 %v3141_v15  ;;  %v4364_v15 = vld [vmem:[#allocation5 + $0x9c8] sm:$0xf] }
  0xab   :  { %2646 = vmatpush.bf16.msra.mxu1 %v3333_v19  ;;  %v5006_v19 = vld [vmem:[#allocation5 + $0xb5c] sm:$0xf0]  ;;  %v4365_v22 = vor.u32 %v4958_v16, %v4364_v15  ;;  %v4685_v16 = vld [vmem:[#allocation5 + $0x15c] sm:$0xf] }
  0xac   :  { %2660 = vmatpush.bf16.msra.mxu2 %v3525_v20  ;;  %v3981_v20 = vor.u32 %v4862_v11, %v3980_v9  ;;  %v4557_v26 = vor.u32 %v5006_v19, %v4556_v18  ;;  %v4268_v9 = vld [vmem:[#allocation5 + $0x908] sm:$0xf]  ;;  %v4982_v15 = vld [vmem:[#allocation5 + $0xa9c] sm:$0xf0]  ;;  %v3286_v18 = vld [vmem:[#allocation5 + $0x170] sm:$0xf0] }
  0xad   :  { %2674 = vmatpush.bf16.msra.mxu3 %v3717_v24  ;;  %v4856_v24 = vld [vmem:[#allocation5 + $0x6ac] sm:$0xf0]  ;;  %v4733_v19 = vld [vmem:[#allocation5 + $0x2dc] sm:$0xf] }
  0xae   :  { %2633 = vmatpush.bf16.msra.mxu0 %v3117_v31  ;;  %v5000_v31 = vld [vmem:[#allocation5 + $0xb2c] sm:$0xf0]  ;;  %v3957_v32 = vor.u32 %v4856_v24, %v3956_v23  ;;  %v2411_v54 = vpop.f32.mrf.mxu0  ;;  %v3670_v23 = vld [vmem:[#allocation5 + $0x470] sm:$0xf0] }
  0xaf   :  { %2647 = vmatpush.bf16.msra.mxu1 %v3309_v35  ;;  %v4341_v35 = vor.u32 %v4952_v29, %v4340_v28  ;;  %v2425_v62 = vpop.f32.mrf.mxu1  ;;  %v3862_v28 = vld [vmem:[#allocation5 + $0x5f0] sm:$0xf0] }
  0xb0   :  { %2661 = vmatpush.bf16.msra.mxu2 %v3501_v36  ;;  %v4850_v36 = vld [vmem:[#allocation5 + $0x67c] sm:$0xf0] }
  0xb1   :  { %2675 = vmatpush.bf16.msra.mxu3 %v3693_v40  ;;  %2634 = vmatmul.bf16.vlgmr.msra.gmra.mxu0 %v5178_v58  ;;  %v4533_v40 = vor.u32 %v5000_v31, %v4532_v30  ;;  %v3933_v49 = vor.u32 %v4850_v36, %v3932_v33  ;;  %v4461_v31 = vor.u32 %v4982_v15, %v4460_v14  ;;  %v4679_v36 = vld [vmem:[#allocation5 + $0x12c] sm:$0xf]  ;;  %v3406_v15 = vld [vmem:[#allocation5 + $0x260] sm:$0xf0] }
  0xb2   :  { %2682 = vmatpush.bf16.msrb.mxu0 %v4053_v41  ;;  %2648 = vmatmul.bf16.vlgmr.msra.gmra.mxu1 %v5184_v10  ;;  %v4316_v41 = vld [vmem:[#allocation5 + $0x968] sm:$0xf] }
  0xb3   :  { %2696 = vmatpush.bf16.msrb.mxu1 %v4245_v42  ;;  %2662 = vmatmul.bf16.vlgmr.msra.gmra.mxu2 %v5180_v1  ;;  %v4946_v42 = vld [vmem:[#allocation5 + $0x97c] sm:$0xf0] }
  0xb4   :  { %2710 = vmatpush.bf16.msrb.mxu2 %v4437_v45  ;;  %2676 = vmatmul.bf16.vlgmr.msra.gmra.mxu3 %v5186_v17  ;;  %v5214_v45 = vld [vmem:[#allocation7] sm:$0x3f]  ;;  %v4317_v52 = vor.u32 %v4946_v42, %v4316_v41  ;;  %v4775_v42 = vld [vmem:[#allocation5 + $0x42c] sm:$0xf] }
  0xb5   :  { %2724 = vmatpush.bf16.msrb.mxu3 %v4629_v50  ;;  %v3908_v50 = vld [vmem:[#allocation5 + $0x638] sm:$0xf]  ;;  %v470_v53 = vperm.slane %v5214_v45, 0  ;;  %v3454_v41 = vld [vmem:[#allocation5 + $0x2c0] sm:$0xf0] }
  0xb6   :  { %2683 = vmatpush.bf16.msrb.mxu0 %v4029_v56  ;;  %v4100_v56 = vld [vmem:[#allocation5 + $0x7b8] sm:$0xf]  ;;  %v3909_v2 = vor.u32 %v4844_v55, %v3908_v50  ;;  %v2439_v24 = vpop.f32.mrf.mxu2  ;;  %v3838_v50 = vld [vmem:[#allocation5 + $0x5c0] sm:$0xf0]  ;;  %v3457_v55 = vor.u32 %v4727_v38, %v3454_v41 }
  0xb7   :  { %2697 = vmatpush.bf16.msrb.mxu1 %v4221_v57  ;;  %v4509_v57 = vor.u32 %v4994_v48, %v4508_v46  ;;  %v2412_v11 = vadd.f32 %v2411_v54, %v470_v53  ;;  %v2453_v29 = vpop.f32.mrf.mxu3  ;;  %v3646_v46 = vld [vmem:[#allocation5 + $0x440] sm:$0xf0]  ;;  %v2427_v48 = vpop.f32.mrf.mxu1 }
  0xb8   :  { %2711 = vmatpush.bf16.msrb.mxu2 %v4413_v59  ;;  %v4892_v59 = vld [vmem:[#allocation5 + $0x7cc] sm:$0xf0] }
  0xb9   :  { %2725 = vmatpush.bf16.msrb.mxu3 %v4605_v63  ;;  %v4484_v63 = vld [vmem:[#allocation5 + $0xab8] sm:$0xf]  ;;  %v4101_v5 = vor.u32 %v4892_v59, %v4100_v56  ;;  %v2426_v30 = vadd.f32 %v2425_v62, %v2412_v11  ;;  %v3649_v56 = vor.u32 %v4775_v42, %v3646_v46  ;;  %v3238_v59 = vld [vmem:[#allocation5 + $0x110] sm:$0xf0]  ;;  %v4667_v11 = vld [vmem:[#allocation5 + $0xcc] sm:$0xf] }
  0xba   :  { %2684 = vmatpush.bf16.msrb.mxu0 %v4005_v6  ;;  %v4293_v6 = vor.u32 %v4940_v61, %v4292_v60  ;;  %v4485_v12 = vor.u32 %v4988_v0, %v4484_v63  ;;  %v4721_v60 = vld [vmem:[#allocation5 + $0x27c] sm:$0xf]  ;;  %v3430_v62 = vld [vmem:[#allocation5 + $0x290] sm:$0xf0] }
  0xbb   :  { %2698 = vmatpush.bf16.msrb.mxu1 %v4197_v7  ;;  %v4076_v7 = vld [vmem:[#allocation5 + $0x788] sm:$0xf]  ;;  %v4769_v63 = vld [vmem:[#allocation5 + $0x3fc] sm:$0xf]  ;;  %v3622_v0 = vld [vmem:[#allocation5 + $0x410] sm:$0xf0] }
  0xbc   :  { %2712 = vmatpush.bf16.msrb.mxu2 %v4389_v8  ;;  %v4886_v8 = vld [vmem:[#allocation5 + $0x79c] sm:$0xf0] }
  0xbd   :  { %2726 = vmatpush.bf16.msrb.mxu3 %v4581_v13  ;;  %v4934_v13 = vld [vmem:[#allocation5 + $0x91c] sm:$0xf0]  ;;  %v4077_v25 = vor.u32 %v4886_v8, %v4076_v7  ;;  %v3433_v7 = vor.u32 %v4721_v60, %v3430_v62  ;;  %v3625_v8 = vor.u32 %v4769_v63, %v3622_v0  ;;  %v4799_v60 = vld [vmem:[#allocation5 + $0x4ec] sm:$0xf] }
  0xbe   :  { %2685 = vmatpush.bf16.msrb.mxu0 %v3981_v20  ;;  %v3885_v20 = vor.u32 %v4838_v4, %v3884_v3  ;;  %v3814_v3 = vld [vmem:[#allocation5 + $0x590] sm:$0xf0] }
  0xbf   :  { %2699 = vmatpush.bf16.msrb.mxu1 %v4173_v21  ;;  %v3478_v21 = vld [vmem:[#allocation5 + $0x2f0] sm:$0xf0] }
  0xc0   :  { %2713 = vmatpush.bf16.msrb.mxu2 %v4365_v22  ;;  %v4781_v22 = vld [vmem:[#allocation5 + $0x45c] sm:$0xf]  ;;  %v3481_v33 = vor.u32 %v4733_v19, %v3478_v21  ;;  %v3790_v21 = vld [vmem:[#allocation5 + $0x560] sm:$0xf0] }
  0xc1   :  { %2727 = vmatpush.bf16.msrb.mxu3 %v4557_v26  ;;  %v4269_v26 = vor.u32 %v4934_v13, %v4268_v9  ;;  %v2455_v9 = vpop.f32.mrf.mxu3  ;;  %v4715_v13 = vld [vmem:[#allocation5 + $0x24c] sm:$0xf] }
  0xc2   :  { %2686 = vmatpush.bf16.msrb.mxu0 %v3957_v32  ;;  %v3289_v32 = vor.u32 %v4685_v16, %v3286_v18  ;;  %v4763_v16 = vld [vmem:[#allocation5 + $0x3cc] sm:$0xf]  ;;  %v3598_v18 = vld [vmem:[#allocation5 + $0x3e0] sm:$0xf0] }
  0xc3   :  { %2700 = vmatpush.bf16.msrb.mxu1 %v4149_v34  ;;  %v3673_v34 = vor.u32 %v4781_v22, %v3670_v23 }
  0xc4   :  { %2714 = vmatpush.bf16.msrb.mxu2 %v4341_v35  ;;  %v2413_v35 = vpop.f32.mrf.mxu0 }
  0xc5   :  { %2728 = vmatpush.bf16.msrb.mxu3 %v4533_v40  ;;  %v3865_v40 = vor.u32 %v4829_v27, %v3862_v28  ;;  %v2414_v54 = vadd.f32 %v2413_v35, %v470_v53  ;;  %v3601_v27 = vor.u32 %v4763_v16, %v3598_v18  ;;  %v4661_v28 = vld [vmem:[#allocation5 + $0x9c] sm:$0xf]  ;;  %v3118_v16 = vld [vmem:[#allocation5 + $0x20] sm:$0xf0] }
  0xc6   :  { %2687 = vmatpush.bf16.msrb.mxu0 %v3933_v49  ;;  %v4823_v49 = vld [vmem:[#allocation5 + $0x5ac] sm:$0xf] }
  0xc7   :  { %2701 = vmatpush.bf16.msrb.mxu1 %v4125_v51  ;;  %v2440_v51 = vadd.f32 %v2439_v24, %v2426_v30  ;;  %v3841_v61 = vor.u32 %v4823_v49, %v3838_v50  ;;  %v4709_v30 = vld [vmem:[#allocation5 + $0x21c] sm:$0xf]  ;;  %v4703_v49 = vld [vmem:[#allocation5 + $0x1ec] sm:$0xf]  ;;  %v3358_v50 = vld [vmem:[#allocation5 + $0x200] sm:$0xf0] }
  0xc8   :  { %2715 = vmatpush.bf16.msrb.mxu2 %v4317_v52  ;;  %v3265_v52 = vor.u32 %v4679_v36, %v3262_v37  ;;  %v4805_v36 = vld [vmem:[#allocation5 + $0x51c] sm:$0xf]  ;;  %v3766_v37 = vld [vmem:[#allocation5 + $0x530] sm:$0xf0]  ;;  %v3361_v63 = vor.u32 %v4703_v49, %v3358_v50  ;;  %v4871_v50 = vld [vmem:[#allocation5 + $0x72c] sm:$0xf] }
  0xc9   :  { %2729 = vmatpush.bf16.msrb.mxu3 %v4509_v57  ;;  %v4673_v57 = vld [vmem:[#allocation5 + $0xfc] sm:$0xf]  ;;  %v2454_v4 = vadd.f32 %v2453_v29, %v2440_v51  ;;  %v3190_v29 = vld [vmem:[#allocation5 + $0xb0] sm:$0xf0]  ;;  %v3769_v51 = vor.u32 %v4805_v36, %v3766_v37 }
  0xca   :  { %2688 = vmatpush.bf16.msrb.mxu0 %v3909_v2  ;;  %v4817_v2 = vld [vmem:[#allocation5 + $0x57c] sm:$0xf]  ;;  %v3241_v53 = vor.u32 %v4673_v57, %v3238_v59  ;;  %v3193_v38 = vor.u32 %v4661_v28, %v3190_v29  ;;  %v3694_v28 = vld [vmem:[#allocation5 + $0x4a0] sm:$0xf0]  ;;  %v4438_v37 = vld [vmem:[#allocation5 + $0xa70] sm:$0xf0] }
  0xcb   :  { %2702 = vmatpush.bf16.msrb.mxu1 %v4101_v5  ;;  %v2441_v5 = vpop.f32.mrf.mxu2  ;;  %v3817_v14 = vor.u32 %v4817_v2, %v3814_v3  ;;  %v4973_v36 = vld [vmem:[#allocation5 + $0xa5c] sm:$0xf] }
  0xcc   :  { %2716 = vmatpush.bf16.msrb.mxu2 %v4293_v6  ;;  %v2428_v6 = vadd.f32 %v2427_v48, %v2414_v54  ;;  %v3166_v48 = vld [vmem:[#allocation5 + $0x80] sm:$0xf0]  ;;  %v4751_v54 = vld [vmem:[#allocation5 + $0x36c] sm:$0xf] }
  0xcd   :  { %2730 = vmatpush.bf16.msrb.mxu3 %v4485_v12  ;;  %v3214_v12 = vld [vmem:[#allocation5 + $0xe0] sm:$0xf0] }
  0xce   :  { %2689 = vmatpush.bf16.msrb.mxu0 %v3885_v20  ;;  %v2467_v19 = vpop.f32.mrf.mxu0  ;;  %v4811_v20 = vld [vmem:[#allocation5 + $0x54c] sm:$0xf]  ;;  %v3217_v23 = vor.u32 %v4667_v11, %v3214_v12  ;;  %v3526_v11 = vld [vmem:[#allocation5 + $0x350] sm:$0xf0]  ;;  %v4793_v12 = vld [vmem:[#allocation5 + $0x4bc] sm:$0xf] }
  0xcf   :  { %2703 = vmatpush.bf16.msrb.mxu1 %v4077_v25  ;;  %v2468_v22 = vadd.f32 %v2467_v19, %v2454_v4  ;;  %v2481_v24 = vpop.f32.mrf.mxu1  ;;  %v2442_v25 = vadd.f32 %v2441_v5, %v2428_v6  ;;  %v4649_v4 = vld [vmem:[#allocation5 + $0x3c] sm:$0xf] }
  0xd0   :  { %2717 = vmatpush.bf16.msrb.mxu2 %v4269_v26  ;;  %v3409_v26 = vor.u32 %v4715_v13, %v3406_v15  ;;  %v4697_v5 = vld [vmem:[#allocation5 + $0x1bc] sm:$0xf]  ;;  %v3718_v13 = vld [vmem:[#allocation5 + $0x4d0] sm:$0xf0]  ;;  %v4643_v15 = vld [vmem:[#allocation5 + $0xc] sm:$0xf] }
  0xd1   :  { %2731 = vmatpush.bf16.msrb.mxu3 %v4461_v31  ;;  %2690 = vmatmul.bf16.vlgmr.msrb.gmra.mxu0 %v5190_v39  ;;  %v3793_v31 = vor.u32 %v4811_v20, %v3790_v21  ;;  %v2482_v35 = vadd.f32 %v2481_v24, %v2468_v22  ;;  %v2456_v41 = vadd.f32 %v2455_v9, %v2442_v25  ;;  %v4745_v9 = vld [vmem:[#allocation5 + $0x33c] sm:$0xf]  ;;  %v4691_v21 = vld [vmem:[#allocation5 + $0x18c] sm:$0xf]  ;;  %v3310_v22 = vld [vmem:[#allocation5 + $0x1a0] sm:$0xf0] }
  0xd2   :  { %2738 = vmatpush.bf16.msra.mxu0 %v3289_v32  ;;  %2704 = vmatmul.bf16.vlgmr.msrb.gmra.mxu1 %v5194_v44  ;;  %v3382_v32 = vld [vmem:[#allocation5 + $0x230] sm:$0xf0]  ;;  %v3529_v20 = vor.u32 %v4745_v9, %v3526_v11  ;;  %v3721_v24 = vor.u32 %v4793_v12, %v3718_v13  ;;  %v5009_v9 = vld [vmem:[#allocation5 + $0xb7c] sm:$0xf] }
  0xd3   :  { %2752 = vmatpush.bf16.msra.mxu1 %v3481_v33  ;;  %2718 = vmatmul.bf16.vlgmr.msrb.gmra.mxu2 %v5192_v43  ;;  %v4757_v33 = vld [vmem:[#allocation5 + $0x39c] sm:$0xf]  ;;  %v3385_v42 = vor.u32 %v4709_v30, %v3382_v32  ;;  %v4054_v32 = vld [vmem:[#allocation5 + $0x770] sm:$0xf0] }
  0xd4   :  { %2766 = vmatpush.bf16.msra.mxu2 %v3673_v34  ;;  %2732 = vmatmul.bf16.vlgmr.msrb.gmra.mxu3 %v5196_v47  ;;  %v3574_v34 = vld [vmem:[#allocation5 + $0x3b0] sm:$0xf0] }
  0xd5   :  { %2780 = vmatpush.bf16.msra.mxu3 %v3865_v40  ;;  %v4655_v40 = vld [vmem:[#allocation5 + $0x6c] sm:$0xf]  ;;  %v3577_v46 = vor.u32 %v4757_v33, %v3574_v34  ;;  %v4925_v33 = vld [vmem:[#allocation5 + $0x8dc] sm:$0xf]  ;;  %v3121_v34 = vor.u32 %v4643_v15, %v3118_v16  ;;  %v4582_v11 = vld [vmem:[#allocation5 + $0xb90] sm:$0xf0] }
  0xd6   :  { %2739 = vmatpush.bf16.msra.mxu0 %v3265_v52  ;;  %v2495_v52 = vpop.f32.mrf.mxu2  ;;  %v2469_v57 = vpop.f32.mrf.mxu0  ;;  %v3169_v62 = vor.u32 %v4655_v40, %v3166_v48  ;;  %v3313_v40 = vor.u32 %v4691_v21, %v3310_v22  ;;  %v4859_v15 = vld [vmem:[#allocation5 + $0x6cc] sm:$0xf]  ;;  %v3982_v16 = vld [vmem:[#allocation5 + $0x6e0] sm:$0xf0] }
  0xd7   :  { %2753 = vmatpush.bf16.msra.mxu1 %v3457_v55  ;;  %v3550_v55 = vld [vmem:[#allocation5 + $0x380] sm:$0xf0]  ;;  %v2509_v59 = vpop.f32.mrf.mxu3  ;;  %v2470_v0 = vadd.f32 %v2469_v57, %v2456_v41  ;;  %v4955_v21 = vld [vmem:[#allocation5 + $0x9cc] sm:$0xf] }
  0xd8   :  { %2767 = vmatpush.bf16.msra.mxu2 %v3649_v56  ;;  %v2496_v56 = vadd.f32 %v2495_v52, %v2482_v35  ;;  %v3553_v3 = vor.u32 %v4751_v54, %v3550_v55  ;;  %v4246_v35 = vld [vmem:[#allocation5 + $0x8f0] sm:$0xf0]  ;;  %v4441_v52 = vor.u32 %v4973_v36, %v4438_v37  ;;  %v4030_v54 = vld [vmem:[#allocation5 + $0x740] sm:$0xf0]  ;;  %v4919_v55 = vld [vmem:[#allocation5 + $0x8ac] sm:$0xf] }
  0xd9   :  { %2781 = vmatpush.bf16.msra.mxu3 %v3841_v61  ;;  %v3742_v61 = vld [vmem:[#allocation5 + $0x500] sm:$0xf0]  ;;  %v4534_v36 = vld [vmem:[#allocation5 + $0xb30] sm:$0xf0] }
  0xda   :  { %2740 = vmatpush.bf16.msra.mxu0 %v3241_v53  ;;  %v2510_v2 = vadd.f32 %v2509_v59, %v2496_v56  ;;  %v3142_v53 = vld [vmem:[#allocation5 + $0x50] sm:$0xf0]  ;;  %v3745_v6 = vor.u32 %v4799_v60, %v3742_v61  ;;  %v4222_v57 = vld [vmem:[#allocation5 + $0x8c0] sm:$0xf0]  ;;  %v4967_v59 = vld [vmem:[#allocation5 + $0xa2c] sm:$0xf] }
  0xdb   :  { %2754 = vmatpush.bf16.msra.mxu1 %v3433_v7  ;;  %v2483_v7 = vpop.f32.mrf.mxu1  ;;  %v4414_v60 = vld [vmem:[#allocation5 + $0xa40] sm:$0xf0]  ;;  %v5015_v61 = vld [vmem:[#allocation5 + $0xbac] sm:$0xf] }
  0xdc   :  { %2768 = vmatpush.bf16.msra.mxu2 %v3625_v8  ;;  %v3334_v8 = vld [vmem:[#allocation5 + $0x1d0] sm:$0xf0]  ;;  %3074 = vst [vmem:[#allocation8] sm:$0xff] %v2510_v2  ;;  %v2484_v18 = vadd.f32 %v2483_v7, %v2470_v0  ;;  %v4225_v0 = vor.u32 %v4919_v55, %v4222_v57  ;;  %v4417_v2 = vor.u32 %v4967_v59, %v4414_v60  ;;  %v4961_v7 = vld [vmem:[#allocation5 + $0x9fc] sm:$0xf] }
  0xdd   :  { %2782 = vmatpush.bf16.msra.mxu3 %v3817_v14  ;;  %v3145_v14 = vor.u32 %v4649_v4, %v3142_v53  ;;  %v3337_v19 = vor.u32 %v4697_v5, %v3334_v8  ;;  %v4006_v4 = vld [vmem:[#allocation5 + $0x710] sm:$0xf0]  ;;  %v4913_v53 = vld [vmem:[#allocation5 + $0x87c] sm:$0xf]  ;;  %v4366_v22 = vld [vmem:[#allocation5 + $0x9e0] sm:$0xf0] }
  0xde   :  { %2741 = vmatpush.bf16.msra.mxu0 %v3217_v23  ;;  %v4739_v23 = vld [vmem:[#allocation5 + $0x30c] sm:$0xf]  ;;  %v2497_v25 = vpop.f32.mrf.mxu2  ;;  %v4390_v8 = vld [vmem:[#allocation5 + $0xa10] sm:$0xf0] }
  0xdf   :  { %2755 = vmatpush.bf16.msra.mxu1 %v3409_v26  ;;  %v3502_v26 = vld [vmem:[#allocation5 + $0x320] sm:$0xf0]  ;;  %v2498_v29 = vadd.f32 %v2497_v25, %v2484_v18  ;;  %v2511_v30 = vpop.f32.mrf.mxu3  ;;  %v4907_v18 = vld [vmem:[#allocation5 + $0x84c] sm:$0xf]  ;;  %v3985_v25 = vor.u32 %v4859_v15, %v3982_v16 }
  0xe0   :  { %2769 = vmatpush.bf16.msra.mxu2 %v3601_v27  ;;  %v4787_v27 = vld [vmem:[#allocation5 + $0x48c] sm:$0xf]  ;;  %v3505_v41 = vor.u32 %v4739_v23, %v3502_v26 }
  0xe1   :  { %2783 = vmatpush.bf16.msra.mxu3 %v3793_v31  ;;  %v4877_v31 = vld [vmem:[#allocation5 + $0x75c] sm:$0xf]  ;;  %v3697_v48 = vor.u32 %v4787_v27, %v3694_v28  ;;  %v5003_v23 = vld [vmem:[#allocation5 + $0xb4c] sm:$0xf]  ;;  %v4369_v27 = vor.u32 %v4955_v21, %v4366_v22  ;;  %v4462_v21 = vld [vmem:[#allocation5 + $0xaa0] sm:$0xf0] }
  0xe2   :  { %2742 = vmatpush.bf16.msra.mxu0 %v3193_v38  ;;  %v2512_v38 = vadd.f32 %v2511_v30, %v2498_v29  ;;  %v4057_v49 = vor.u32 %v4877_v31, %v4054_v32  ;;  %v4853_v28 = vld [vmem:[#allocation5 + $0x69c] sm:$0xf]  ;;  %v3958_v29 = vld [vmem:[#allocation5 + $0x6b0] sm:$0xf0]  ;;  %v4931_v15 = vld [vmem:[#allocation5 + $0x90c] sm:$0xf] }
  0xe3   :  { %2756 = vmatpush.bf16.msra.mxu1 %v3385_v42  ;;  %v5021_v42 = vld [vmem:[#allocation5 + $0xbdc] sm:$0xf]  ;;  %v4150_v32 = vld [vmem:[#allocation5 + $0x830] sm:$0xf0]  ;;  %v3961_v37 = vor.u32 %v4853_v28, %v3958_v29  ;;  %v3292_v22 = vld [vmem:[#allocation5 + $0x160] sm:$0xf] }
  0xe4   :  { %2770 = vmatpush.bf16.msra.mxu2 %v3577_v46  ;;  %v4630_v46 = vld [vmem:[#allocation5 + $0xbf0] sm:$0xf0]  ;;  %3080 = vst [vmem:[#allocation8 + $0x30] sm:$0xff] %v2512_v38  ;;  %v4901_v30 = vld [vmem:[#allocation5 + $0x81c] sm:$0xf] }
  0xe5   :  { %2784 = vmatpush.bf16.msra.mxu3 %v3769_v51  ;;  %v4249_v51 = vor.u32 %v4925_v33, %v4246_v35  ;;  %v4633_v56 = vor.u32 %v5021_v42, %v4630_v46  ;;  %v4949_v33 = vld [vmem:[#allocation5 + $0x99c] sm:$0xf]  ;;  %v4153_v38 = vor.u32 %v4901_v30, %v4150_v32  ;;  %v3934_v42 = vld [vmem:[#allocation5 + $0x680] sm:$0xf0]  ;;  %v4895_v46 = vld [vmem:[#allocation5 + $0x7ec] sm:$0xf] }
  0xe6   :  { %2743 = vmatpush.bf16.msra.mxu0 %v3169_v62  ;;  %v4606_v62 = vld [vmem:[#allocation5 + $0xbc0] sm:$0xf0]  ;;  %v4997_v35 = vld [vmem:[#allocation5 + $0xb1c] sm:$0xf]  ;;  %v4785_v28 = vld [vmem:[#allocation5 + $0x474] sm:$0xf0] }
  0xe7   :  { %2757 = vmatpush.bf16.msra.mxu1 %v3361_v63  ;;  %v4033_v63 = vor.u32 %v4871_v50, %v4030_v54  ;;  %v4609_v5 = vor.u32 %v5015_v61, %v4606_v62  ;;  %v4943_v50 = vld [vmem:[#allocation5 + $0x96c] sm:$0xf]  ;;  %v4510_v54 = vld [vmem:[#allocation5 + $0xb00] sm:$0xf0]  ;;  %v4841_v61 = vld [vmem:[#allocation5 + $0x63c] sm:$0xf] }
  0xe8   :  { %2771 = vmatpush.bf16.msra.mxu2 %v3553_v3  ;;  %v4865_v3 = vld [vmem:[#allocation5 + $0x6fc] sm:$0xf]  ;;  %v3910_v62 = vld [vmem:[#allocation5 + $0x650] sm:$0xf0]  ;;  %v3868_v32 = vld [vmem:[#allocation5 + $0x5e0] sm:$0xf] }
  0xe9   :  { %2785 = vmatpush.bf16.msra.mxu3 %v3745_v6  ;;  %v4198_v6 = vld [vmem:[#allocation5 + $0x890] sm:$0xf0]  ;;  %v4009_v12 = vor.u32 %v4865_v3, %v4006_v4  ;;  %v4937_v3 = vld [vmem:[#allocation5 + $0x93c] sm:$0xf] }
  0xea   :  { %2744 = vmatpush.bf16.msra.mxu0 %v3145_v14  ;;  %v4201_v13 = vor.u32 %v4913_v53, %v4198_v6  ;;  %v4393_v14 = vor.u32 %v4961_v7, %v4390_v8  ;;  %v4294_v4 = vld [vmem:[#allocation5 + $0x950] sm:$0xf0]  ;;  %v3913_v7 = vor.u32 %v4841_v61, %v3910_v62  ;;  %v4835_v8 = vld [vmem:[#allocation5 + $0x60c] sm:$0xf] }
  0xeb   :  { %2758 = vmatpush.bf16.msra.mxu1 %v3337_v19  ;;  %v4585_v19 = vor.u32 %v5009_v9, %v4582_v11  ;;  %v4486_v6 = vld [vmem:[#allocation5 + $0xad0] sm:$0xf0]  ;;  %v3886_v9 = vld [vmem:[#allocation5 + $0x620] sm:$0xf0] }
  0xec   :  { %2772 = vmatpush.bf16.msra.mxu2 %v3529_v20  ;;  %v4174_v20 = vld [vmem:[#allocation5 + $0x860] sm:$0xf0] }
  0xed   :  { %2786 = vmatpush.bf16.msra.mxu3 %v3721_v24  ;;  %v4558_v24 = vld [vmem:[#allocation5 + $0xb60] sm:$0xf0]  ;;  %v4177_v26 = vor.u32 %v4907_v18, %v4174_v20  ;;  %v4979_v20 = vld [vmem:[#allocation5 + $0xa8c] sm:$0xf] }
  0xee   :  { %2745 = vmatpush.bf16.msra.mxu0 %v3121_v34  ;;  %v4561_v31 = vor.u32 %v5003_v23, %v4558_v24  ;;  %v4342_v34 = vld [vmem:[#allocation5 + $0x9b0] sm:$0xf0]  ;;  %v2523_v60 = vpop.f32.mrf.mxu0  ;;  %v4689_v23 = vld [vmem:[#allocation5 + $0x174] sm:$0xf0]  ;;  %v3484_v24 = vld [vmem:[#allocation5 + $0x2e0] sm:$0xf] }
  0xef   :  { %2759 = vmatpush.bf16.msra.mxu1 %v3313_v40  ;;  %v4345_v40 = vor.u32 %v4949_v33, %v4342_v34  ;;  %v2537_v53 = vpop.f32.mrf.mxu1  ;;  %v4833_v33 = vld [vmem:[#allocation5 + $0x5f4] sm:$0xf0] }
  0xf0   :  { %2773 = vmatpush.bf16.msra.mxu2 %v3505_v41  ;;  %v4847_v41 = vld [vmem:[#allocation5 + $0x66c] sm:$0xf] }
  0xf1   :  { %2787 = vmatpush.bf16.msra.mxu3 %v3697_v48  ;;  %2746 = vmatmul.bf16.vlgmr.msra.gmra.mxu0 %v5178_v58  ;;  %v4537_v48 = vor.u32 %v4997_v35, %v4534_v36  ;;  %v3937_v55 = vor.u32 %v4847_v41, %v3934_v42  ;;  %v4465_v36 = vor.u32 %v4979_v20, %v4462_v21  ;;  %v3268_v42 = vld [vmem:[#allocation5 + $0x130] sm:$0xf]  ;;  %v4719_v20 = vld [vmem:[#allocation5 + $0x264] sm:$0xf0] }
  0xf2   :  { %2794 = vmatpush.bf16.msrb.mxu0 %v4057_v49  ;;  %2760 = vmatmul.bf16.vlgmr.msra.gmra.mxu1 %v5184_v10  ;;  %v4126_v49 = vld [vmem:[#allocation5 + $0x800] sm:$0xf0]  ;;  %v3604_v21 = vld [vmem:[#allocation5 + $0x3d0] sm:$0xf] }
  0xf3   :  { %2808 = vmatpush.bf16.msrb.mxu1 %v4249_v51  ;;  %2774 = vmatmul.bf16.vlgmr.msra.gmra.mxu2 %v5180_v1  ;;  %v4318_v51 = vld [vmem:[#allocation5 + $0x980] sm:$0xf0]  ;;  %v4129_v57 = vor.u32 %v4895_v46, %v4126_v49  ;;  %v4683_v46 = vld [vmem:[#allocation5 + $0x144] sm:$0xf0]  ;;  %v3869_v49 = vor.u32 %v4833_v33, %v3868_v32  ;;  %v3196_v32 = vld [vmem:[#allocation5 + $0xa0] sm:$0xf] }
  0xf4   :  { %2822 = vmatpush.bf16.msrb.mxu2 %v4441_v52  ;;  %2788 = vmatmul.bf16.vlgmr.msra.gmra.mxu3 %v5186_v17  ;;  %v4991_v52 = vld [vmem:[#allocation5 + $0xaec] sm:$0xf]  ;;  %v4321_v59 = vor.u32 %v4943_v50, %v4318_v51  ;;  %v4731_v50 = vld [vmem:[#allocation5 + $0x2c4] sm:$0xf0]  ;;  %v3652_v51 = vld [vmem:[#allocation5 + $0x430] sm:$0xf] }
  0xf5   :  { %2836 = vmatpush.bf16.msrb.mxu3 %v4633_v56  ;;  %v471_v56 = vperm.slane %v5214_v45, 1  ;;  %v4665_v33 = vld [vmem:[#allocation5 + $0xb4] sm:$0xf0] }
  0xf6   :  { %2795 = vmatpush.bf16.msrb.mxu0 %v4033_v63  ;;  %v4889_v63 = vld [vmem:[#allocation5 + $0x7bc] sm:$0xf]  ;;  %v2551_v29 = vpop.f32.mrf.mxu2  ;;  %v2525_v41 = vpop.f32.mrf.mxu0 }
  0xf7   :  { %2809 = vmatpush.bf16.msrb.mxu1 %v4225_v0  ;;  %v4513_v0 = vor.u32 %v4991_v52, %v4510_v54  ;;  %v2524_v16 = vadd.f32 %v2523_v60, %v471_v56  ;;  %v2565_v34 = vpop.f32.mrf.mxu3  ;;  %v4779_v52 = vld [vmem:[#allocation5 + $0x444] sm:$0xf0]  ;;  %v2539_v54 = vpop.f32.mrf.mxu1  ;;  %v3269_v60 = vor.u32 %v4683_v46, %v3268_v42  ;;  %v2526_v61 = vadd.f32 %v2525_v41, %v471_v56  ;;  %v3772_v41 = vld [vmem:[#allocation5 + $0x520] sm:$0xf]  ;;  %v4809_v42 = vld [vmem:[#allocation5 + $0x534] sm:$0xf0] }
  0xf8   :  { %2823 = vmatpush.bf16.msrb.mxu2 %v4417_v2  ;;  %v4102_v2 = vld [vmem:[#allocation5 + $0x7d0] sm:$0xf0]  ;;  %v3197_v46 = vor.u32 %v4665_v33, %v3196_v32 }
  0xf9   :  { %2837 = vmatpush.bf16.msrb.mxu3 %v4609_v5  ;;  %v4985_v5 = vld [vmem:[#allocation5 + $0xabc] sm:$0xf]  ;;  %v4105_v11 = vor.u32 %v4889_v63, %v4102_v2  ;;  %v2538_v35 = vadd.f32 %v2537_v53, %v2524_v16  ;;  %v3653_v63 = vor.u32 %v4779_v52, %v3652_v51  ;;  %v4677_v2 = vld [vmem:[#allocation5 + $0x114] sm:$0xf0]  ;;  %v4671_v16 = vld [vmem:[#allocation5 + $0xe4] sm:$0xf0] }
  0xfa   :  { %2796 = vmatpush.bf16.msrb.mxu0 %v4009_v12  ;;  %v4297_v12 = vor.u32 %v4937_v3, %v4294_v4  ;;  %v4489_v18 = vor.u32 %v4985_v5, %v4486_v6  ;;  %v3436_v3 = vld [vmem:[#allocation5 + $0x280] sm:$0xf]  ;;  %v4725_v53 = vld [vmem:[#allocation5 + $0x294] sm:$0xf0]  ;;  %v4659_v52 = vld [vmem:[#allocation5 + $0x84] sm:$0xf0] }
  0xfb   :  { %2810 = vmatpush.bf16.msrb.mxu1 %v4201_v13  ;;  %v4883_v13 = vld [vmem:[#allocation5 + $0x78c] sm:$0xf]  ;;  %v3628_v5 = vld [vmem:[#allocation5 + $0x400] sm:$0xf]  ;;  %v4773_v6 = vld [vmem:[#allocation5 + $0x414] sm:$0xf0] }
  0xfc   :  { %2824 = vmatpush.bf16.msrb.mxu2 %v4393_v14  ;;  %v4078_v14 = vld [vmem:[#allocation5 + $0x7a0] sm:$0xf0] }
  0xfd   :  { %2838 = vmatpush.bf16.msrb.mxu3 %v4585_v19  ;;  %v4270_v19 = vld [vmem:[#allocation5 + $0x920] sm:$0xf0]  ;;  %v4081_v30 = vor.u32 %v4883_v13, %v4078_v14  ;;  %v3629_v13 = vor.u32 %v4773_v6, %v3628_v5 }
  0xfe   :  { %2797 = vmatpush.bf16.msrb.mxu0 %v3985_v25  ;;  %v3889_v25 = vor.u32 %v4835_v8, %v3886_v9  ;;  %v4821_v8 = vld [vmem:[#allocation5 + $0x594] sm:$0xf0]  ;;  %v2553_v9 = vpop.f32.mrf.mxu2 }
  0xff   :  { %2811 = vmatpush.bf16.msrb.mxu1 %v4177_v26  ;;  %v4737_v26 = vld [vmem:[#allocation5 + $0x2f4] sm:$0xf0]  ;;  %v2567_v14 = vpop.f32.mrf.mxu3 }
 0x100   :  { %2825 = vmatpush.bf16.msrb.mxu2 %v4369_v27  ;;  %v3676_v27 = vld [vmem:[#allocation5 + $0x460] sm:$0xf] }
 0x101   :  { %2839 = vmatpush.bf16.msrb.mxu3 %v4561_v31  ;;  %v4273_v31 = vor.u32 %v4931_v15, %v4270_v19  ;;  %v3220_v15 = vld [vmem:[#allocation5 + $0xd0] sm:$0xf] }
 0x102   :  { %2798 = vmatpush.bf16.msrb.mxu0 %v3961_v37  ;;  %v3293_v37 = vor.u32 %v4689_v23, %v3292_v22  ;;  %v4767_v22 = vld [vmem:[#allocation5 + $0x3e4] sm:$0xf0] }
 0x103   :  { %2812 = vmatpush.bf16.msrb.mxu1 %v4153_v38  ;;  %v3485_v38 = vor.u32 %v4737_v26, %v3484_v24  ;;  %v3796_v24 = vld [vmem:[#allocation5 + $0x550] sm:$0xf] }
 0x104   :  { %2826 = vmatpush.bf16.msrb.mxu2 %v4345_v40  ;;  %v3677_v40 = vor.u32 %v4785_v28, %v3676_v27  ;;  %v3221_v27 = vor.u32 %v4671_v16, %v3220_v15  ;;  %v3724_v15 = vld [vmem:[#allocation5 + $0x4c0] sm:$0xf]  ;;  %v4797_v16 = vld [vmem:[#allocation5 + $0x4d4] sm:$0xf0] }
 0x105   :  { %2840 = vmatpush.bf16.msrb.mxu3 %v4537_v48  ;;  %v3460_v48 = vld [vmem:[#allocation5 + $0x2b0] sm:$0xf] }
 0x106   :  { %2799 = vmatpush.bf16.msrb.mxu0 %v3937_v55  ;;  %v3844_v55 = vld [vmem:[#allocation5 + $0x5b0] sm:$0xf]  ;;  %v3461_v62 = vor.u32 %v4731_v50, %v3460_v48 }
 0x107   :  { %2813 = vmatpush.bf16.msrb.mxu1 %v4129_v57  ;;  %v4827_v57 = vld [vmem:[#allocation5 + $0x5c4] sm:$0xf0]  ;;  %v3172_v48 = vld [vmem:[#allocation5 + $0x70] sm:$0xf] }
 0x108   :  { %2827 = vmatpush.bf16.msrb.mxu2 %v4321_v59  ;;  %v2552_v59 = vadd.f32 %v2551_v29, %v2538_v35  ;;  %v3845_v4 = vor.u32 %v4827_v57, %v3844_v55  ;;  %v4707_v55 = vld [vmem:[#allocation5 + $0x204] sm:$0xf0]  ;;  %v3773_v57 = vor.u32 %v4809_v42, %v3772_v41  ;;  %v4977_v41 = vld [vmem:[#allocation5 + $0xa74] sm:$0xf0] }
 0x109   :  { %2841 = vmatpush.bf16.msrb.mxu3 %v4513_v0  ;;  %v3244_v0 = vld [vmem:[#allocation5 + $0x100] sm:$0xf] }
 0x10a   :  { %2800 = vmatpush.bf16.msrb.mxu0 %v3913_v7  ;;  %v3820_v7 = vld [vmem:[#allocation5 + $0x580] sm:$0xf]  ;;  %v2566_v45 = vadd.f32 %v2565_v34, %v2552_v59  ;;  %v3245_v56 = vor.u32 %v4677_v2, %v3244_v0  ;;  %v3748_v2 = vld [vmem:[#allocation5 + $0x4f0] sm:$0xf] }
 0x10b   :  { %2814 = vmatpush.bf16.msrb.mxu1 %v4105_v11  ;;  %v2540_v11 = vadd.f32 %v2539_v54, %v2526_v61  ;;  %v3821_v19 = vor.u32 %v4821_v8, %v3820_v7  ;;  %v3388_v34 = vld [vmem:[#allocation5 + $0x220] sm:$0xf]  ;;  %v3364_v54 = vld [vmem:[#allocation5 + $0x1f0] sm:$0xf]  ;;  %v4755_v61 = vld [vmem:[#allocation5 + $0x384] sm:$0xf0] }
 0x10c   :  { %2828 = vmatpush.bf16.msrb.mxu2 %v4297_v12  ;;  %v3437_v12 = vor.u32 %v4725_v53, %v3436_v3  ;;  %v4803_v3 = vld [vmem:[#allocation5 + $0x504] sm:$0xf0]  ;;  %v3365_v53 = vor.u32 %v4707_v55, %v3364_v54  ;;  %v3148_v8 = vld [vmem:[#allocation5 + $0x40] sm:$0xf]  ;;  %v4036_v54 = vld [vmem:[#allocation5 + $0x730] sm:$0xf] }
 0x10d   :  { %2842 = vmatpush.bf16.msrb.mxu3 %v4489_v18  ;;  %v3412_v18 = vld [vmem:[#allocation5 + $0x250] sm:$0xf]  ;;  %v2554_v29 = vadd.f32 %v2553_v9, %v2540_v11  ;;  %v3749_v9 = vor.u32 %v4803_v3, %v3748_v2  ;;  %v5019_v3 = vld [vmem:[#allocation5 + $0xbc4] sm:$0xf0] }
 0x10e   :  { %2801 = vmatpush.bf16.msrb.mxu0 %v3889_v25  ;;  %v2579_v23 = vpop.f32.mrf.mxu0  ;;  %v4815_v25 = vld [vmem:[#allocation5 + $0x564] sm:$0xf0]  ;;  %v4612_v2 = vld [vmem:[#allocation5 + $0xbb0] sm:$0xf] }
 0x10f   :  { %2815 = vmatpush.bf16.msrb.mxu1 %v4081_v30  ;;  %v2580_v26 = vadd.f32 %v2579_v23, %v2566_v45  ;;  %v2593_v28 = vpop.f32.mrf.mxu1  ;;  %v3413_v30 = vor.u32 %v4719_v20, %v3412_v18  ;;  %v3797_v35 = vor.u32 %v4815_v25, %v3796_v24  ;;  %v4653_v45 = vld [vmem:[#allocation5 + $0x54] sm:$0xf0]  ;;  %v4647_v20 = vld [vmem:[#allocation5 + $0x24] sm:$0xf0]  ;;  %v3316_v24 = vld [vmem:[#allocation5 + $0x190] sm:$0xf] }
 0x110   :  { %2829 = vmatpush.bf16.msrb.mxu2 %v4273_v31  ;;  %v3605_v31 = vor.u32 %v4767_v22, %v3604_v21  ;;  %v3149_v18 = vor.u32 %v4653_v45, %v3148_v8  ;;  %v4695_v25 = vld [vmem:[#allocation5 + $0x1a4] sm:$0xf0]  ;;  %v4204_v8 = vld [vmem:[#allocation5 + $0x880] sm:$0xf]  ;;  %v4613_v45 = vor.u32 %v5019_v3, %v4612_v2  ;;  %v4845_v3 = vld [vmem:[#allocation5 + $0x654] sm:$0xf0] }
 0x111   :  { %2843 = vmatpush.bf16.msrb.mxu3 %v4465_v36  ;;  %2802 = vmatmul.bf16.vlgmr.msrb.gmra.mxu0 %v5190_v39  ;;  %v4713_v36 = vld [vmem:[#allocation5 + $0x234] sm:$0xf0]  ;;  %v3916_v2 = vld [vmem:[#allocation5 + $0x640] sm:$0xf] }
 0x112   :  { %2850 = vmatpush.bf16.msra.mxu0 %v3293_v37  ;;  %2816 = vmatmul.bf16.vlgmr.msrb.gmra.mxu1 %v5194_v44  ;;  %v3580_v37 = vld [vmem:[#allocation5 + $0x3a0] sm:$0xf]  ;;  %v3389_v50 = vor.u32 %v4713_v36, %v3388_v34 }
 0x113   :  { %2864 = vmatpush.bf16.msra.mxu1 %v3485_v38  ;;  %2830 = vmatmul.bf16.vlgmr.msrb.gmra.mxu2 %v5192_v43  ;;  %v4761_v38 = vld [vmem:[#allocation5 + $0x3b4] sm:$0xf0]  ;;  %v4060_v34 = vld [vmem:[#allocation5 + $0x760] sm:$0xf] }
 0x114   :  { %2878 = vmatpush.bf16.msra.mxu2 %v3677_v40  ;;  %2844 = vmatmul.bf16.vlgmr.msrb.gmra.mxu3 %v5196_v47  ;;  %v2594_v40 = vadd.f32 %v2593_v28, %v2580_v26  ;;  %v3581_v51 = vor.u32 %v4761_v38, %v3580_v37  ;;  %v3508_v26 = vld [vmem:[#allocation5 + $0x310] sm:$0xf]  ;;  %v4252_v36 = vld [vmem:[#allocation5 + $0x8e0] sm:$0xf]  ;;  %v4929_v38 = vld [vmem:[#allocation5 + $0x8f4] sm:$0xf0] }
 0x115   :  { %2892 = vmatpush.bf16.msra.mxu3 %v3869_v49  ;;  %v2568_v49 = vadd.f32 %v2567_v14, %v2554_v29  ;;  %v4749_v14 = vld [vmem:[#allocation5 + $0x354] sm:$0xf0]  ;;  %v4743_v29 = vld [vmem:[#allocation5 + $0x324] sm:$0xf0]  ;;  %v4253_v55 = vor.u32 %v4929_v38, %v4252_v36 }
 0x116   :  { %2851 = vmatpush.bf16.msra.mxu0 %v3269_v60  ;;  %v2607_v59 = vpop.f32.mrf.mxu2  ;;  %v3556_v60 = vld [vmem:[#allocation5 + $0x370] sm:$0xf]  ;;  %v4953_v36 = vld [vmem:[#allocation5 + $0x9b4] sm:$0xf0] }
 0x117   :  { %2865 = vmatpush.bf16.msra.mxu1 %v3461_v62  ;;  %v2608_v62 = vadd.f32 %v2607_v59, %v2594_v40  ;;  %v2621_v0 = vpop.f32.mrf.mxu3  ;;  %v3557_v7 = vor.u32 %v4755_v61, %v3556_v60  ;;  %v2595_v11 = vpop.f32.mrf.mxu1  ;;  %v4444_v40 = vld [vmem:[#allocation5 + $0xa60] sm:$0xf]  ;;  %v4875_v59 = vld [vmem:[#allocation5 + $0x744] sm:$0xf0]  ;;  %v4228_v60 = vld [vmem:[#allocation5 + $0x8b0] sm:$0xf] }
 0x118   :  { %2879 = vmatpush.bf16.msra.mxu2 %v3653_v63  ;;  %v2581_v63 = vpop.f32.mrf.mxu0  ;;  %v5001_v38 = vld [vmem:[#allocation5 + $0xb34] sm:$0xf0] }
 0x119   :  { %2893 = vmatpush.bf16.msra.mxu3 %v3845_v4  ;;  %v3173_v4 = vor.u32 %v4659_v52, %v3172_v48  ;;  %v2582_v5 = vadd.f32 %v2581_v63, %v2568_v49  ;;  %v2622_v6 = vadd.f32 %v2621_v0, %v2608_v62  ;;  %v3509_v48 = vor.u32 %v4743_v29, %v3508_v26  ;;  %v4636_v49 = vld [vmem:[#allocation5 + $0xbe0] sm:$0xf]  ;;  %v4923_v62 = vld [vmem:[#allocation5 + $0x8c4] sm:$0xf0]  ;;  %v4420_v63 = vld [vmem:[#allocation5 + $0xa30] sm:$0xf] }
 0x11a   :  { %2852 = vmatpush.bf16.msra.mxu0 %v3245_v56  ;;  %v3340_v56 = vld [vmem:[#allocation5 + $0x1c0] sm:$0xf]  ;;  %v4971_v0 = vld [vmem:[#allocation5 + $0xa44] sm:$0xf0] }
 0x11b   :  { %2866 = vmatpush.bf16.msra.mxu1 %v3437_v12  ;;  %v4701_v12 = vld [vmem:[#allocation5 + $0x1d4] sm:$0xf0]  ;;  %3075 = vst [vmem:[#allocation8 + $0x8] sm:$0xff] %v2622_v6  ;;  %v2596_v21 = vadd.f32 %v2595_v11, %v2582_v5  ;;  %v4421_v5 = vor.u32 %v4971_v0, %v4420_v63  ;;  %v4012_v6 = vld [vmem:[#allocation5 + $0x700] sm:$0xf] }
 0x11c   :  { %2880 = vmatpush.bf16.msra.mxu2 %v3629_v13  ;;  %v3532_v13 = vld [vmem:[#allocation5 + $0x340] sm:$0xf]  ;;  %v3341_v22 = vor.u32 %v4701_v12, %v3340_v56  ;;  %v4917_v56 = vld [vmem:[#allocation5 + $0x894] sm:$0xf0]  ;;  %v5007_v26 = vld [vmem:[#allocation5 + $0xb64] sm:$0xf0] }
 0x11d   :  { %2894 = vmatpush.bf16.msra.mxu3 %v3821_v19  ;;  %v3124_v19 = vld [vmem:[#allocation5 + $0x10] sm:$0xf]  ;;  %v3533_v23 = vor.u32 %v4749_v14, %v3532_v13  ;;  %v4965_v11 = vld [vmem:[#allocation5 + $0xa14] sm:$0xf0]  ;;  %v4588_v12 = vld [vmem:[#allocation5 + $0xb80] sm:$0xf] }
 0x11e   :  { %2853 = vmatpush.bf16.msra.mxu0 %v3221_v27  ;;  %v3725_v27 = vor.u32 %v4797_v16, %v3724_v15  ;;  %v2609_v28 = vpop.f32.mrf.mxu2  ;;  %v3125_v37 = vor.u32 %v4647_v20, %v3124_v19  ;;  %v5013_v13 = vld [vmem:[#allocation5 + $0xb94] sm:$0xf0]  ;;  %v4205_v15 = vor.u32 %v4917_v56, %v4204_v8  ;;  %v4863_v19 = vld [vmem:[#allocation5 + $0x6e4] sm:$0xf0]  ;;  %v4180_v20 = vld [vmem:[#allocation5 + $0x850] sm:$0xf] }
 0x11f   :  { %2867 = vmatpush.bf16.msra.mxu1 %v3413_v30  ;;  %v3700_v30 = vld [vmem:[#allocation5 + $0x490] sm:$0xf]  ;;  %v2610_v32 = vadd.f32 %v2609_v28, %v2596_v21  ;;  %v2623_v33 = vpop.f32.mrf.mxu3  ;;  %v4589_v21 = vor.u32 %v5013_v13, %v4588_v12  ;;  %v4989_v56 = vld [vmem:[#allocation5 + $0xad4] sm:$0xf0]  ;;  %v4839_v12 = vld [vmem:[#allocation5 + $0x624] sm:$0xf0] }
 0x120   :  { %2881 = vmatpush.bf16.msra.mxu2 %v3605_v31  ;;  %v4791_v31 = vld [vmem:[#allocation5 + $0x4a4] sm:$0xf0] }
 0x121   :  { %2895 = vmatpush.bf16.msra.mxu3 %v3797_v35  ;;  %v4881_v35 = vld [vmem:[#allocation5 + $0x774] sm:$0xf0]  ;;  %v2624_v42 = vadd.f32 %v2623_v33, %v2610_v32  ;;  %v4156_v32 = vld [vmem:[#allocation5 + $0x820] sm:$0xf] }
 0x122   :  { %2854 = vmatpush.bf16.msra.mxu0 %v3197_v46  ;;  %v3317_v46 = vor.u32 %v4695_v25, %v3316_v24  ;;  %v4061_v52 = vor.u32 %v4881_v35, %v4060_v34  ;;  %v4959_v24 = vld [vmem:[#allocation5 + $0x9e4] sm:$0xf0]  ;;  %v4564_v25 = vld [vmem:[#allocation5 + $0xb50] sm:$0xf]  ;;  %v4905_v34 = vld [vmem:[#allocation5 + $0x834] sm:$0xf0] }
 0x123   :  { %2868 = vmatpush.bf16.msra.mxu1 %v3389_v50  ;;  %v5025_v50 = vld [vmem:[#allocation5 + $0xbf4] sm:$0xf0]  ;;  %3081 = vst [vmem:[#allocation8 + $0x38] sm:$0xff] %v2624_v42  ;;  %v4565_v33 = vor.u32 %v5007_v26, %v4564_v25  ;;  %v4348_v35 = vld [vmem:[#allocation5 + $0x9a0] sm:$0xf] }
 0x124   :  { %2882 = vmatpush.bf16.msra.mxu2 %v3581_v51  ;;  %v3701_v51 = vor.u32 %v4791_v31, %v3700_v30  ;;  %v4637_v61 = vor.u32 %v5025_v50, %v4636_v49  ;;  %v3964_v30 = vld [vmem:[#allocation5 + $0x6a0] sm:$0xf]  ;;  %v4857_v31 = vld [vmem:[#allocation5 + $0x6b4] sm:$0xf0]  ;;  %v4349_v42 = vor.u32 %v4953_v36, %v4348_v35  ;;  %v4132_v49 = vld [vmem:[#allocation5 + $0x7f0] sm:$0xf] }
 0x125   :  { %2896 = vmatpush.bf16.msra.mxu3 %v3773_v57  ;;  %v4445_v57 = vor.u32 %v4977_v41, %v4444_v40  ;;  %v3965_v40 = vor.u32 %v4857_v31, %v3964_v30  ;;  %v4157_v41 = vor.u32 %v4905_v34, %v4156_v32  ;;  %v3294_v25 = vld [vmem:[#allocation5 + $0x178] sm:$0xf0]  ;;  %v4734_v26 = vld [vmem:[#allocation5 + $0x2e4] sm:$0xf] }
 0x126   :  { %2855 = vmatpush.bf16.msra.mxu0 %v3173_v4  ;;  %v4037_v4 = vor.u32 %v4875_v59, %v4036_v54  ;;  %v4947_v54 = vld [vmem:[#allocation5 + $0x984] sm:$0xf0]  ;;  %v3678_v30 = vld [vmem:[#allocation5 + $0x478] sm:$0xf0]  ;;  %v4830_v34 = vld [vmem:[#allocation5 + $0x5e4] sm:$0xf] }
 0x127   :  { %2869 = vmatpush.bf16.msra.mxu1 %v3365_v53  ;;  %v4229_v53 = vor.u32 %v4923_v62, %v4228_v60  ;;  %v5242_v60 = vld [vmem:[#allocation7] sm:$0x3f]  ;;  %v3870_v35 = vld [vmem:[#allocation5 + $0x5f8] sm:$0xf0] }
 0x128   :  { %2883 = vmatpush.bf16.msra.mxu2 %v3557_v7  ;;  %v4869_v7 = vld [vmem:[#allocation5 + $0x714] sm:$0xf0] }
 0x129   :  { %2897 = vmatpush.bf16.msra.mxu3 %v3749_v9  ;;  %v4396_v9 = vld [vmem:[#allocation5 + $0xa00] sm:$0xf]  ;;  %v4013_v14 = vor.u32 %v4869_v7, %v4012_v6  ;;  %v4941_v7 = vld [vmem:[#allocation5 + $0x954] sm:$0xf0] }
 0x12a   :  { %2856 = vmatpush.bf16.msra.mxu0 %v3149_v18  ;;  %v4397_v16 = vor.u32 %v4965_v11, %v4396_v9  ;;  %v3988_v18 = vld [vmem:[#allocation5 + $0x6d0] sm:$0xf]  ;;  %v4300_v6 = vld [vmem:[#allocation5 + $0x940] sm:$0xf]  ;;  %v3917_v9 = vor.u32 %v4845_v3, %v3916_v2 }
 0x12b   :  { %2870 = vmatpush.bf16.msra.mxu1 %v3341_v22  ;;  %v4911_v22 = vld [vmem:[#allocation5 + $0x864] sm:$0xf0]  ;;  %v3892_v11 = vld [vmem:[#allocation5 + $0x610] sm:$0xf] }
 0x12c   :  { %2884 = vmatpush.bf16.msra.mxu2 %v3533_v23  ;;  %v4372_v23 = vld [vmem:[#allocation5 + $0x9d0] sm:$0xf]  ;;  %v4181_v28 = vor.u32 %v4911_v22, %v4180_v20 }
 0x12d   :  { %2898 = vmatpush.bf16.msra.mxu3 %v3725_v27  ;;  %v3989_v27 = vor.u32 %v4863_v19, %v3988_v18  ;;  %v4373_v29 = vor.u32 %v4959_v24, %v4372_v23  ;;  %v4276_v18 = vld [vmem:[#allocation5 + $0x910] sm:$0xf]  ;;  %v4983_v23 = vld [vmem:[#allocation5 + $0xaa4] sm:$0xf0]  ;;  %v4686_v24 = vld [vmem:[#allocation5 + $0x164] sm:$0xf] }
 0x12e   :  { %2857 = vmatpush.bf16.msra.mxu0 %v3125_v37  ;;  %v4540_v37 = vld [vmem:[#allocation5 + $0xb20] sm:$0xf]  ;;  %v2635_v0 = vpop.f32.mrf.mxu0  ;;  %v4468_v22 = vld [vmem:[#allocation5 + $0xa90] sm:$0xf] }
 0x12f   :  { %2871 = vmatpush.bf16.msra.mxu1 %v3317_v46  ;;  %v3940_v46 = vld [vmem:[#allocation5 + $0x670] sm:$0xf]  ;;  %v4541_v50 = vor.u32 %v5001_v38, %v4540_v37  ;;  %v2649_v8 = vpop.f32.mrf.mxu1  ;;  %v4469_v38 = vor.u32 %v4983_v23, %v4468_v22  ;;  %v3414_v23 = vld [vmem:[#allocation5 + $0x268] sm:$0xf0] }
 0x130   :  { %2885 = vmatpush.bf16.msra.mxu2 %v3509_v48  ;;  %v4851_v48 = vld [vmem:[#allocation5 + $0x684] sm:$0xf0] }
 0x131   :  { %2899 = vmatpush.bf16.msra.mxu3 %v3701_v51  ;;  %2858 = vmatmul.bf16.vlgmr.msra.gmra.mxu0 %v5178_v58  ;;  %v4899_v51 = vld [vmem:[#allocation5 + $0x804] sm:$0xf0]  ;;  %v3941_v59 = vor.u32 %v4851_v48, %v3940_v46  ;;  %v4680_v48 = vld [vmem:[#allocation5 + $0x134] sm:$0xf] }
 0x132   :  { %2906 = vmatpush.bf16.msrb.mxu0 %v4061_v52  ;;  %2872 = vmatmul.bf16.vlgmr.msra.gmra.mxu1 %v5184_v10  ;;  %v4324_v52 = vld [vmem:[#allocation5 + $0x970] sm:$0xf]  ;;  %v4133_v62 = vor.u32 %v4899_v51, %v4132_v49  ;;  %v3270_v49 = vld [vmem:[#allocation5 + $0x148] sm:$0xf0]  ;;  %v3873_v51 = vor.u32 %v4830_v34, %v3870_v35  ;;  %v4662_v35 = vld [vmem:[#allocation5 + $0xa4] sm:$0xf] }
 0x133   :  { %2920 = vmatpush.bf16.msrb.mxu1 %v4253_v55  ;;  %2886 = vmatmul.bf16.vlgmr.msra.gmra.mxu2 %v5180_v1  ;;  %v4516_v55 = vld [vmem:[#allocation5 + $0xaf0] sm:$0xf]  ;;  %v4325_v63 = vor.u32 %v4947_v54, %v4324_v52  ;;  %v3462_v52 = vld [vmem:[#allocation5 + $0x2c8] sm:$0xf0]  ;;  %v4776_v54 = vld [vmem:[#allocation5 + $0x434] sm:$0xf] }
 0x134   :  { %2934 = vmatpush.bf16.msrb.mxu2 %v4445_v57  ;;  %2900 = vmatmul.bf16.vlgmr.msra.gmra.mxu3 %v5186_v17  ;;  %v4995_v57 = vld [vmem:[#allocation5 + $0xb04] sm:$0xf0] }
 0x135   :  { %2948 = vmatpush.bf16.msrb.mxu3 %v4637_v61  ;;  %v472_v61 = vperm.slane %v5242_v60, 2 }
 0x136   :  { %2907 = vmatpush.bf16.msrb.mxu0 %v4037_v4  ;;  %v4108_v4 = vld [vmem:[#allocation5 + $0x7c0] sm:$0xf]  ;;  %v2663_v31 = vpop.f32.mrf.mxu2  ;;  %v2637_v46 = vpop.f32.mrf.mxu0 }
 0x137   :  { %2921 = vmatpush.bf16.msrb.mxu1 %v4229_v53  ;;  %v4517_v53 = vor.u32 %v4995_v57, %v4516_v55  ;;  %v2636_v19 = vadd.f32 %v2635_v0, %v472_v61  ;;  %v2677_v36 = vpop.f32.mrf.mxu3  ;;  %v3654_v55 = vld [vmem:[#allocation5 + $0x448] sm:$0xf0]  ;;  %v2651_v57 = vpop.f32.mrf.mxu1  ;;  %v3273_v0 = vor.u32 %v4680_v48, %v3270_v49  ;;  %v2638_v2 = vadd.f32 %v2637_v46, %v472_v61  ;;  %v4806_v48 = vld [vmem:[#allocation5 + $0x524] sm:$0xf]  ;;  %v3774_v49 = vld [vmem:[#allocation5 + $0x538] sm:$0xf0] }
 0x138   :  { %2935 = vmatpush.bf16.msrb.mxu2 %v4421_v5  ;;  %v4893_v5 = vld [vmem:[#allocation5 + $0x7d4] sm:$0xf0] }
 0x139   :  { %2949 = vmatpush.bf16.msrb.mxu3 %v4613_v45  ;;  %v4492_v45 = vld [vmem:[#allocation5 + $0xac0] sm:$0xf]  ;;  %v4109_v13 = vor.u32 %v4893_v5, %v4108_v4  ;;  %v2650_v37 = vadd.f32 %v2649_v8, %v2636_v19  ;;  %v3657_v4 = vor.u32 %v4776_v54, %v3654_v55  ;;  %v3246_v5 = vld [vmem:[#allocation5 + $0x118] sm:$0xf0]  ;;  %v4668_v19 = vld [vmem:[#allocation5 + $0xd4] sm:$0xf] }
 0x13a   :  { %2908 = vmatpush.bf16.msrb.mxu0 %v4013_v14  ;;  %v4301_v14 = vor.u32 %v4941_v7, %v4300_v6  ;;  %v4493_v20 = vor.u32 %v4989_v56, %v4492_v45  ;;  %v4722_v6 = vld [vmem:[#allocation5 + $0x284] sm:$0xf]  ;;  %v3438_v8 = vld [vmem:[#allocation5 + $0x298] sm:$0xf0] }
 0x13b   :  { %2922 = vmatpush.bf16.msrb.mxu1 %v4205_v15  ;;  %v4084_v15 = vld [vmem:[#allocation5 + $0x790] sm:$0xf]  ;;  %v4770_v45 = vld [vmem:[#allocation5 + $0x404] sm:$0xf]  ;;  %v3630_v56 = vld [vmem:[#allocation5 + $0x418] sm:$0xf0] }
 0x13c   :  { %2936 = vmatpush.bf16.msrb.mxu2 %v4397_v16  ;;  %v4887_v16 = vld [vmem:[#allocation5 + $0x7a4] sm:$0xf0] }
 0x13d   :  { %2950 = vmatpush.bf16.msrb.mxu3 %v4589_v21  ;;  %v4935_v21 = vld [vmem:[#allocation5 + $0x924] sm:$0xf0]  ;;  %v4085_v32 = vor.u32 %v4887_v16, %v4084_v15  ;;  %v3441_v15 = vor.u32 %v4722_v6, %v3438_v8  ;;  %v3633_v16 = vor.u32 %v4770_v45, %v3630_v56  ;;  %v4800_v6 = vld [vmem:[#allocation5 + $0x4f4] sm:$0xf] }
 0x13e   :  { %2909 = vmatpush.bf16.msrb.mxu0 %v3989_v27  ;;  %v3893_v27 = vor.u32 %v4839_v12, %v3892_v11  ;;  %v3822_v11 = vld [vmem:[#allocation5 + $0x598] sm:$0xf0] }
 0x13f   :  { %2923 = vmatpush.bf16.msrb.mxu1 %v4181_v28  ;;  %v3486_v28 = vld [vmem:[#allocation5 + $0x2f8] sm:$0xf0] }
 0x140   :  { %2937 = vmatpush.bf16.msrb.mxu2 %v4373_v29  ;;  %v4782_v29 = vld [vmem:[#allocation5 + $0x464] sm:$0xf] }
 0x141   :  { %2951 = vmatpush.bf16.msrb.mxu3 %v4565_v33  ;;  %v4277_v33 = vor.u32 %v4935_v21, %v4276_v18  ;;  %v2679_v18 = vpop.f32.mrf.mxu3  ;;  %v4716_v21 = vld [vmem:[#allocation5 + $0x254] sm:$0xf] }
 0x142   :  { %2910 = vmatpush.bf16.msrb.mxu0 %v3965_v40  ;;  %v3297_v40 = vor.u32 %v4686_v24, %v3294_v25  ;;  %v4764_v24 = vld [vmem:[#allocation5 + $0x3d4] sm:$0xf]  ;;  %v3606_v25 = vld [vmem:[#allocation5 + $0x3e8] sm:$0xf0] }
 0x143   :  { %2924 = vmatpush.bf16.msrb.mxu1 %v4157_v41  ;;  %v3489_v41 = vor.u32 %v4734_v26, %v3486_v28  ;;  %v3798_v28 = vld [vmem:[#allocation5 + $0x568] sm:$0xf0]  ;;  %v3609_v34 = vor.u32 %v4764_v24, %v3606_v25 }
 0x144   :  { %2938 = vmatpush.bf16.msrb.mxu2 %v4349_v42  ;;  %v3681_v42 = vor.u32 %v4782_v29, %v3678_v30  ;;  %v3126_v24 = vld [vmem:[#allocation5 + $0x28] sm:$0xf0] }
 0x145   :  { %2952 = vmatpush.bf16.msrb.mxu3 %v4541_v50  ;;  %v4728_v50 = vld [vmem:[#allocation5 + $0x2b4] sm:$0xf] }
 0x146   :  { %2911 = vmatpush.bf16.msrb.mxu0 %v3941_v59  ;;  %v4824_v59 = vld [vmem:[#allocation5 + $0x5b4] sm:$0xf]  ;;  %v3465_v3 = vor.u32 %v4728_v50, %v3462_v52 }
 0x147   :  { %2925 = vmatpush.bf16.msrb.mxu1 %v4133_v62  ;;  %v3846_v62 = vld [vmem:[#allocation5 + $0x5c8] sm:$0xf0] }
 0x148   :  { %2939 = vmatpush.bf16.msrb.mxu2 %v4325_v63  ;;  %v2664_v63 = vadd.f32 %v2663_v31, %v2650_v37  ;;  %v3849_v7 = vor.u32 %v4824_v59, %v3846_v62  ;;  %v4710_v37 = vld [vmem:[#allocation5 + $0x224] sm:$0xf]  ;;  %v4704_v59 = vld [vmem:[#allocation5 + $0x1f4] sm:$0xf]  ;;  %v3366_v62 = vld [vmem:[#allocation5 + $0x208] sm:$0xf0] }
 0x149   :  { %2953 = vmatpush.bf16.msrb.mxu3 %v4517_v53  ;;  %v4674_v53 = vld [vmem:[#allocation5 + $0x104] sm:$0xf]  ;;  %v3369_v45 = vor.u32 %v4704_v59, %v3366_v62  ;;  %v4872_v62 = vld [vmem:[#allocation5 + $0x734] sm:$0xf] }
 0x14a   :  { %2912 = vmatpush.bf16.msrb.mxu0 %v3917_v9  ;;  %v4818_v9 = vld [vmem:[#allocation5 + $0x584] sm:$0xf]  ;;  %v2678_v12 = vadd.f32 %v2677_v36, %v2664_v63  ;;  %v3249_v61 = vor.u32 %v4674_v53, %v3246_v5  ;;  %v3198_v36 = vld [vmem:[#allocation5 + $0xb8] sm:$0xf0]  ;;  %v3777_v63 = vor.u32 %v4806_v48, %v3774_v49 }
 0x14b   :  { %2926 = vmatpush.bf16.msrb.mxu1 %v4109_v13  ;;  %v2665_v13 = vpop.f32.mrf.mxu2  ;;  %v3825_v22 = vor.u32 %v4818_v9, %v3822_v11  ;;  %v3201_v50 = vor.u32 %v4662_v35, %v3198_v36  ;;  %v3702_v35 = vld [vmem:[#allocation5 + $0x4a8] sm:$0xf0]  ;;  %v4974_v48 = vld [vmem:[#allocation5 + $0xa64] sm:$0xf]  ;;  %v4446_v49 = vld [vmem:[#allocation5 + $0xa78] sm:$0xf0] }
 0x14c   :  { %2940 = vmatpush.bf16.msrb.mxu2 %v4301_v14  ;;  %v2652_v14 = vadd.f32 %v2651_v57, %v2638_v2  ;;  %v3174_v57 = vld [vmem:[#allocation5 + $0x88] sm:$0xf0]  ;;  %v4752_v2 = vld [vmem:[#allocation5 + $0x374] sm:$0xf] }
 0x14d   :  { %2954 = vmatpush.bf16.msrb.mxu3 %v4493_v20  ;;  %v3222_v20 = vld [vmem:[#allocation5 + $0xe8] sm:$0xf0] }
 0x14e   :  { %2913 = vmatpush.bf16.msrb.mxu0 %v3893_v27  ;;  %v2691_v26 = vpop.f32.mrf.mxu0  ;;  %v4812_v27 = vld [vmem:[#allocation5 + $0x554] sm:$0xf]  ;;  %v3225_v30 = vor.u32 %v4668_v19, %v3222_v20  ;;  %v3534_v19 = vld [vmem:[#allocation5 + $0x358] sm:$0xf0]  ;;  %v4794_v20 = vld [vmem:[#allocation5 + $0x4c4] sm:$0xf] }
 0x14f   :  { %2927 = vmatpush.bf16.msrb.mxu1 %v4085_v32  ;;  %v2692_v29 = vadd.f32 %v2691_v26, %v2678_v12  ;;  %v2705_v31 = vpop.f32.mrf.mxu1  ;;  %v2666_v32 = vadd.f32 %v2665_v13, %v2652_v14  ;;  %v4650_v12 = vld [vmem:[#allocation5 + $0x44] sm:$0xf] }
 0x150   :  { %2941 = vmatpush.bf16.msrb.mxu2 %v4277_v33  ;;  %v3417_v33 = vor.u32 %v4716_v21, %v3414_v23  ;;  %v4698_v13 = vld [vmem:[#allocation5 + $0x1c4] sm:$0xf]  ;;  %v3726_v21 = vld [vmem:[#allocation5 + $0x4d8] sm:$0xf0]  ;;  %v4644_v23 = vld [vmem:[#allocation5 + $0x14] sm:$0xf] }
 0x151   :  { %2955 = vmatpush.bf16.msrb.mxu3 %v4469_v38  ;;  %2914 = vmatmul.bf16.vlgmr.msrb.gmra.mxu0 %v5190_v39  ;;  %v3801_v38 = vor.u32 %v4812_v27, %v3798_v28  ;;  %v2706_v46 = vadd.f32 %v2705_v31, %v2692_v29  ;;  %v2680_v52 = vadd.f32 %v2679_v18, %v2666_v32  ;;  %v4746_v18 = vld [vmem:[#allocation5 + $0x344] sm:$0xf]  ;;  %v4692_v28 = vld [vmem:[#allocation5 + $0x194] sm:$0xf]  ;;  %v3318_v29 = vld [vmem:[#allocation5 + $0x1a8] sm:$0xf0] }
 0x152   :  { %2962 = vmatpush.bf16.msra.mxu0 %v3297_v40  ;;  %2928 = vmatmul.bf16.vlgmr.msrb.gmra.mxu1 %v5194_v44  ;;  %v3390_v40 = vld [vmem:[#allocation5 + $0x238] sm:$0xf0]  ;;  %v3537_v27 = vor.u32 %v4746_v18, %v3534_v19  ;;  %v3729_v31 = vor.u32 %v4794_v20, %v3726_v21  ;;  %v5010_v18 = vld [vmem:[#allocation5 + $0xb84] sm:$0xf] }
 0x153   :  { %2976 = vmatpush.bf16.msra.mxu1 %v3489_v41  ;;  %2942 = vmatmul.bf16.vlgmr.msrb.gmra.mxu2 %v5192_v43  ;;  %v4758_v41 = vld [vmem:[#allocation5 + $0x3a4] sm:$0xf]  ;;  %v3393_v54 = vor.u32 %v4710_v37, %v3390_v40  ;;  %v4062_v40 = vld [vmem:[#allocation5 + $0x778] sm:$0xf0] }
 0x154   :  { %2990 = vmatpush.bf16.msra.mxu2 %v3681_v42  ;;  %2956 = vmatmul.bf16.vlgmr.msrb.gmra.mxu3 %v5196_v47  ;;  %v3582_v42 = vld [vmem:[#allocation5 + $0x3b8] sm:$0xf0] }
 0x155   :  { %3004 = vmatpush.bf16.msra.mxu3 %v3873_v51  ;;  %v4656_v51 = vld [vmem:[#allocation5 + $0x74] sm:$0xf]  ;;  %v3585_v55 = vor.u32 %v4758_v41, %v3582_v42  ;;  %v4926_v41 = vld [vmem:[#allocation5 + $0x8e4] sm:$0xf]  ;;  %v3129_v42 = vor.u32 %v4644_v23, %v3126_v24  ;;  %v4590_v19 = vld [vmem:[#allocation5 + $0xb98] sm:$0xf0] }
 0x156   :  { %2963 = vmatpush.bf16.msra.mxu0 %v3273_v0  ;;  %v2719_v0 = vpop.f32.mrf.mxu2  ;;  %v2693_v53 = vpop.f32.mrf.mxu0  ;;  %v3177_v8 = vor.u32 %v4656_v51, %v3174_v57  ;;  %v3321_v51 = vor.u32 %v4692_v28, %v3318_v29  ;;  %v4860_v23 = vld [vmem:[#allocation5 + $0x6d4] sm:$0xf]  ;;  %v3990_v24 = vld [vmem:[#allocation5 + $0x6e8] sm:$0xf0] }
 0x157   :  { %2977 = vmatpush.bf16.msra.mxu1 %v3465_v3  ;;  %v3558_v3 = vld [vmem:[#allocation5 + $0x388] sm:$0xf0]  ;;  %v2733_v5 = vpop.f32.mrf.mxu3  ;;  %v2694_v56 = vadd.f32 %v2693_v53, %v2680_v52  ;;  %v5004_v29 = vld [vmem:[#allocation5 + $0xb54] sm:$0xf] }
 0x158   :  { %2991 = vmatpush.bf16.msra.mxu2 %v3657_v4  ;;  %v2720_v4 = vadd.f32 %v2719_v0, %v2706_v46  ;;  %v3561_v11 = vor.u32 %v4752_v2, %v3558_v3  ;;  %v4254_v46 = vld [vmem:[#allocation5 + $0x8f8] sm:$0xf0]  ;;  %v4449_v0 = vor.u32 %v4974_v48, %v4446_v49  ;;  %v4038_v2 = vld [vmem:[#allocation5 + $0x748] sm:$0xf0]  ;;  %v4920_v3 = vld [vmem:[#allocation5 + $0x8b4] sm:$0xf] }
 0x159   :  { %3005 = vmatpush.bf16.msra.mxu3 %v3849_v7  ;;  %v3750_v7 = vld [vmem:[#allocation5 + $0x508] sm:$0xf0]  ;;  %v4848_v48 = vld [vmem:[#allocation5 + $0x674] sm:$0xf] }
 0x15a   :  { %2964 = vmatpush.bf16.msra.mxu0 %v3249_v61  ;;  %v2734_v9 = vadd.f32 %v2733_v5, %v2720_v4  ;;  %v3150_v61 = vld [vmem:[#allocation5 + $0x58] sm:$0xf0]  ;;  %v3753_v14 = vor.u32 %v4800_v6, %v3750_v7  ;;  %v4230_v53 = vld [vmem:[#allocation5 + $0x8c8] sm:$0xf0]  ;;  %v4968_v5 = vld [vmem:[#allocation5 + $0xa34] sm:$0xf] }
 0x15b   :  { %2978 = vmatpush.bf16.msra.mxu1 %v3441_v15  ;;  %v2707_v15 = vpop.f32.mrf.mxu1  ;;  %v4422_v6 = vld [vmem:[#allocation5 + $0xa48] sm:$0xf0]  ;;  %v5016_v7 = vld [vmem:[#allocation5 + $0xbb4] sm:$0xf] }
 0x15c   :  { %2992 = vmatpush.bf16.msra.mxu2 %v3633_v16  ;;  %v3342_v16 = vld [vmem:[#allocation5 + $0x1d8] sm:$0xf0]  ;;  %3076 = vst [vmem:[#allocation8 + $0x10] sm:$0xff] %v2734_v9  ;;  %v2708_v25 = vadd.f32 %v2707_v15, %v2694_v56  ;;  %v4233_v56 = vor.u32 %v4920_v3, %v4230_v53  ;;  %v4425_v9 = vor.u32 %v4968_v5, %v4422_v6  ;;  %v4962_v15 = vld [vmem:[#allocation5 + $0xa04] sm:$0xf] }
 0x15d   :  { %3006 = vmatpush.bf16.msra.mxu3 %v3825_v22  ;;  %v3153_v22 = vor.u32 %v4650_v12, %v3150_v61  ;;  %v3345_v26 = vor.u32 %v4698_v13, %v3342_v16  ;;  %v4014_v12 = vld [vmem:[#allocation5 + $0x718] sm:$0xf0]  ;;  %v4914_v61 = vld [vmem:[#allocation5 + $0x884] sm:$0xf]  ;;  %v4374_v28 = vld [vmem:[#allocation5 + $0x9e8] sm:$0xf0] }
 0x15e   :  { %2965 = vmatpush.bf16.msra.mxu0 %v3225_v30  ;;  %v4740_v30 = vld [vmem:[#allocation5 + $0x314] sm:$0xf]  ;;  %v2721_v32 = vpop.f32.mrf.mxu2  ;;  %v4398_v16 = vld [vmem:[#allocation5 + $0xa18] sm:$0xf0]  ;;  %v3942_v49 = vld [vmem:[#allocation5 + $0x688] sm:$0xf0] }
 0x15f   :  { %2979 = vmatpush.bf16.msra.mxu1 %v3417_v33  ;;  %v3510_v33 = vld [vmem:[#allocation5 + $0x328] sm:$0xf0]  ;;  %v2722_v36 = vadd.f32 %v2721_v32, %v2708_v25  ;;  %v2735_v37 = vpop.f32.mrf.mxu3  ;;  %v4593_v25 = vor.u32 %v5010_v18, %v4590_v19  ;;  %v3966_v32 = vld [vmem:[#allocation5 + $0x6b8] sm:$0xf0]  ;;  %v4890_v5 = vld [vmem:[#allocation5 + $0x7c4] sm:$0xf] }
 0x160   :  { %2993 = vmatpush.bf16.msra.mxu2 %v3609_v34  ;;  %v4788_v34 = vld [vmem:[#allocation5 + $0x494] sm:$0xf]  ;;  %v3513_v52 = vor.u32 %v4740_v30, %v3510_v33  ;;  %v4902_v33 = vld [vmem:[#allocation5 + $0x824] sm:$0xf]  ;;  %v3918_v53 = vld [vmem:[#allocation5 + $0x658] sm:$0xf0] }
 0x161   :  { %3007 = vmatpush.bf16.msra.mxu3 %v3801_v38  ;;  %v4878_v38 = vld [vmem:[#allocation5 + $0x764] sm:$0xf]  ;;  %v3705_v57 = vor.u32 %v4788_v34, %v3702_v35  ;;  %v4158_v35 = vld [vmem:[#allocation5 + $0x838] sm:$0xf0] }
 0x162   :  { %2966 = vmatpush.bf16.msra.mxu0 %v3201_v50  ;;  %v2736_v50 = vadd.f32 %v2735_v37, %v2722_v36  ;;  %v4065_v59 = vor.u32 %v4878_v38, %v4062_v40  ;;  %v4950_v36 = vld [vmem:[#allocation5 + $0x9a4] sm:$0xf]  ;;  %v4350_v37 = vld [vmem:[#allocation5 + $0x9b8] sm:$0xf0] }
 0x163   :  { %2980 = vmatpush.bf16.msra.mxu1 %v3393_v54  ;;  %v5022_v54 = vld [vmem:[#allocation5 + $0xbe4] sm:$0xf]  ;;  %v4542_v40 = vld [vmem:[#allocation5 + $0xb38] sm:$0xf0] }
 0x164   :  { %2994 = vmatpush.bf16.msra.mxu2 %v3585_v55  ;;  %v4638_v55 = vld [vmem:[#allocation5 + $0xbf8] sm:$0xf0]  ;;  %3082 = vst [vmem:[#allocation8 + $0x40] sm:$0xff] %v2736_v50  ;;  %v4998_v38 = vld [vmem:[#allocation5 + $0xb24] sm:$0xf] }
 0x165   :  { %3008 = vmatpush.bf16.msra.mxu3 %v3777_v63  ;;  %v4257_v63 = vor.u32 %v4926_v41, %v4254_v46  ;;  %v4641_v4 = vor.u32 %v5022_v54, %v4638_v55  ;;  %v4353_v46 = vor.u32 %v4950_v36, %v4350_v37  ;;  %v4896_v50 = vld [vmem:[#allocation5 + $0x7f4] sm:$0xf]  ;;  %v4326_v55 = vld [vmem:[#allocation5 + $0x988] sm:$0xf0] }
 0x166   :  { %2967 = vmatpush.bf16.msra.mxu0 %v3177_v8  ;;  %v4614_v8 = vld [vmem:[#allocation5 + $0xbc8] sm:$0xf0]  ;;  %v4944_v54 = vld [vmem:[#allocation5 + $0x974] sm:$0xf] }
 0x167   :  { %2981 = vmatpush.bf16.msra.mxu1 %v3369_v45  ;;  %v4041_v45 = vor.u32 %v4872_v62, %v4038_v2  ;;  %v4617_v13 = vor.u32 %v5016_v7, %v4614_v8  ;;  %v3945_v62 = vor.u32 %v4848_v48, %v3942_v49  ;;  %v4329_v2 = vor.u32 %v4944_v54, %v4326_v55  ;;  %v4110_v7 = vld [vmem:[#allocation5 + $0x7d8] sm:$0xf0]  ;;  %v4938_v8 = vld [vmem:[#allocation5 + $0x944] sm:$0xf] }
 0x168   :  { %2995 = vmatpush.bf16.msra.mxu2 %v3561_v11  ;;  %v4866_v11 = vld [vmem:[#allocation5 + $0x704] sm:$0xf] }
 0x169   :  { %3009 = vmatpush.bf16.msra.mxu3 %v3753_v14  ;;  %v4206_v14 = vld [vmem:[#allocation5 + $0x898] sm:$0xf0]  ;;  %v4017_v20 = vor.u32 %v4866_v11, %v4014_v12 }
 0x16a   :  { %2968 = vmatpush.bf16.msra.mxu0 %v3153_v22  ;;  %v4209_v21 = vor.u32 %v4914_v61, %v4206_v14  ;;  %v4401_v22 = vor.u32 %v4962_v15, %v4398_v16  ;;  %v4494_v11 = vld [vmem:[#allocation5 + $0xad8] sm:$0xf0]  ;;  %v4113_v61 = vor.u32 %v4890_v5, %v4110_v7  ;;  %v4836_v14 = vld [vmem:[#allocation5 + $0x614] sm:$0xf]  ;;  %v3894_v15 = vld [vmem:[#allocation5 + $0x628] sm:$0xf0] }
 0x16b   :  { %2982 = vmatpush.bf16.msra.mxu1 %v3345_v26  ;;  %v4182_v26 = vld [vmem:[#allocation5 + $0x868] sm:$0xf0]  ;;  %v4884_v16 = vld [vmem:[#allocation5 + $0x794] sm:$0xf] }
 0x16c   :  { %2996 = vmatpush.bf16.msra.mxu2 %v3537_v27  ;;  %v4956_v27 = vld [vmem:[#allocation5 + $0x9d4] sm:$0xf] }
 0x16d   :  { %3010 = vmatpush.bf16.msra.mxu3 %v3729_v31  ;;  %v4854_v31 = vld [vmem:[#allocation5 + $0x6a4] sm:$0xf] }
 0x16e   :  { %2969 = vmatpush.bf16.msra.mxu0 %v3129_v42  ;;  %v3969_v41 = vor.u32 %v4854_v31, %v3966_v32  ;;  %v4161_v42 = vor.u32 %v4902_v33, %v4158_v35  ;;  %v2747_v3 = vpop.f32.mrf.mxu0 }
 0x16f   :  { %2983 = vmatpush.bf16.msra.mxu1 %v3321_v51  ;;  %v4545_v51 = vor.u32 %v4998_v38, %v4542_v40 }
 0x170   :  { %2997 = vmatpush.bf16.msra.mxu2 %v3513_v52  ;;  %v4134_v52 = vld [vmem:[#allocation5 + $0x808] sm:$0xf0] }
 0x171   :  { %3011 = vmatpush.bf16.msra.mxu3 %v3705_v57  ;;  %2970 = vmatmul.bf16.vlgmr.msra.gmra.mxu0 %v5178_v58  ;;  %v4566_v58 = vld [vmem:[#allocation5 + $0xb68] sm:$0xf0]  ;;  %v4992_v57 = vld [vmem:[#allocation5 + $0xaf4] sm:$0xf] }
 0x172   :  { %3018 = vmatpush.bf16.msrb.mxu0 %v4065_v59  ;;  %2984 = vmatmul.bf16.vlgmr.msra.gmra.mxu1 %v5184_v10  ;;  %v4377_v10 = vor.u32 %v4956_v27, %v4374_v28  ;;  %v4569_v34 = vor.u32 %v5004_v29, %v4566_v58  ;;  %v4518_v59 = vld [vmem:[#allocation5 + $0xb08] sm:$0xf0] }
 0x173   :  { %3032 = vmatpush.bf16.msrb.mxu1 %v4257_v63  ;;  %2998 = vmatmul.bf16.vlgmr.msra.gmra.mxu2 %v5180_v1  ;;  %v4908_v1 = vld [vmem:[#allocation5 + $0x854] sm:$0xf]  ;;  %v473_v63 = vperm.slane %v5242_v60, 3  ;;  %v4521_v6 = vor.u32 %v4992_v57, %v4518_v59  ;;  %v474_v59 = vperm.slane %v5242_v60, 4 }
 0x174   :  { %3046 = vmatpush.bf16.msrb.mxu2 %v4449_v0  ;;  %3012 = vmatmul.bf16.vlgmr.msra.gmra.mxu3 %v5186_v17  ;;  %v3993_v17 = vor.u32 %v4860_v23, %v3990_v24  ;;  %v4185_v30 = vor.u32 %v4908_v1, %v4182_v26  ;;  %v4137_v0 = vor.u32 %v4896_v50, %v4134_v52  ;;  %v4980_v23 = vld [vmem:[#allocation5 + $0xa94] sm:$0xf]  ;;  %v4470_v24 = vld [vmem:[#allocation5 + $0xaa8] sm:$0xf0] }
 0x175   :  { %3060 = vmatpush.bf16.msrb.mxu3 %v4641_v4  ;;  %v4842_v4 = vld [vmem:[#allocation5 + $0x644] sm:$0xf]  ;;  %v2748_v18 = vadd.f32 %v2747_v3, %v473_v63  ;;  %v3897_v1 = vor.u32 %v4836_v14, %v3894_v15  ;;  %v4473_v58 = vor.u32 %v4980_v23, %v4470_v24 }
 0x176   :  { %3019 = vmatpush.bf16.msrb.mxu0 %v4041_v45  ;;  %v4302_v45 = vld [vmem:[#allocation5 + $0x958] sm:$0xf0]  ;;  %v3921_v12 = vor.u32 %v4842_v4, %v3918_v53 }
 0x177   :  { %3033 = vmatpush.bf16.msrb.mxu1 %v4233_v56  ;;  %v2761_v56 = vpop.f32.mrf.mxu1  ;;  %v2789_v28 = vpop.f32.mrf.mxu3 }
 0x178   :  { %3047 = vmatpush.bf16.msrb.mxu2 %v4425_v9  ;;  %v4986_v9 = vld [vmem:[#allocation5 + $0xac4] sm:$0xf]  ;;  %v2762_v29 = vadd.f32 %v2761_v56, %v2748_v18 }
 0x179   :  { %3061 = vmatpush.bf16.msrb.mxu3 %v4617_v13  ;;  %v4305_v13 = vor.u32 %v4938_v8, %v4302_v45  ;;  %v4497_v19 = vor.u32 %v4986_v9, %v4494_v11 }
 0x17a   :  { %3020 = vmatpush.bf16.msrb.mxu0 %v4017_v20  ;;  %v4086_v20 = vld [vmem:[#allocation5 + $0x7a8] sm:$0xf0] }
 0x17b   :  { %3034 = vmatpush.bf16.msrb.mxu1 %v4209_v21  ;;  %v4932_v21 = vld [vmem:[#allocation5 + $0x914] sm:$0xf]  ;;  %v4089_v26 = vor.u32 %v4884_v16, %v4086_v20 }
 0x17c   :  { %3048 = vmatpush.bf16.msrb.mxu2 %v4401_v22  ;;  %v4278_v22 = vld [vmem:[#allocation5 + $0x928] sm:$0xf0] }
 0x17d   :  { %3062 = vmatpush.bf16.msrb.mxu3 %v4593_v25  ;;  %v2775_v25 = vpop.f32.mrf.mxu2  ;;  %v4281_v27 = vor.u32 %v4932_v21, %v4278_v22 }
 0x17e   :  { %3021 = vmatpush.bf16.msrb.mxu0 %v3993_v17  ;;  %v2749_v17 = vpop.f32.mrf.mxu0 }
 0x17f   :  { %3035 = vmatpush.bf16.msrb.mxu1 %v4185_v30  ;;  %v2763_v30 = vpop.f32.mrf.mxu1  ;;  %v2750_v31 = vadd.f32 %v2749_v17, %v473_v63  ;;  %v2791_v35 = vpop.f32.mrf.mxu3 }
 0x180   :  { %3049 = vmatpush.bf16.msrb.mxu2 %v4377_v10  ;;  %v2776_v10 = vadd.f32 %v2775_v25, %v2762_v29 }
 0x181   :  { %3063 = vmatpush.bf16.msrb.mxu3 %v4569_v34  ;;  %v2764_v34 = vadd.f32 %v2763_v30, %v2750_v31 }
 0x182   :  { %3022 = vmatpush.bf16.msrb.mxu0 %v3969_v41  ;;  %v2790_v32 = vadd.f32 %v2789_v28, %v2776_v10  ;;  %v475_v28 = vperm.slane %v5242_v60, 5 }
 0x183   :  { %3036 = vmatpush.bf16.msrb.mxu1 %v4161_v42 }
 0x184   :  { %3050 = vmatpush.bf16.msrb.mxu2 %v4353_v46 }
 0x185   :  { %3064 = vmatpush.bf16.msrb.mxu3 %v4545_v51  ;;  %v2777_v33 = vpop.f32.mrf.mxu2 }
 0x186   :  { %3023 = vmatpush.bf16.msrb.mxu0 %v3945_v62  ;;  %v2778_v40 = vadd.f32 %v2777_v33, %v2764_v34 }
 0x187   :  { %3037 = vmatpush.bf16.msrb.mxu1 %v4137_v0 }
 0x188   :  { %3051 = vmatpush.bf16.msrb.mxu2 %v4329_v2  ;;  %v2792_v42 = vadd.f32 %v2791_v35, %v2778_v40 }
 0x189   :  { %3065 = vmatpush.bf16.msrb.mxu3 %v4521_v6 }
 0x18a   :  { %3024 = vmatpush.bf16.msrb.mxu0 %v3921_v12 }
 0x18b   :  { %3038 = vmatpush.bf16.msrb.mxu1 %v4113_v61 }
 0x18c   :  { %3052 = vmatpush.bf16.msrb.mxu2 %v4305_v13 }
 0x18d   :  { %3066 = vmatpush.bf16.msrb.mxu3 %v4497_v19 }
 0x18e   :  { %3025 = vmatpush.bf16.msrb.mxu0 %v3897_v1  ;;  %v2803_v36 = vpop.f32.mrf.mxu0 }
 0x18f   :  { %3039 = vmatpush.bf16.msrb.mxu1 %v4089_v26  ;;  %v2804_v37 = vadd.f32 %v2803_v36, %v2790_v32  ;;  %v2817_v38 = vpop.f32.mrf.mxu1 }
 0x190   :  { %3053 = vmatpush.bf16.msrb.mxu2 %v4281_v27 }
 0x191   :  { %3067 = vmatpush.bf16.msrb.mxu3 %v4473_v58  ;;  %3026 = vmatmul.bf16.vlgmr.msrb.gmra.mxu0 %v5190_v39  ;;  %v2818_v41 = vadd.f32 %v2817_v38, %v2804_v37 }
 0x192   :  { %3040 = vmatmul.bf16.vlgmr.msrb.gmra.mxu1 %v5194_v44 }
 0x193   :  { %3054 = vmatmul.bf16.vlgmr.msrb.gmra.mxu2 %v5192_v43 }
 0x194   :  { %3068 = vmatmul.bf16.vlgmr.msrb.gmra.mxu3 %v5196_v47 }
 0x196   :  { %v2831_v46 = vpop.f32.mrf.mxu2  ;;  %v2805_v39 = vpop.f32.mrf.mxu0 }
 0x197   :  { %v2832_v48 = vadd.f32 %v2831_v46, %v2818_v41  ;;  %v2845_v49 = vpop.f32.mrf.mxu3  ;;  %v2806_v50 = vadd.f32 %v2805_v39, %v2792_v42  ;;  %v2819_v51 = vpop.f32.mrf.mxu1 }
 0x199   :  { %v2846_v44 = vadd.f32 %v2845_v49, %v2832_v48  ;;  %v2820_v43 = vadd.f32 %v2819_v51, %v2806_v50 }
 0x19b   :  { %3077 = vst [vmem:[#allocation8 + $0x18] sm:$0xff] %v2846_v44 }
 0x19e   :  { %v2833_v47 = vpop.f32.mrf.mxu2 }
 0x19f   :  { %v2834_v52 = vadd.f32 %v2833_v47, %v2820_v43  ;;  %v2847_v54 = vpop.f32.mrf.mxu3 }
 0x1a1   :  { %v2848_v55 = vadd.f32 %v2847_v54, %v2834_v52 }
 0x1a3   :  { %3083 = vst [vmem:[#allocation8 + $0x48] sm:$0xff] %v2848_v55 }
 0x1ae   :  { %v2859_v57 = vpop.f32.mrf.mxu0 }
 0x1af   :  { %v2873_v62 = vpop.f32.mrf.mxu1  ;;  %v2860_v63 = vadd.f32 %v2859_v57, %v474_v59 }
 0x1b1   :  { %v2874_v3 = vadd.f32 %v2873_v62, %v2860_v63 }
 0x1b6   :  { %v2887_v0 = vpop.f32.mrf.mxu2  ;;  %v2861_v4 = vpop.f32.mrf.mxu0 }
 0x1b7   :  { %v2901_v2 = vpop.f32.mrf.mxu3  ;;  %v2875_v53 = vpop.f32.mrf.mxu1  ;;  %v2888_v5 = vadd.f32 %v2887_v0, %v2874_v3  ;;  %v2862_v6 = vadd.f32 %v2861_v4, %v474_v59 }
 0x1b9   :  { %v2902_v7 = vadd.f32 %v2901_v2, %v2888_v5  ;;  %v2876_v45 = vadd.f32 %v2875_v53, %v2862_v6 }
 0x1be   :  { %v2889_v8 = vpop.f32.mrf.mxu2 }
 0x1bf   :  { %v2903_v56 = vpop.f32.mrf.mxu3  ;;  %v2890_v61 = vadd.f32 %v2889_v8, %v2876_v45 }
 0x1c1   :  { %v2904_v14 = vadd.f32 %v2903_v56, %v2890_v61 }
 0x1ce   :  { %v2915_v9 = vpop.f32.mrf.mxu0 }
 0x1cf   :  { %v2916_v11 = vadd.f32 %v2915_v9, %v2902_v7  ;;  %v2929_v12 = vpop.f32.mrf.mxu1 }
 0x1d1   :  { %v2930_v13 = vadd.f32 %v2929_v12, %v2916_v11 }
 0x1d6   :  { %v2943_v15 = vpop.f32.mrf.mxu2  ;;  %v2917_v18 = vpop.f32.mrf.mxu0 }
 0x1d7   :  { %v2944_v16 = vadd.f32 %v2943_v15, %v2930_v13  ;;  %v2957_v19 = vpop.f32.mrf.mxu3  ;;  %v2918_v20 = vadd.f32 %v2917_v18, %v2904_v14  ;;  %v2931_v22 = vpop.f32.mrf.mxu1 }
 0x1d9   :  { %v2958_v21 = vadd.f32 %v2957_v19, %v2944_v16  ;;  %v2932_v23 = vadd.f32 %v2931_v22, %v2918_v20 }
 0x1db   :  { %3078 = vst [vmem:[#allocation8 + $0x20] sm:$0xff] %v2958_v21 }
 0x1de   :  { %v2945_v24 = vpop.f32.mrf.mxu2 }
 0x1df   :  { %v2946_v1 = vadd.f32 %v2945_v24, %v2932_v23  ;;  %v2959_v25 = vpop.f32.mrf.mxu3 }
 0x1e1   :  { %v2960_v26 = vadd.f32 %v2959_v25, %v2946_v1 }
 0x1e3   :  { %3084 = vst [vmem:[#allocation8 + $0x50] sm:$0xff] %v2960_v26 }
 0x1ee   :  { %v2971_v27 = vpop.f32.mrf.mxu0 }
 0x1ef   :  { %v2985_v29 = vpop.f32.mrf.mxu1  ;;  %v2972_v58 = vadd.f32 %v2971_v27, %v475_v28 }
 0x1f1   :  { %v2986_v10 = vadd.f32 %v2985_v29, %v2972_v58 }
 0x1f6   :  { %v2999_v17 = vpop.f32.mrf.mxu2  ;;  %v2973_v31 = vpop.f32.mrf.mxu0 }
 0x1f7   :  { %v3013_v30 = vpop.f32.mrf.mxu3  ;;  %v2987_v32 = vpop.f32.mrf.mxu1  ;;  %v3000_v33 = vadd.f32 %v2999_v17, %v2986_v10  ;;  %v2974_v34 = vadd.f32 %v2973_v31, %v475_v28 }
 0x1f9   :  { %v3014_v36 = vadd.f32 %v3013_v30, %v3000_v33  ;;  %v2988_v37 = vadd.f32 %v2987_v32, %v2974_v34 }
 0x1fe   :  { %v3001_v35 = vpop.f32.mrf.mxu2 }
 0x1ff   :  { %v3015_v38 = vpop.f32.mrf.mxu3  ;;  %v3002_v46 = vadd.f32 %v3001_v35, %v2988_v37 }
 0x201   :  { %v3016_v60 = vadd.f32 %v3015_v38, %v3002_v46 }
 0x20e   :  { %v3027_v40 = vpop.f32.mrf.mxu0 }
 0x20f   :  { %v3028_v41 = vadd.f32 %v3027_v40, %v3014_v36  ;;  %v3041_v42 = vpop.f32.mrf.mxu1 }
 0x211   :  { %v3042_v48 = vadd.f32 %v3041_v42, %v3028_v41 }
 0x216   :  { %v3055_v39 = vpop.f32.mrf.mxu2  ;;  %v3029_v44 = vpop.f32.mrf.mxu0 }
 0x217   :  { %v3056_v49 = vadd.f32 %v3055_v39, %v3042_v48  ;;  %v3069_v50 = vpop.f32.mrf.mxu3  ;;  %v3030_v43 = vadd.f32 %v3029_v44, %v3016_v60  ;;  %v3043_v47 = vpop.f32.mrf.mxu1 }
 0x219   :  { %v3070_v51 = vadd.f32 %v3069_v50, %v3056_v49  ;;  %v3044_v52 = vadd.f32 %v3043_v47, %v3030_v43 }
 0x21b   :  { %3079 = vst [vmem:[#allocation8 + $0x28] sm:$0xff] %v3070_v51 }
 0x21e   :  { %v3057_v54 = vpop.f32.mrf.mxu2 }
 0x21f   :  { %v3058_v55 = vadd.f32 %v3057_v54, %v3044_v52  ;;  %v3071_v57 = vpop.f32.mrf.mxu3 }
 0x221   :  { %v3072_v59 = vadd.f32 %v3071_v57, %v3058_v55 }
 0x223   :  { %3085 = vst [vmem:[#allocation8 + $0x58] sm:$0xff] %v3072_v59 }
 0x224   :  { %3098 = dma.vmem_to_hbm [thread:$0]  %s3091_s2, 1536, %s3093_s5, [#allocation4], %s5147_s6, %s5147_s6, %s5148_s7  }
 0x225   :  { %5137 = dma.done.wait [#allocation4], 1536  }
 0x226   :  { %5138 = vsyncadd [#allocation4], 4294965760 }
 0x227   :  { %3103 = vsyncpa [#allocation3], 1 }
 0x228   :  { %3104 = vsyncpa [#allocation6], 1 }
 0x229   :  { %3105 = vsyncpa [#allocation4], 1 }

</bundles_post_ra>
